<compile_context>
chip_gen: v6e
topology: v6e:2x2x1
jax: 0.10.0
libtpu: 0.0.40
codegen_flags: <defaults>
</compile_context>

<pallas_src>
import jax
import jax.numpy as jnp
from jax import lax
from jax.experimental import pallas as pl
from jax.experimental.pallas import tpu as pltpu


def _critic_kernel(x_ref, wbig_ref, wq_ref, p_ref, out_ref):
    # One grid step == TB batch elements, flattened to M = TB*N node rows.
    H = wq_ref.shape[-1]
    TB = out_ref.shape[-1]
    M = x_ref.shape[0]
    N = M // TB

    x = x_ref[...]                        # (M, 2)   channels-last static input
    p = p_ref[...]                        # (16, H)  packed small parameters
    wbig = wbig_ref[...]                  # (H, 4H)  [wref_0 | wref_1 | wref_2 | wfc1]

    # static_encoder: Conv1d(2, H, 1). K=2 contraction -> two VPU FMAs (no MXU waste).
    enc = x[:, 0:1] * p[0:1, :] + x[:, 1:2] * p[1:2, :] + p[2:3, :]           # (M, H)

    # project_ref for all three attention layers at once: one lane-dense (M,H)@(H,3H).
    e_all = jnp.dot(enc, wbig[:, :3 * H], preferred_element_type=jnp.float32)  # (M, 3H)

    hy = jnp.zeros((TB, H), jnp.float32)  # decoder hidden starts at zero

    for k in range(3):                    # statically unrolled attention stack
        # layer-k reference projection (+ its Conv1d bias), viewed per batch element
        e3 = (e_all[:, k * H:(k + 1) * H] + p[3 + k:4 + k, :]).reshape(TB, N, H)
        # project_query: Linear(H, H) on the TB decoder hiddens.
        dq = jnp.dot(hy, wq_ref[k], preferred_element_type=jnp.float32) \
            + p[6 + k:7 + k, :]                                               # (TB, H)
        # query broadcast across the N nodes is a VPU broadcast-add (no selector matmul)
        t3 = jnp.tanh(e3 + dq[:, None, :])                                    # (TB, N, H)
        # u[b,n] = sum_h v[h] * tanh(...)[b,n,h]   (lane reduction on the XLU)
        vk = p[9 + k:10 + k, :][None, :, :]                                   # (1, 1, H)
        u = jnp.sum(t3 * vk, axis=-1, keepdims=True)                          # (TB, N, 1)
        # Segmented softmax over the N nodes of each batch element, per-segment max.
        u = u - jnp.max(u, axis=1, keepdims=True)
        pe = jnp.exp(u)                                                       # (TB, N, 1)
        denom = jnp.sum(pe, axis=1)                                           # (TB, 1)
        num = jnp.sum(pe * e3, axis=1)                                        # (TB, H)
        # EUP reciprocal + one Newton step (keeps full f32 accuracy) instead of a VPU divide.
        inv = pl.reciprocal(denom, approx=True)
        inv = inv * (2.0 - denom * inv)
        hy = num * inv                                                        # (TB, H)

    # fc1 + relu (fc1 weight lives in the last H lanes of the fused weight tile).
    h1 = jnp.maximum(
        jnp.dot(hy, wbig[:, 3 * H:], preferred_element_type=jnp.float32) + p[12:13, :],
        0.0)                                                                  # (TB, H)
    # fc2 as an NT matmul so the per-block result is a lane-dense (1, TB) row.
    out_row = lax.dot_general(p[13:14, :], h1, (((1,), (1,)), ((), ())),
                              preferred_element_type=jnp.float32) + p[14:15, 0:1]  # (1, TB)
    out_ref[0] = out_row


def _pack_params(params):
    """Fuse/concat the parameter pytree into the 3 arrays the kernel consumes."""
    wencT, benc, wrefT, bref, wqT, bq, v, wfc1T, bfc1, wfc2T, bfc2 = params
    H = wencT.shape[1]
    # Fused (H, 4H) weight tile: 3x project_ref followed by fc1 (exactly 128 lanes at H=32).
    w_big = jnp.concatenate([wrefT[0], wrefT[1], wrefT[2], wfc1T], axis=-1)
    wfc2_row = jnp.transpose(wfc2T)                       # (1, H)
    bfc2_row = jnp.pad(bfc2, ((0, 0), (0, H - 1)))        # (1, H), value in lane 0
    p_small = jnp.concatenate([
        wencT,                                            # rows 0..1   encoder weight
        benc,                                             # row  2      encoder bias
        bref,                                             # rows 3..5   project_ref biases
        bq,                                               # rows 6..8   project_query biases
        v,                                                # rows 9..11  attention v vectors
        bfc1,                                             # row  12     fc1 bias
        wfc2_row,                                         # row  13     fc2 weight row
        bfc2_row,                                         # row  14     fc2 bias (lane 0)
        jnp.zeros((1, H), jnp.float32),                   # row  15     pad to 16 rows
    ], axis=0).astype(jnp.float32)                        # (16, H)
    return w_big.astype(jnp.float32), wqT.astype(jnp.float32), p_small


def _pick_tb(batch, n_nodes):
    """Batch-block size: lane-dense output rows, M = tb*N 8-aligned, bounded VMEM."""
    tb = min(batch, 128)
    # Keep >=2 grid steps when the batch is large enough that both v7x TensorCores can
    # get work without dropping below 64 output lanes per store.
    if batch >= 128 and -(-batch // tb) == 1:
        tb = -(-batch // 2)
    # Cap the flattened row block so the x block / activations stay small in VMEM.
    tb = max(1, min(tb, max(1, 4096 // n_nodes)))
    while (tb * n_nodes) % 8 != 0:
        tb += 1
    return tb


def critic_forward(static_ncw, params, tb=None):
    """static_ncw: (B, 2, N) float32, PyTorch NCW convention. Returns (B, 1)."""
    B, C, N = static_ncw.shape
    w_big, wq, p_small = _pack_params(params)

    if tb is None:
        tb = _pick_tb(B, N)
    while (tb * N) % 8 != 0:          # (8,128) sublane alignment of the (M, C) x block
        tb += 1
    M = tb * N
    G = -(-B // tb)                   # number of grid steps
    Bp = G * tb                       # padded batch

    x = jnp.transpose(static_ncw, (0, 2, 1)).astype(jnp.float32)         # (B, N, 2)
    if Bp != B:
        x = jnp.concatenate([x, jnp.zeros((Bp - B, N, C), jnp.float32)], axis=0)
    x_flat = x.reshape(Bp * N, C)                                         # (Bp*N, 2)

    def full_spec(a):                 # whole (tiny) array as one resident block
        nd = a.ndim
        return pl.BlockSpec(a.shape, lambda g, _nd=nd: (0,) * _nd)

    out = pl.pallas_call(
        _critic_kernel,
        out_shape=jax.ShapeDtypeStruct((G, 1, tb), jnp.float32),
        grid=(G,),
        in_specs=[
            pl.BlockSpec((M, C), lambda g: (g, 0)),       # per-step batch block of x
            full_spec(w_big), full_spec(wq), full_spec(p_small),
        ],
        out_specs=pl.BlockSpec((1, 1, tb), lambda g: (g, 0, 0)),
        compiler_params=pltpu.CompilerParams(dimension_semantics=("parallel",)),
    )(x_flat, w_big, wq, p_small)

    return out.reshape(Bp, 1)[:B]


def init_params(key, H):
    """Deterministic xavier-uniform weights / small-uniform biases (synthetic)."""
    ks = jax.random.split(key, 11)

    def xavier(k, shape, fan_in, fan_out):
        lim = (6.0 / (fan_in + fan_out)) ** 0.5
        return jax.random.uniform(k, shape, jnp.float32, -lim, lim)

    def bias(k, shape, fan_in):
        lim = 1.0 / (fan_in ** 0.5)
        return jax.random.uniform(k, shape, jnp.float32, -lim, lim)

    Wenc = xavier(ks[0], (H, 2), 2, H)          # Conv1d(2, H, 1) weight
    benc = bias(ks[1], (1, H), 2)
    Wref = xavier(ks[2], (3, H, H), H, H)       # 3x project_ref Conv1d(H, H, 1)
    bref = bias(ks[3], (3, H), H)
    Wq = xavier(ks[4], (3, H, H), H, H)         # 3x project_query Linear(H, H)
    bq = bias(ks[5], (3, H), H)
    v = xavier(ks[6], (3, H), 1, H)             # 3x v parameter (1,1,H) squeezed
    Wfc1 = xavier(ks[7], (H, H), H, H)
    bfc1 = bias(ks[8], (1, H), H)
    Wfc2 = xavier(ks[9], (1, H), H, 1)
    bfc2 = bias(ks[10], (1, 1), H)

    # pre-transpose so every in-kernel projection is `x @ W`
    return (jnp.transpose(Wenc), benc,
            jnp.transpose(Wref, (0, 2, 1)), bref,
            jnp.transpose(Wq, (0, 2, 1)), bq, v,
            jnp.transpose(Wfc1), bfc1,
            jnp.transpose(Wfc2), bfc2)


def critic_reference(static_ncw, params):
    """Pure-JAX reference with identical semantics (for the correctness check)."""
    wencT, benc, wrefT, bref, wqT, bq, v, wfc1T, bfc1, wfc2T, bfc2 = params
    x = jnp.transpose(static_ncw, (0, 2, 1))                 # (B, N, 2)
    enc = x @ wencT + benc                                    # (B, N, H)
    B, N, H = enc.shape
    hy = jnp.zeros((B, H), jnp.float32)
    for k in range(3):
        e = enc @ wrefT[k] + bref[k]                          # (B, N, H)
        dq = hy @ wqT[k] + bq[k]                              # (B, H)
        t = jnp.tanh(e + dq[:, None, :])
        u = jnp.sum(t * v[k][None, None, :], axis=-1)         # (B, N)
        p = jax.nn.softmax(u, axis=1)
        hy = jnp.einsum('bn,bnh->bh', p, e)
    h1 = jnp.maximum(hy @ wfc1T + bfc1, 0.0)
    return h1 @ wfc2T + bfc2                                  # (B, 1)


if __name__ == "__main__":
    B, H, N = 16, 32, 16                                      # hidden_size=32, 16 nodes
    key = jax.random.PRNGKey(0)
    k_static, k_params = jax.random.split(key)
    static = jax.random.normal(k_static, (B, 2, N), dtype=jnp.float32)  # PyTorch NCW
    params = init_params(k_params, H)

    out = critic_forward(static, params)                      # TB=16 -> M=256, grid=(1,)
    out = jax.block_until_ready(out)
    assert out.shape == (B, 1)

    ref = critic_reference(static, params)
    if not bool(jnp.allclose(out, ref, atol=1e-4, rtol=1e-4)):
        raise AssertionError(f"mismatch: kernel={out} ref={ref}")
    print("KERNEL_OK")
</pallas_src>

<mosaic_0001>
module attributes {stable_mosaic.version = 11 : i64} {
  func.func @_critic_kernel(%arg0: i32, %arg1: memref<256x2xf32, #tpu.memory_space<vmem>>, %arg2: memref<32x128xf32, #tpu.memory_space<vmem>>, %arg3: memref<3x32x32xf32, #tpu.memory_space<vmem>>, %arg4: memref<16x32xf32, #tpu.memory_space<vmem>>, %arg5: memref<1x1x16xf32, #tpu.memory_space<vmem>>) attributes {dimension_semantics = [#tpu.dimension_semantics<parallel>], iteration_bounds = array<i64: 1>, scalar_prefetch = 0 : i64, scratch_operands = 0 : i64, tpu.core_type = #tpu.core_type<tc>, window_params = [{transform_indices = @transform_0, window_bounds = array<i64: 256, 2>}, {pipeline_mode = #tpu.pipeline_mode<synchronous>, transform_indices = @transform_1, window_bounds = array<i64: 32, 128>}, {pipeline_mode = #tpu.pipeline_mode<synchronous>, transform_indices = @transform_2, window_bounds = array<i64: 3, 32, 32>}, {pipeline_mode = #tpu.pipeline_mode<synchronous>, transform_indices = @transform_3, window_bounds = array<i64: 16, 32>}, {transform_indices = @transform_4, window_bounds = array<i64: 1, 1, 16>}]} {
    %c0 = arith.constant 0 : index
    %c0_0 = arith.constant 0 : index
    %0 = vector.load %arg1[%c0, %c0_0] : memref<256x2xf32, #tpu.memory_space<vmem>>, vector<256x2xf32>
    %c0_1 = arith.constant 0 : index
    %c0_2 = arith.constant 0 : index
    %1 = vector.load %arg4[%c0_1, %c0_2] : memref<16x32xf32, #tpu.memory_space<vmem>>, vector<16x32xf32>
    %c0_3 = arith.constant 0 : index
    %c0_4 = arith.constant 0 : index
    %2 = vector.load %arg2[%c0_3, %c0_4] : memref<32x128xf32, #tpu.memory_space<vmem>>, vector<32x128xf32>
    %3 = vector.extract_strided_slice %0 {offsets = [0, 0], sizes = [256, 1], strides = [1, 1]} : vector<256x2xf32> to vector<256x1xf32>
    %4 = vector.extract_strided_slice %1 {offsets = [0, 0], sizes = [1, 32], strides = [1, 1]} : vector<16x32xf32> to vector<1x32xf32>
    %5 = vector.broadcast %3 : vector<256x1xf32> to vector<256x32xf32>
    %6 = vector.broadcast %4 : vector<1x32xf32> to vector<256x32xf32>
    %7 = arith.mulf %5, %6 : vector<256x32xf32>
    %8 = vector.extract_strided_slice %0 {offsets = [0, 1], sizes = [256, 1], strides = [1, 1]} : vector<256x2xf32> to vector<256x1xf32>
    %9 = vector.extract_strided_slice %1 {offsets = [1, 0], sizes = [1, 32], strides = [1, 1]} : vector<16x32xf32> to vector<1x32xf32>
    %10 = vector.broadcast %8 : vector<256x1xf32> to vector<256x32xf32>
    %11 = vector.broadcast %9 : vector<1x32xf32> to vector<256x32xf32>
    %12 = arith.mulf %10, %11 : vector<256x32xf32>
    %13 = arith.addf %7, %12 : vector<256x32xf32>
    %14 = vector.extract_strided_slice %1 {offsets = [2, 0], sizes = [1, 32], strides = [1, 1]} : vector<16x32xf32> to vector<1x32xf32>
    %15 = vector.broadcast %14 : vector<1x32xf32> to vector<256x32xf32>
    %16 = arith.addf %13, %15 : vector<256x32xf32>
    %17 = vector.extract_strided_slice %2 {offsets = [0, 0], sizes = [32, 96], strides = [1, 1]} : vector<32x128xf32> to vector<32x96xf32>
    %cst = arith.constant dense<0.000000e+00> : vector<256x96xf32>
    %18 = tpu.matmul %16, %17, %cst {dimension_numbers = #tpu.dot_dimension_numbers<[1], [0], [0], [1], [0, 0, 1, 1], [], []>} : vector<256x32xf32>, vector<32x96xf32>, vector<256x96xf32> -> vector<256x96xf32>
    %cst_5 = arith.constant 0.000000e+00 : f32
    %19 = vector.broadcast %cst_5 : f32 to vector<16x32xf32>
    %20 = vector.extract_strided_slice %18 {offsets = [0, 0], sizes = [256, 32], strides = [1, 1]} : vector<256x96xf32> to vector<256x32xf32>
    %21 = vector.extract_strided_slice %1 {offsets = [3, 0], sizes = [1, 32], strides = [1, 1]} : vector<16x32xf32> to vector<1x32xf32>
    %22 = vector.broadcast %21 : vector<1x32xf32> to vector<256x32xf32>
    %23 = arith.addf %20, %22 : vector<256x32xf32>
    %24 = vector.shape_cast %23 : vector<256x32xf32> to vector<16x16x32xf32>
    %c0_6 = arith.constant 0 : index
    %c0_7 = arith.constant 0 : index
    %c0_8 = arith.constant 0 : index
    %25 = vector.load %arg3[%c0_6, %c0_7, %c0_8] : memref<3x32x32xf32, #tpu.memory_space<vmem>>, vector<1x32x32xf32>
    %26 = vector.shape_cast %25 : vector<1x32x32xf32> to vector<32x32xf32>
    %cst_9 = arith.constant dense<0.000000e+00> : vector<16x32xf32>
    %27 = tpu.matmul %19, %26, %cst_9 {dimension_numbers = #tpu.dot_dimension_numbers<[1], [0], [0], [1], [0, 0, 1, 1], [], []>} : vector<16x32xf32>, vector<32x32xf32>, vector<16x32xf32> -> vector<16x32xf32>
    %28 = vector.extract_strided_slice %1 {offsets = [6, 0], sizes = [1, 32], strides = [1, 1]} : vector<16x32xf32> to vector<1x32xf32>
    %29 = vector.broadcast %28 : vector<1x32xf32> to vector<16x32xf32>
    %30 = arith.addf %27, %29 : vector<16x32xf32>
    %31 = vector.shape_cast %30 : vector<16x32xf32> to vector<16x1x32xf32>
    %32 = vector.broadcast %31 : vector<16x1x32xf32> to vector<16x16x32xf32>
    %33 = arith.addf %24, %32 : vector<16x16x32xf32>
    %34 = math.tanh %33 : vector<16x16x32xf32>
    %35 = vector.extract_strided_slice %1 {offsets = [9, 0], sizes = [1, 32], strides = [1, 1]} : vector<16x32xf32> to vector<1x32xf32>
    %36 = vector.shape_cast %35 : vector<1x32xf32> to vector<1x1x32xf32>
    %37 = vector.broadcast %36 : vector<1x1x32xf32> to vector<16x16x32xf32>
    %38 = arith.mulf %34, %37 : vector<16x16x32xf32>
    %cst_10 = arith.constant dense<0.000000e+00> : vector<16x16xf32>
    %39 = vector.multi_reduction <add>, %38, %cst_10 [2] : vector<16x16x32xf32> to vector<16x16xf32>
    %40 = vector.shape_cast %39 : vector<16x16xf32> to vector<16x16x1xf32>
    %cst_11 = arith.constant dense<0xFF800000> : vector<16x1xf32>
    %41 = vector.multi_reduction <maximumf>, %40, %cst_11 [1] : vector<16x16x1xf32> to vector<16x1xf32>
    %42 = vector.shape_cast %41 : vector<16x1xf32> to vector<16x1x1xf32>
    %43 = vector.broadcast %42 : vector<16x1x1xf32> to vector<16x16x1xf32>
    %44 = arith.subf %40, %43 : vector<16x16x1xf32>
    %45 = math.exp %44 : vector<16x16x1xf32>
    %cst_12 = arith.constant dense<0.000000e+00> : vector<16x1xf32>
    %46 = vector.multi_reduction <add>, %45, %cst_12 [1] : vector<16x16x1xf32> to vector<16x1xf32>
    %47 = vector.broadcast %45 : vector<16x16x1xf32> to vector<16x16x32xf32>
    %48 = arith.mulf %47, %24 : vector<16x16x32xf32>
    %cst_13 = arith.constant dense<0.000000e+00> : vector<16x32xf32>
    %49 = vector.multi_reduction <add>, %48, %cst_13 [1] : vector<16x16x32xf32> to vector<16x32xf32>
    %50 = tpu.reciprocal %46 {approx = true} : vector<16x1xf32> -> vector<16x1xf32>
    %51 = arith.mulf %46, %50 : vector<16x1xf32>
    %cst_14 = arith.constant 2.000000e+00 : f32
    %52 = vector.broadcast %cst_14 : f32 to vector<16x1xf32>
    %53 = arith.subf %52, %51 : vector<16x1xf32>
    %54 = arith.mulf %50, %53 : vector<16x1xf32>
    %55 = vector.broadcast %54 : vector<16x1xf32> to vector<16x32xf32>
    %56 = arith.mulf %49, %55 : vector<16x32xf32>
    %57 = vector.extract_strided_slice %18 {offsets = [0, 32], sizes = [256, 32], strides = [1, 1]} : vector<256x96xf32> to vector<256x32xf32>
    %58 = vector.extract_strided_slice %1 {offsets = [4, 0], sizes = [1, 32], strides = [1, 1]} : vector<16x32xf32> to vector<1x32xf32>
    %59 = vector.broadcast %58 : vector<1x32xf32> to vector<256x32xf32>
    %60 = arith.addf %57, %59 : vector<256x32xf32>
    %61 = vector.shape_cast %60 : vector<256x32xf32> to vector<16x16x32xf32>
    %c1 = arith.constant 1 : index
    %c0_15 = arith.constant 0 : index
    %c0_16 = arith.constant 0 : index
    %62 = vector.load %arg3[%c1, %c0_15, %c0_16] : memref<3x32x32xf32, #tpu.memory_space<vmem>>, vector<1x32x32xf32>
    %63 = vector.shape_cast %62 : vector<1x32x32xf32> to vector<32x32xf32>
    %cst_17 = arith.constant dense<0.000000e+00> : vector<16x32xf32>
    %64 = tpu.matmul %56, %63, %cst_17 {dimension_numbers = #tpu.dot_dimension_numbers<[1], [0], [0], [1], [0, 0, 1, 1], [], []>} : vector<16x32xf32>, vector<32x32xf32>, vector<16x32xf32> -> vector<16x32xf32>
    %65 = vector.extract_strided_slice %1 {offsets = [7, 0], sizes = [1, 32], strides = [1, 1]} : vector<16x32xf32> to vector<1x32xf32>
    %66 = vector.broadcast %65 : vector<1x32xf32> to vector<16x32xf32>
    %67 = arith.addf %64, %66 : vector<16x32xf32>
    %68 = vector.shape_cast %67 : vector<16x32xf32> to vector<16x1x32xf32>
    %69 = vector.broadcast %68 : vector<16x1x32xf32> to vector<16x16x32xf32>
    %70 = arith.addf %61, %69 : vector<16x16x32xf32>
    %71 = math.tanh %70 : vector<16x16x32xf32>
    %72 = vector.extract_strided_slice %1 {offsets = [10, 0], sizes = [1, 32], strides = [1, 1]} : vector<16x32xf32> to vector<1x32xf32>
    %73 = vector.shape_cast %72 : vector<1x32xf32> to vector<1x1x32xf32>
    %74 = vector.broadcast %73 : vector<1x1x32xf32> to vector<16x16x32xf32>
    %75 = arith.mulf %71, %74 : vector<16x16x32xf32>
    %cst_18 = arith.constant dense<0.000000e+00> : vector<16x16xf32>
    %76 = vector.multi_reduction <add>, %75, %cst_18 [2] : vector<16x16x32xf32> to vector<16x16xf32>
    %77 = vector.shape_cast %76 : vector<16x16xf32> to vector<16x16x1xf32>
    %cst_19 = arith.constant dense<0xFF800000> : vector<16x1xf32>
    %78 = vector.multi_reduction <maximumf>, %77, %cst_19 [1] : vector<16x16x1xf32> to vector<16x1xf32>
    %79 = vector.shape_cast %78 : vector<16x1xf32> to vector<16x1x1xf32>
    %80 = vector.broadcast %79 : vector<16x1x1xf32> to vector<16x16x1xf32>
    %81 = arith.subf %77, %80 : vector<16x16x1xf32>
    %82 = math.exp %81 : vector<16x16x1xf32>
    %cst_20 = arith.constant dense<0.000000e+00> : vector<16x1xf32>
    %83 = vector.multi_reduction <add>, %82, %cst_20 [1] : vector<16x16x1xf32> to vector<16x1xf32>
    %84 = vector.broadcast %82 : vector<16x16x1xf32> to vector<16x16x32xf32>
    %85 = arith.mulf %84, %61 : vector<16x16x32xf32>
    %cst_21 = arith.constant dense<0.000000e+00> : vector<16x32xf32>
    %86 = vector.multi_reduction <add>, %85, %cst_21 [1] : vector<16x16x32xf32> to vector<16x32xf32>
    %87 = tpu.reciprocal %83 {approx = true} : vector<16x1xf32> -> vector<16x1xf32>
    %88 = arith.mulf %83, %87 : vector<16x1xf32>
    %cst_22 = arith.constant 2.000000e+00 : f32
    %89 = vector.broadcast %cst_22 : f32 to vector<16x1xf32>
    %90 = arith.subf %89, %88 : vector<16x1xf32>
    %91 = arith.mulf %87, %90 : vector<16x1xf32>
    %92 = vector.broadcast %91 : vector<16x1xf32> to vector<16x32xf32>
    %93 = arith.mulf %86, %92 : vector<16x32xf32>
    %94 = vector.extract_strided_slice %18 {offsets = [0, 64], sizes = [256, 32], strides = [1, 1]} : vector<256x96xf32> to vector<256x32xf32>
    %95 = vector.extract_strided_slice %1 {offsets = [5, 0], sizes = [1, 32], strides = [1, 1]} : vector<16x32xf32> to vector<1x32xf32>
    %96 = vector.broadcast %95 : vector<1x32xf32> to vector<256x32xf32>
    %97 = arith.addf %94, %96 : vector<256x32xf32>
    %98 = vector.shape_cast %97 : vector<256x32xf32> to vector<16x16x32xf32>
    %c2 = arith.constant 2 : index
    %c0_23 = arith.constant 0 : index
    %c0_24 = arith.constant 0 : index
    %99 = vector.load %arg3[%c2, %c0_23, %c0_24] : memref<3x32x32xf32, #tpu.memory_space<vmem>>, vector<1x32x32xf32>
    %100 = vector.shape_cast %99 : vector<1x32x32xf32> to vector<32x32xf32>
    %cst_25 = arith.constant dense<0.000000e+00> : vector<16x32xf32>
    %101 = tpu.matmul %93, %100, %cst_25 {dimension_numbers = #tpu.dot_dimension_numbers<[1], [0], [0], [1], [0, 0, 1, 1], [], []>} : vector<16x32xf32>, vector<32x32xf32>, vector<16x32xf32> -> vector<16x32xf32>
    %102 = vector.extract_strided_slice %1 {offsets = [8, 0], sizes = [1, 32], strides = [1, 1]} : vector<16x32xf32> to vector<1x32xf32>
    %103 = vector.broadcast %102 : vector<1x32xf32> to vector<16x32xf32>
    %104 = arith.addf %101, %103 : vector<16x32xf32>
    %105 = vector.shape_cast %104 : vector<16x32xf32> to vector<16x1x32xf32>
    %106 = vector.broadcast %105 : vector<16x1x32xf32> to vector<16x16x32xf32>
    %107 = arith.addf %98, %106 : vector<16x16x32xf32>
    %108 = math.tanh %107 : vector<16x16x32xf32>
    %109 = vector.extract_strided_slice %1 {offsets = [11, 0], sizes = [1, 32], strides = [1, 1]} : vector<16x32xf32> to vector<1x32xf32>
    %110 = vector.shape_cast %109 : vector<1x32xf32> to vector<1x1x32xf32>
    %111 = vector.broadcast %110 : vector<1x1x32xf32> to vector<16x16x32xf32>
    %112 = arith.mulf %108, %111 : vector<16x16x32xf32>
    %cst_26 = arith.constant dense<0.000000e+00> : vector<16x16xf32>
    %113 = vector.multi_reduction <add>, %112, %cst_26 [2] : vector<16x16x32xf32> to vector<16x16xf32>
    %114 = vector.shape_cast %113 : vector<16x16xf32> to vector<16x16x1xf32>
    %cst_27 = arith.constant dense<0xFF800000> : vector<16x1xf32>
    %115 = vector.multi_reduction <maximumf>, %114, %cst_27 [1] : vector<16x16x1xf32> to vector<16x1xf32>
    %116 = vector.shape_cast %115 : vector<16x1xf32> to vector<16x1x1xf32>
    %117 = vector.broadcast %116 : vector<16x1x1xf32> to vector<16x16x1xf32>
    %118 = arith.subf %114, %117 : vector<16x16x1xf32>
    %119 = math.exp %118 : vector<16x16x1xf32>
    %cst_28 = arith.constant dense<0.000000e+00> : vector<16x1xf32>
    %120 = vector.multi_reduction <add>, %119, %cst_28 [1] : vector<16x16x1xf32> to vector<16x1xf32>
    %121 = vector.broadcast %119 : vector<16x16x1xf32> to vector<16x16x32xf32>
    %122 = arith.mulf %121, %98 : vector<16x16x32xf32>
    %cst_29 = arith.constant dense<0.000000e+00> : vector<16x32xf32>
    %123 = vector.multi_reduction <add>, %122, %cst_29 [1] : vector<16x16x32xf32> to vector<16x32xf32>
    %124 = tpu.reciprocal %120 {approx = true} : vector<16x1xf32> -> vector<16x1xf32>
    %125 = arith.mulf %120, %124 : vector<16x1xf32>
    %cst_30 = arith.constant 2.000000e+00 : f32
    %126 = vector.broadcast %cst_30 : f32 to vector<16x1xf32>
    %127 = arith.subf %126, %125 : vector<16x1xf32>
    %128 = arith.mulf %124, %127 : vector<16x1xf32>
    %129 = vector.broadcast %128 : vector<16x1xf32> to vector<16x32xf32>
    %130 = arith.mulf %123, %129 : vector<16x32xf32>
    %131 = vector.extract_strided_slice %2 {offsets = [0, 96], sizes = [32, 32], strides = [1, 1]} : vector<32x128xf32> to vector<32x32xf32>
    %cst_31 = arith.constant dense<0.000000e+00> : vector<16x32xf32>
    %132 = tpu.matmul %130, %131, %cst_31 {dimension_numbers = #tpu.dot_dimension_numbers<[1], [0], [0], [1], [0, 0, 1, 1], [], []>} : vector<16x32xf32>, vector<32x32xf32>, vector<16x32xf32> -> vector<16x32xf32>
    %133 = vector.extract_strided_slice %1 {offsets = [12, 0], sizes = [1, 32], strides = [1, 1]} : vector<16x32xf32> to vector<1x32xf32>
    %134 = vector.broadcast %133 : vector<1x32xf32> to vector<16x32xf32>
    %135 = arith.addf %132, %134 : vector<16x32xf32>
    %cst_32 = arith.constant 0.000000e+00 : f32
    %136 = vector.broadcast %cst_32 : f32 to vector<16x32xf32>
    %137 = arith.maximumf %135, %136 : vector<16x32xf32>
    %138 = vector.extract_strided_slice %1 {offsets = [13, 0], sizes = [1, 32], strides = [1, 1]} : vector<16x32xf32> to vector<1x32xf32>
    %cst_33 = arith.constant dense<0.000000e+00> : vector<1x16xf32>
    %139 = tpu.matmul %138, %137, %cst_33 {dimension_numbers = #tpu.dot_dimension_numbers<[1], [1], [0], [0], [0, 0, 1, 0], [], []>} : vector<1x32xf32>, vector<16x32xf32>, vector<1x16xf32> -> vector<1x16xf32>
    %140 = vector.extract_strided_slice %1 {offsets = [14, 0], sizes = [1, 1], strides = [1, 1]} : vector<16x32xf32> to vector<1x1xf32>
    %141 = vector.broadcast %140 : vector<1x1xf32> to vector<1x16xf32>
    %142 = arith.addf %139, %141 : vector<1x16xf32>
    %c0_34 = arith.constant 0 : index
    %c0_35 = arith.constant 0 : index
    %c0_36 = arith.constant 0 : index
    %143 = vector.load %arg5[%c0_34, %c0_35, %c0_36] : memref<1x1x16xf32, #tpu.memory_space<vmem>>, vector<1x1x16xf32>
    %144 = vector.shape_cast %143 : vector<1x1x16xf32> to vector<1x16xf32>
    %145 = vector.shape_cast %142 : vector<1x16xf32> to vector<1x1x16xf32>
    tpu.vector_store %arg5[%c0_34, %c0_35, %c0_36], %145 {strides = array<i32>} : memref<1x1x16xf32, #tpu.memory_space<vmem>>, vector<1x1x16xf32>,
    return
  }
  func.func @transform_0(%arg0: i32) -> (i32, i32) {
    %c0_i32 = arith.constant 0 : i32
    %c0_i32_0 = arith.constant 0 : i32
    return %arg0, %c0_i32 : i32, i32
  }
  func.func @transform_1(%arg0: i32) -> (i32, i32) {
    %c0_i32 = arith.constant 0 : i32
    %c0_i32_0 = arith.constant 0 : i32
    %c0_i32_1 = arith.constant 0 : i32
    return %c0_i32, %c0_i32_0 : i32, i32
  }
  func.func @transform_2(%arg0: i32) -> (i32, i32, i32) {
    %c0_i32 = arith.constant 0 : i32
    %c0_i32_0 = arith.constant 0 : i32
    %c0_i32_1 = arith.constant 0 : i32
    %c0_i32_2 = arith.constant 0 : i32
    return %c0_i32, %c0_i32_0, %c0_i32_1 : i32, i32, i32
  }
  func.func @transform_3(%arg0: i32) -> (i32, i32) {
    %c0_i32 = arith.constant 0 : i32
    %c0_i32_0 = arith.constant 0 : i32
    %c0_i32_1 = arith.constant 0 : i32
    return %c0_i32, %c0_i32_0 : i32, i32
  }
  func.func @transform_4(%arg0: i32) -> (i32, i32, i32) {
    %c0_i32 = arith.constant 0 : i32
    %c0_i32_0 = arith.constant 0 : i32
    %c0_i32_1 = arith.constant 0 : i32
    return %arg0, %c0_i32, %c0_i32_0 : i32, i32, i32
  }
}

</mosaic_0001>

<bundles_post_ra>
// kernel: tpu_custom_call.1
= control target key start
LH: loop header
LB: loop body
LE: loop exit
PB: predicated region body
PF: predicated region fallthrough
CT: control target
= control target key end

     0   :  { %v5443_v2 = vmov 0   ;;  %v5444_v4 = vmov 1   ;;  %s8035_s0 = inlined_call_operand.vmem [shape: f32[256,2], index: 0, kind: input, shape index: {}]   ;;  %s8036_s1 = inlined_call_operand.vmem [shape: f32[32,128], index: 1, kind: input, shape index: {}]   ;;  %s8037_s2 = inlined_call_operand.vmem [shape: f32[3,32,32], index: 2, kind: input, shape index: {}]   ;;  %s8038_s3 = inlined_call_operand.vmem [shape: f32[16,32], index: 3, kind: input, shape index: {}]   ;;  %s8039_s4 = inlined_call_operand.hbm [shape: f32[1,1,16], index: 4, kind: output, shape index: {}]  }
   0x1   :  { %v19_v0 = vld [vmem:[%s8035_s0 + $0x8] sm:$0xff]  ;;  %v18_v1 = vld [vmem:[%s8035_s0] sm:$0xff]  ;;  %4914 = vset.pattern.permute.xlu1 %v5443_v2  ;;  %4913 = vset.pattern.permute.xlu0 %v5443_v2  ;;  %v5488_v3 = vld [vmem:[%s8035_s0 + $0xd0] sm:$0xff] }
   0x2   :  { %63 = vperm.xlu1 %4914, %v19_v0   ;;  %58 = vperm.xlu0 %4913, %v18_v1   ;;  %v5495_v5 = vld [vmem:[%s8035_s0 + $0x68] sm:$0xff]  ;;  %v20_v6 = vld [vmem:[%s8035_s0 + $0x10] sm:$0xff]  ;;  %v5505_v7 = vld [vmem:[%s8035_s0 + $0xe0] sm:$0xff] }
   0x6   :  { %4915 = vset.pattern.permute.xlu1 %v5444_v4  ;;  %188 = vperm.xlu0 %4913, %v5488_v3  }
   0x7   :  { %257 = vperm.xlu1 %4915, %v19_v0  }
   0xa   :  { %123 = vperm.xlu0 %4913, %v5495_v5  }
   0xb   :  { %4916 = vset.pattern.permute.xlu1 %v5443_v2 }
   0xc   :  { %9 = vsyncpa [#allocation3], 0  ;;  %68 = vperm.xlu1 %4916, %v20_v6   ;;  %v21_v8 = vld [vmem:[%s8035_s0 + $0x18] sm:$0xff]  ;;  %v22_v10 = vld [vmem:[%s8035_s0 + $0x20] sm:$0xff]  ;;  %v216_v46 = vlaneseq  ;;  %vm484_vm0 = vcmask 261120   ;;  %s5447_s22 = smov 32  }
   0xd   :  { %v5514_v9 = vld [vmem:[%s8035_s0 + $0x78] sm:$0xff]  ;;  %v5523_v11 = vld [vmem:[%s8035_s0 + $0xf0] sm:$0xff]  ;;  %v23_v12 = vld [vmem:[%s8035_s0 + $0x28] sm:$0xff]  ;;  %vm1945_vm1 = vcmask 1041409   ;;  %vm1947_vm2 = vcmask 1042434   ;;  %vm1949_vm3 = vcmask 1043459  }
   0xe   :  { %198 = vperm.xlu0 %4913, %v5505_v7   ;;  %v5532_v13 = vld [vmem:[%s8035_s0 + $0x88] sm:$0xff]  ;;  %v55_v14 = vld [vmem:[%s8036_s1 + $0x18] sm:$0xff]  ;;  %v24_v15 = vld [vmem:[%s8035_s0 + $0x30] sm:$0xff]  ;;  %v5641_v49 = vshrl.u32 %v216_v46, 7  ;;  %vm1951_vm4 = vcmask 1044484   ;;  %vm1953_vm5 = vcmask 1045509  }
   0xf   :  { %4789 = vmatprep.subr.mxu0 %v55_v14  ;;  %4896 = vmatprep.subr.mxu1 %v55_v14  ;;  %v54_v16 = vld [vmem:[%s8036_s1 + $0x10] sm:$0xff]  ;;  %v53_v17 = vld [vmem:[%s8036_s1 + $0x8] sm:$0xff]  ;;  %v25_v18 = vld [vmem:[%s8035_s0 + $0x38] sm:$0xff]  ;;  %vm1955_vm6 = vcmask 1046534   ;;  %vm1957_vm7 = vcmask 1047559   ;;  %s5448_s9 = smov 96  }
  0x10   :  { %73 = vperm.xlu1 %4916, %v21_v8   ;;  %4790 = vmatpush3.msra.mxu0 %v55_v14  ;;  %v52_v19 = vld [vmem:[%s8036_s1] sm:$0xff]  ;;  %v27_v21 = vld [vmem:[%s8035_s0 + $0x48] sm:$0xff]  ;;  %v28_v22 = vld [vmem:[%s8035_s0 + $0x50] sm:$0xff]  ;;  %8154 = vst [vmem:[#allocation5_spill] sm:$0xff] %v5641_v49  ;;  %v382_v51 = vsub.s32 1, %v5641_v49  ;;  %v5647_v53 = vsub.s32 0, %v5641_v49 }
  0x11   :  { %4900 = vmatpush3.msra.mxu1 %v55_v14  ;;  %4791 = vmatprep.subr.mxu0 %v54_v16  ;;  %v26_v20 = vld [vmem:[%s8035_s0 + $0x40] sm:$0xff]  ;;  %v29_v23 = vld [vmem:[%s8035_s0 + $0x58] sm:$0xff]  ;;  %v32_v26 = vld [vmem:[%s8035_s0 + $0x70] sm:$0xff]  ;;  %v8043_v60 = vsub.s32 2, %v5641_v49  ;;  %vm2937_vm8 = vcmask 523520   ;;  %s5449_s18 = smov 64  }
  0x12   :  { %133 = vperm.xlu0 %4913, %v5514_v9   ;;  %4792 = vmatpush3.msra.mxu0 %v54_v16  ;;  %v30_v24 = vld [vmem:[%s8035_s0 + $0x60] sm:$0xff]  ;;  %v45_v25 = vld [vmem:[%s8035_s0 + $0xd8] sm:$0xff]  ;;  %v36_v27 = vld [vmem:[%s8035_s0 + $0x90] sm:$0xff]  ;;  %8155 = vst [vmem:[#allocation6_spill] sm:$0xff] %v5647_v53  ;;  %vm4216_vm9 = vcmask 785920   ;;  %vm5450_vm10 = vmmov 0  }
  0x13   :  { %4897 = vmatprep.subr.mxu1 %v54_v16  ;;  %4793 = vmatprep.subr.mxu0 %v53_v17  ;;  %v47_v28 = vld [vmem:[%s8035_s0 + $0xe8] sm:$0xff]  ;;  %v37_v29 = vld [vmem:[%s8035_s0 + $0x98] sm:$0xff]  ;;  %v38_v30 = vld [vmem:[%s8035_s0 + $0xa0] sm:$0xff]  ;;  %vm4661_vm11 = vcmask 122880  }
  0x14   :  { %78 = vperm.xlu1 %4916, %v22_v10   ;;  %4794 = vmatpush3.msra.mxu0 %v53_v17  ;;  %v39_v31 = vld [vmem:[%s8035_s0 + $0xa8] sm:$0xff]  ;;  %v34_v32 = vld [vmem:[%s8035_s0 + $0x80] sm:$0xff]  ;;  %v40_v33 = vld [vmem:[%s8035_s0 + $0xb0] sm:$0xff] }
  0x15   :  { %4795 = vmatprep.subr.mxu0 %v52_v19  ;;  %4901 = vmatpush3.msra.mxu1 %v54_v16  ;;  %v41_v34 = vld [vmem:[%s8035_s0 + $0xb8] sm:$0xff]  ;;  %v42_v35 = vld [vmem:[%s8035_s0 + $0xc0] sm:$0xff]  ;;  %v43_v38 = vld [vmem:[%s8035_s0 + $0xc8] sm:$0xff] }
  0x16   :  { %208 = vperm.xlu0 %4913, %v5523_v11   ;;  %4796 = vmatpush3.msra.mxu0 %v52_v19  ;;  %v49_v36 = vld [vmem:[%s8035_s0 + $0xf8] sm:$0xff]  ;;  %v5652_v54 = vld [vmem:[%s8038_s3] sm:$0xff] }
  0x17   :  { %4898 = vmatprep.subr.mxu1 %v53_v17  ;;  %v5623_v37 = vld [vmem:[%s8037_s2 + $0x18] sm:$0xff]  ;;  %v5657_v56 = vrot.slane %v5652_v54, %v382_v51  ;;  %v5663_v58 = vrot.slane %v5652_v54, %v5647_v53 }
  0x18   :  { %83 = vperm.xlu1 %4916, %v23_v12   ;;  %4902 = vmatpush3.msra.mxu1 %v53_v17 }
  0x19   :  { %4899 = vmatprep.subr.mxu1 %v52_v19 }
  0x1a   :  { %143 = vperm.xlu0 %4913, %v5532_v13   ;;  %4903 = vmatpush3.msra.mxu1 %v52_v19 }
  0x1b   :  { %4845 = vmatprep.subr.mxu1 %v5623_v37 }
  0x1c   :  { %88 = vperm.xlu1 %4916, %v24_v15  }
  0x1e   :  { %4926 = vset.pattern.permute.xlu0 %v5444_v4 }
  0x1f   :  { %253 = vperm.xlu0 %4926, %v18_v1  }
  0x20   :  { %93 = vperm.xlu1 %4916, %v25_v18  }
  0x23   :  { %261 = vperm.xlu0 %4926, %v20_v6  }
  0x24   :  { %98 = vperm.xlu1 %4916, %v26_v20  }
  0x27   :  { %265 = vperm.xlu0 %4926, %v21_v8  }
  0x28   :  { %103 = vperm.xlu1 %4916, %v27_v21  }
  0x2b   :  { %269 = vperm.xlu0 %4926, %v22_v10  }
  0x2c   :  { %108 = vperm.xlu1 %4916, %v28_v22  }
  0x2f   :  { %273 = vperm.xlu0 %4926, %v23_v12  }
  0x30   :  { %113 = vperm.xlu1 %4916, %v29_v23  }
  0x33   :  { %277 = vperm.xlu0 %4926, %v24_v15  }
  0x34   :  { %118 = vperm.xlu1 %4916, %v30_v24  }
  0x37   :  { %281 = vperm.xlu0 %4926, %v25_v18  }
  0x38   :  { %4917 = vset.pattern.permute.xlu1 %v5444_v4 }
  0x39   :  { %301 = vperm.xlu1 %4917, %v30_v24  }
  0x3b   :  { %285 = vperm.xlu0 %4926, %v26_v20  }
  0x3d   :  { %357 = vperm.xlu1 %4917, %v5488_v3   ;;  %v5673_v3 = vrot.slane %v5652_v54, %v8043_v60 }
  0x3f   :  { %289 = vperm.xlu0 %4926, %v27_v21  }
  0x41   :  { %4918 = vset.pattern.permute.xlu1 %v5443_v2 }
  0x42   :  { %193 = vperm.xlu1 %4918, %v45_v25  }
  0x43   :  { %293 = vperm.xlu0 %4926, %v28_v22  }
  0x46   :  { %4919 = vset.pattern.permute.xlu1 %v5444_v4 }
  0x47   :  { %361 = vperm.xlu1 %4919, %v45_v25   ;;  %297 = vperm.xlu0 %4926, %v29_v23  }
  0x4b   :  { %4920 = vset.pattern.permute.xlu1 %v5443_v2  ;;  %305 = vperm.xlu0 %4926, %v5495_v5  }
  0x4c   :  { %128 = vperm.xlu1 %4920, %v32_v26  }
  0x4f   :  { %313 = vperm.xlu0 %4926, %v5514_v9  }
  0x50   :  { %4921 = vset.pattern.permute.xlu1 %v5444_v4 }
  0x51   :  { %309 = vperm.xlu1 %4921, %v32_v26  }
  0x53   :  { %321 = vperm.xlu0 %4926, %v5532_v13  }
  0x55   :  { %365 = vperm.xlu1 %4921, %v5505_v7  }
  0x57   :  { %325 = vperm.xlu0 %4926, %v36_v27  }
  0x59   :  { %4922 = vset.pattern.permute.xlu1 %v5443_v2 }
  0x5a   :  { %203 = vperm.xlu1 %4922, %v47_v28  }
  0x5b   :  { %329 = vperm.xlu0 %4926, %v37_v29  }
  0x5e   :  { %4923 = vset.pattern.permute.xlu1 %v5444_v4 }
  0x5f   :  { %369 = vperm.xlu1 %4923, %v47_v28   ;;  %333 = vperm.xlu0 %4926, %v38_v30  }
  0x63   :  { %4924 = vset.pattern.permute.xlu1 %v5443_v2  ;;  %337 = vperm.xlu0 %4926, %v39_v31  }
  0x64   :  { %138 = vperm.xlu1 %4924, %v34_v32  }
  0x67   :  { %341 = vperm.xlu0 %4926, %v40_v33  }
  0x68   :  { %4925 = vset.pattern.permute.xlu1 %v5444_v4 }
  0x69   :  { %317 = vperm.xlu1 %4925, %v34_v32  }
  0x6b   :  { %345 = vperm.xlu0 %4926, %v41_v34  }
  0x6d   :  { %373 = vperm.xlu1 %4925, %v5523_v11  }
  0x6f   :  { %349 = vperm.xlu0 %4926, %v42_v35  }
  0x71   :  { %4927 = vset.pattern.permute.xlu1 %v5443_v2 }
  0x72   :  { %213 = vperm.xlu1 %4927, %v49_v36  }
  0x73   :  { %353 = vperm.xlu0 %4926, %v43_v38  }
  0x76   :  { %4928 = vset.pattern.permute.xlu1 %v5444_v4 }
  0x77   :  { %377 = vperm.xlu1 %4928, %v49_v36   ;;  %4930 = vset.pattern.permute.xlu0 %v5443_v2 }
  0x7b   :  { %4929 = vset.pattern.permute.xlu1 %v5443_v2 }
  0x7c   :  { %148 = vperm.xlu1 %4929, %v36_v27  }
  0x7d   :  { %v64_v39 = vpop.permute.xlu1 %63  ;;  %v59_v40 = vpop.permute.xlu0 %58 }
  0x7e   :  { %v220_v62 = vmul.f32 %v5663_v58, %v59_v40  ;;  %v221_v63 = vmul.f32 %v5663_v58, %v64_v39 }
  0x80   :  { %153 = vperm.xlu1 %4929, %v37_v29  }
  0x81   :  { %v5633_v41 = vpop.permute.xlu0 %188 }
  0x82   :  { %v258_v42 = vpop.permute.xlu1 %257 }
  0x83   :  { %v385_v61 = vmul.f32 %v5657_v56, %v258_v42 }
  0x84   :  { %158 = vperm.xlu1 %4929, %v38_v30  }
  0x85   :  { %v5635_v43 = vpop.permute.xlu0 %123  ;;  %v417_v4 = vadd.f32 %v385_v61, %v221_v63 }
  0x87   :  { %v69_v44 = vpop.permute.xlu1 %68  ;;  %v453_v11 = vadd.f32 %v5673_v3, %v417_v4 }
  0x88   :  { %163 = vperm.xlu1 %4929, %v39_v31   ;;  %v222_v7 = vmul.f32 %v5663_v58, %v69_v44 }
  0x89   :  { %v5637_v45 = vpop.permute.xlu0 %198 }
  0x8b   :  { %v74_v47 = vpop.permute.xlu1 %73 }
  0x8c   :  { %168 = vperm.xlu1 %4929, %v40_v33   ;;  %v223_v14 = vmul.f32 %v5663_v58, %v74_v47 }
  0x8d   :  { %v5639_v48 = vpop.permute.xlu0 %133 }
  0x8f   :  { %v79_v50 = vpop.permute.xlu1 %78 }
  0x90   :  { %173 = vperm.xlu1 %4929, %v41_v34   ;;  %v224_v20 = vmul.f32 %v5663_v58, %v79_v50  ;;  %v246_v50 = vmul.f32 %v5663_v58, %v5633_v41 }
  0x91   :  { %v5644_v52 = vpop.permute.xlu0 %208 }
  0x93   :  { %v84_v55 = vpop.permute.xlu1 %83 }
  0x94   :  { %178 = vperm.xlu1 %4929, %v42_v35   ;;  %v225_v26 = vmul.f32 %v5663_v58, %v84_v55 }
  0x95   :  { %v5659_v57 = vpop.permute.xlu0 %143 }
  0x97   :  { %v89_v59 = vpop.permute.xlu1 %88 }
  0x98   :  { %183 = vperm.xlu1 %4929, %v43_v38   ;;  %v226_v32 = vmul.f32 %v5663_v58, %v89_v59 }
  0x9a   :  { %v254_v0 = vpop.permute.xlu0 %253 }
  0x9b   :  { %v384_v1 = vmul.f32 %v5657_v56, %v254_v0  ;;  %v94_v2 = vpop.permute.xlu1 %93 }
  0x9c   :  { %v227_v39 = vmul.f32 %v5663_v58, %v94_v2 }
  0x9d   :  { %v416_v5 = vadd.f32 %v384_v1, %v220_v62 }
  0x9e   :  { %v262_v6 = vpop.permute.xlu0 %261 }
  0x9f   :  { %v386_v8 = vmul.f32 %v5657_v56, %v262_v6  ;;  %v99_v9 = vpop.permute.xlu1 %98  ;;  %v452_v10 = vadd.f32 %v5673_v3, %v416_v5 }
  0xa0   :  { %v228_v55 = vmul.f32 %v5663_v58, %v99_v9 }
  0xa1   :  { %v418_v12 = vadd.f32 %v386_v8, %v222_v7  ;;  %4797 = vmatprep.mubr.msk.f32.mxu0 %vm484_vm0, %v452_v10 }
  0xa2   :  { %4798 = vmatmul.mubr.msk.f32.vlgmr.msra.gmra.mxu0 %vm484_vm0, %v453_v11  ;;  %v266_v13 = vpop.permute.xlu0 %265 }
  0xa3   :  { %v454_v15 = vadd.f32 %v5673_v3, %v418_v12  ;;  %v387_v16 = vmul.f32 %v5657_v56, %v266_v13  ;;  %v104_v17 = vpop.permute.xlu1 %103 }
  0xa4   :  { %v229_v2 = vmul.f32 %v5663_v58, %v104_v17 }
  0xa5   :  { %v419_v18 = vadd.f32 %v387_v16, %v223_v14  ;;  %4800 = vmatprep.mubr.msk.f32.mxu0 %vm484_vm0, %v454_v15 }
  0xa6   :  { %v270_v19 = vpop.permute.xlu0 %269 }
  0xa7   :  { %v455_v21 = vadd.f32 %v5673_v3, %v419_v18  ;;  %v388_v22 = vmul.f32 %v5657_v56, %v270_v19  ;;  %v109_v23 = vpop.permute.xlu1 %108 }
  0xa8   :  { %v230_v10 = vmul.f32 %v5663_v58, %v109_v23 }
  0xa9   :  { %v420_v24 = vadd.f32 %v388_v22, %v224_v20  ;;  %4801 = vmatmul.mubr.msk.f32.gmra.mxu0 %vm484_vm0, %v455_v21 }
  0xaa   :  { %v274_v25 = vpop.permute.xlu0 %273 }
  0xab   :  { %v456_v27 = vadd.f32 %v5673_v3, %v420_v24  ;;  %v389_v28 = vmul.f32 %v5657_v56, %v274_v25  ;;  %v114_v29 = vpop.permute.xlu1 %113 }
  0xac   :  { %v231_v15 = vmul.f32 %v5663_v58, %v114_v29 }
  0xad   :  { %v421_v30 = vadd.f32 %v389_v28, %v225_v26  ;;  %4803 = vmatprep.mubr.msk.f32.mxu0 %vm484_vm0, %v456_v27  ;;  %v233_v27 = vmul.f32 %v5663_v58, %v5635_v43 }
  0xae   :  { %v278_v31 = vpop.permute.xlu0 %277 }
  0xaf   :  { %v457_v33 = vadd.f32 %v5673_v3, %v421_v30  ;;  %v390_v34 = vmul.f32 %v5657_v56, %v278_v31  ;;  %v119_v35 = vpop.permute.xlu1 %118 }
  0xb0   :  { %v232_v16 = vmul.f32 %v5663_v58, %v119_v35  ;;  %v843_v35 = vld [vmem:[%s8037_s2 + $0x8] sm:$0xff] }
  0xb1   :  { %v422_v36 = vadd.f32 %v390_v34, %v226_v32  ;;  %4804 = vmatmul.mubr.msk.f32.gmra.mxu0 %vm484_vm0, %v457_v33  ;;  %v844_v33 = vld [vmem:[%s8037_s2 + $0x10] sm:$0xff] }
  0xb2   :  { %v282_v38 = vpop.permute.xlu0 %281 }
  0xb3   :  { %v458_v40 = vadd.f32 %v5673_v3, %v422_v36  ;;  %v391_v42 = vmul.f32 %v5657_v56, %v282_v38 }
  0xb4   :  { %v302_v44 = vpop.permute.xlu1 %301 }
  0xb5   :  { %v423_v46 = vadd.f32 %v391_v42, %v227_v39  ;;  %4806 = vmatprep.mubr.msk.f32.mxu0 %vm484_vm0, %v458_v40  ;;  %v396_v13 = vmul.f32 %v5657_v56, %v302_v44  ;;  %v235_v39 = vmul.f32 %v5663_v58, %v5639_v48  ;;  %v842_v42 = vld [vmem:[%s8037_s2] sm:$0xff]  ;;  %v248_v48 = vmul.f32 %v5663_v58, %v5637_v45 }
  0xb6   :  { %v286_v47 = vpop.permute.xlu0 %285 }
  0xb7   :  { %v459_v59 = vadd.f32 %v5673_v3, %v423_v46  ;;  %v392_v61 = vmul.f32 %v5657_v56, %v286_v47  ;;  %v428_v23 = vadd.f32 %v396_v13, %v232_v16  ;;  %v250_v16 = vmul.f32 %v5663_v58, %v5644_v52 }
  0xb8   :  { %v358_v62 = vpop.permute.xlu1 %357 }
  0xb9   :  { %v424_v63 = vadd.f32 %v392_v61, %v228_v55  ;;  %v410_v0 = vmul.f32 %v5657_v56, %v358_v62  ;;  %4807 = vmatmul.mubr.msk.f32.gmra.mxu0 %vm484_vm0, %v459_v59  ;;  %v464_v32 = vadd.f32 %v5673_v3, %v428_v23 }
  0xba   :  { %v290_v1 = vpop.permute.xlu0 %289 }
  0xbb   :  { %v460_v4 = vadd.f32 %v5673_v3, %v424_v63  ;;  %v393_v5 = vmul.f32 %v5657_v56, %v290_v1  ;;  %v442_v41 = vadd.f32 %v410_v0, %v246_v50 }
  0xbd   :  { %v425_v6 = vadd.f32 %v393_v5, %v229_v2  ;;  %v194_v7 = vpop.permute.xlu1 %193  ;;  %4809 = vmatprep.mubr.msk.f32.mxu0 %vm484_vm0, %v460_v4  ;;  %v478_v8 = vadd.f32 %v5673_v3, %v442_v41 }
  0xbe   :  { %v294_v9 = vpop.permute.xlu0 %293  ;;  %v247_v19 = vmul.f32 %v5663_v58, %v194_v7 }
  0xbf   :  { %v461_v11 = vadd.f32 %v5673_v3, %v425_v6  ;;  %v394_v12 = vmul.f32 %v5657_v56, %v294_v9  ;;  %4836 = vmatprep.mubr.msk.f32.mxu1 %vm484_vm0, %v478_v8  ;;  %v237_v8 = vmul.f32 %v5663_v58, %v5659_v57 }
  0xc1   :  { %v426_v14 = vadd.f32 %v394_v12, %v230_v10  ;;  %4810 = vmatmul.mubr.msk.f32.gmra.mxu0 %vm484_vm0, %v461_v11 }
  0xc2   :  { %v362_v17 = vpop.permute.xlu1 %361  ;;  %v298_v18 = vpop.permute.xlu0 %297 }
  0xc3   :  { %v462_v20 = vadd.f32 %v5673_v3, %v426_v14  ;;  %v411_v21 = vmul.f32 %v5657_v56, %v362_v17  ;;  %v395_v22 = vmul.f32 %v5657_v56, %v298_v18 }
  0xc5   :  { %v443_v24 = vadd.f32 %v411_v21, %v247_v19  ;;  %v427_v25 = vadd.f32 %v395_v22, %v231_v15  ;;  %4812 = vmatprep.mubr.msk.f32.mxu0 %vm484_vm0, %v462_v20 }
  0xc6   :  { %v306_v26 = vpop.permute.xlu0 %305 }
  0xc7   :  { %v479_v28 = vadd.f32 %v5673_v3, %v443_v24  ;;  %v463_v29 = vadd.f32 %v5673_v3, %v427_v25  ;;  %v397_v30 = vmul.f32 %v5657_v56, %v306_v26  ;;  %v129_v31 = vpop.permute.xlu1 %128 }
  0xc9   :  { %v429_v34 = vadd.f32 %v397_v30, %v233_v27  ;;  %4813 = vmatmul.mubr.msk.f32.gmra.mxu0 %vm484_vm0, %v463_v29  ;;  %4837 = vmatmul.mubr.msk.f32.vlgmr.msra.gmra.mxu1 %vm484_vm0, %v479_v28 }
  0xca   :  { %4815 = vmatprep.mubr.msk.f32.mxu0 %vm484_vm0, %v464_v32  ;;  %v314_v43 = vpop.permute.xlu0 %313  ;;  %4846 = vmatpush3.msra.mxu1 %v5623_v37  ;;  %v234_v37 = vmul.f32 %v5663_v58, %v129_v31 }
  0xcb   :  { %v465_v36 = vadd.f32 %v5673_v3, %v429_v34  ;;  %v399_v38 = vmul.f32 %v5657_v56, %v314_v43  ;;  %4847 = vmatprep.subr.mxu1 %v844_v33 }
  0xcc   :  { %v310_v40 = vpop.permute.xlu1 %309  ;;  %4848 = vmatpush3.msra.mxu1 %v844_v33  ;;  %v8040_v33 = vmov 0.0  }
  0xcd   :  { %v398_v44 = vmul.f32 %v5657_v56, %v310_v40  ;;  %4816 = vmatmul.mubr.msk.f32.gmra.mxu0 %vm484_vm0, %v465_v36  ;;  %4849 = vmatprep.subr.mxu1 %v843_v35  ;;  %v431_v46 = vadd.f32 %v399_v38, %v235_v39 }
  0xce   :  { %4850 = vmatpush3.msra.mxu1 %v843_v35  ;;  %v322_v5 = vpop.permute.xlu0 %321 }
  0xcf   :  { %v430_v47 = vadd.f32 %v398_v44, %v234_v37  ;;  %4851 = vmatprep.subr.mxu1 %v842_v42  ;;  %v467_v61 = vadd.f32 %v5673_v3, %v431_v46  ;;  %v401_v7 = vmul.f32 %v5657_v56, %v322_v5 }
  0xd0   :  { %v366_v50 = vpop.permute.xlu1 %365  ;;  %4852 = vmatpush3.msra.mxu1 %v842_v42 }
  0xd1   :  { %v466_v55 = vadd.f32 %v5673_v3, %v430_v47  ;;  %v412_v59 = vmul.f32 %v5657_v56, %v366_v50  ;;  %v433_v12 = vadd.f32 %v401_v7, %v237_v8 }
  0xd2   :  { %v326_v13 = vpop.permute.xlu0 %325 }
  0xd3   :  { %v444_v62 = vadd.f32 %v412_v59, %v248_v48  ;;  %4818 = vmatprep.mubr.msk.f32.mxu0 %vm484_vm0, %v466_v55  ;;  %v469_v19 = vadd.f32 %v5673_v3, %v433_v12  ;;  %v402_v29 = vmul.f32 %v5657_v56, %v326_v13 }
  0xd4   :  { %4819 = vmatmul.mubr.msk.f32.gmra.mxu0 %vm484_vm0, %v467_v61 }
  0xd5   :  { %v480_v63 = vadd.f32 %v5673_v3, %v444_v62  ;;  %v204_v0 = vpop.permute.xlu1 %203 }
  0xd6   :  { %v249_v2 = vmul.f32 %v5663_v58, %v204_v0  ;;  %v330_v57 = vpop.permute.xlu0 %329 }
  0xd7   :  { %4839 = vmatprep.mubr.msk.f32.mxu1 %vm484_vm0, %v480_v63  ;;  %v403_v43 = vmul.f32 %v5657_v56, %v330_v57 }
  0xda   :  { %v370_v1 = vpop.permute.xlu1 %369  ;;  %v334_v24 = vpop.permute.xlu0 %333 }
  0xdb   :  { %v413_v45 = vmul.f32 %v5657_v56, %v370_v1  ;;  %v404_v42 = vmul.f32 %v5657_v56, %v334_v24  ;;  %v5446_v24 = vmov 1966171168  }
  0xdd   :  { %v445_v4 = vadd.f32 %v413_v45, %v249_v2 }
  0xde   :  { %v338_v31 = vpop.permute.xlu0 %337 }
  0xdf   :  { %v481_v41 = vadd.f32 %v5673_v3, %v445_v4  ;;  %v139_v6 = vpop.permute.xlu1 %138  ;;  %v405_v50 = vmul.f32 %v5657_v56, %v338_v31 }
  0xe0   :  { %v236_v10 = vmul.f32 %v5663_v58, %v139_v6 }
  0xe1   :  { %4840 = vmatmul.mubr.msk.f32.gmra.mxu1 %vm484_vm0, %v481_v41 }
  0xe2   :  { %v342_v39 = vpop.permute.xlu0 %341 }
  0xe3   :  { %v406_v63 = vmul.f32 %v5657_v56, %v342_v39 }
  0xe4   :  { %v318_v9 = vpop.permute.xlu1 %317 }
  0xe5   :  { %v400_v11 = vmul.f32 %v5657_v56, %v318_v9 }
  0xe6   :  { %v346_v59 = vpop.permute.xlu0 %345 }
  0xe7   :  { %v432_v14 = vadd.f32 %v400_v11, %v236_v10  ;;  %v407_v5 = vmul.f32 %v5657_v56, %v346_v59 }
  0xe8   :  { %v374_v15 = vpop.permute.xlu1 %373 }
  0xe9   :  { %v468_v17 = vadd.f32 %v5673_v3, %v432_v14  ;;  %v414_v18 = vmul.f32 %v5657_v56, %v374_v15 }
  0xea   :  { %v350_v45 = vpop.permute.xlu0 %349 }
  0xeb   :  { %v446_v20 = vadd.f32 %v414_v18, %v250_v16  ;;  %4821 = vmatprep.mubr.msk.f32.mxu0 %vm484_vm0, %v468_v17  ;;  %v408_v9 = vmul.f32 %v5657_v56, %v350_v45 }
  0xec   :  { %4822 = vmatmul.mubr.msk.f32.gmra.mxu0 %vm484_vm0, %v469_v19 }
  0xed   :  { %v482_v21 = vadd.f32 %v5673_v3, %v446_v20  ;;  %v214_v22 = vpop.permute.xlu1 %213 }
  0xee   :  { %v251_v52 = vmul.f32 %v5663_v58, %v214_v22  ;;  %v354_v12 = vpop.permute.xlu0 %353 }
  0xef   :  { %4842 = vmatprep.mubr.msk.f32.mxu1 %vm484_vm0, %v482_v21  ;;  %v409_v15 = vmul.f32 %v5657_v56, %v354_v12 }
  0xf2   :  { %v378_v23 = vpop.permute.xlu1 %377 }
  0xf3   :  { %v415_v25 = vmul.f32 %v5657_v56, %v378_v23 }
  0xf5   :  { %v447_v26 = vadd.f32 %v415_v25, %v251_v52  ;;  %v932_v52 = vunpack.c.l.s4 %v5446_v24 }
  0xf7   :  { %v483_v27 = vadd.f32 %v5673_v3, %v447_v26  ;;  %v149_v28 = vpop.permute.xlu1 %148  ;;  %v848_v26 = vsub.s32 6, %v5641_v49 }
  0xf8   :  { %v238_v30 = vmul.f32 %v5663_v58, %v149_v28 }
  0xf9   :  { %4843 = vmatmul.mubr.msk.f32.gmra.mxu1 %vm484_vm0, %v483_v27  ;;  %v849_v31 = vrot.slane %v5652_v54, %v848_v26 }
  0xfa   :  { %v434_v32 = vadd.f32 %v402_v29, %v238_v30  ;;  %4853 = vmatprep.mubr.f32.mxu1 %v8040_v33  ;;  %v933_v29 = vunpack.c.0.s8 %v932_v52 }
  0xfb   :  { %v154_v34 = vpop.permute.xlu1 %153 }
  0xfc   :  { %v470_v35 = vadd.f32 %v5673_v3, %v434_v32  ;;  %v239_v36 = vmul.f32 %v5663_v58, %v154_v34 }
  0xfd   :  { %4854 = vmatmul.mubr.f32.vlgmr.msra.gmra.mxu1 %v8040_v33 }
  0xfe   :  { %v435_v38 = vadd.f32 %v403_v43, %v239_v36  ;;  %4824 = vmatprep.mubr.msk.f32.mxu0 %vm484_vm0, %v470_v35  ;;  %v5844_v35 = vsub.s32 %v933_v29, %v5641_v49 }
  0xff   :  { %v159_v40 = vpop.permute.xlu1 %158 }
 0x100   :  { %v471_v37 = vadd.f32 %v5673_v3, %v435_v38  ;;  %v240_v44 = vmul.f32 %v5663_v58, %v159_v40  ;;  %8168 = vst [vmem:[#allocation19_spill] sm:$0xff] %v5844_v35 }
 0x102   :  { %v436_v46 = vadd.f32 %v404_v42, %v240_v44  ;;  %4825 = vmatmul.mubr.msk.f32.gmra.mxu0 %vm484_vm0, %v471_v37  ;;  %v8042_v37 = vsub.s32 3, %v5641_v49 }
 0x103   :  { %v164_v47 = vpop.permute.xlu1 %163 }
 0x104   :  { %v472_v48 = vadd.f32 %v5673_v3, %v436_v46  ;;  %v241_v55 = vmul.f32 %v5663_v58, %v164_v47 }
 0x106   :  { %v437_v61 = vadd.f32 %v405_v50, %v241_v55  ;;  %4827 = vmatprep.mubr.msk.f32.mxu0 %vm484_vm0, %v472_v48  ;;  %v5863_v55 = vrot.slane %v5652_v54, %v8042_v37 }
 0x107   :  { %v169_v62 = vpop.permute.xlu1 %168 }
 0x108   :  { %v473_v0 = vadd.f32 %v5673_v3, %v437_v61  ;;  %v242_v1 = vmul.f32 %v5663_v58, %v169_v62 }
 0x10a   :  { %v438_v2 = vadd.f32 %v406_v63, %v242_v1  ;;  %4828 = vmatmul.mubr.msk.f32.gmra.mxu0 %vm484_vm0, %v473_v0 }
 0x10b   :  { %v174_v4 = vpop.permute.xlu1 %173 }
 0x10c   :  { %v474_v41 = vadd.f32 %v5673_v3, %v438_v2  ;;  %v243_v6 = vmul.f32 %v5663_v58, %v174_v4 }
 0x10e   :  { %v439_v7 = vadd.f32 %v407_v5, %v243_v6  ;;  %4830 = vmatprep.mubr.msk.f32.mxu0 %vm484_vm0, %v474_v41 }
 0x10f   :  { %v179_v8 = vpop.permute.xlu1 %178 }
 0x110   :  { %v475_v10 = vadd.f32 %v5673_v3, %v439_v7  ;;  %v244_v11 = vmul.f32 %v5663_v58, %v179_v8 }
 0x112   :  { %v440_v13 = vadd.f32 %v408_v9, %v244_v11  ;;  %4831 = vmatmul.mubr.msk.f32.gmra.mxu0 %vm484_vm0, %v475_v10 }
 0x113   :  { %v184_v14 = vpop.permute.xlu1 %183 }
 0x114   :  { %v476_v16 = vadd.f32 %v5673_v3, %v440_v13  ;;  %v245_v17 = vmul.f32 %v5663_v58, %v184_v14 }
 0x116   :  { %v441_v18 = vadd.f32 %v409_v15, %v245_v17  ;;  %4833 = vmatprep.mubr.msk.f32.mxu0 %vm484_vm0, %v476_v16 }
 0x118   :  { %v477_v19 = vadd.f32 %v5673_v3, %v441_v18 }
 0x11a   :  { %4834 = vmatmul.mubr.msk.f32.gmra.mxu0 %vm484_vm0, %v477_v19 }
 0x162   :  { %v5819_v57 = vpop.f32.mrf.mxu0 }
 0x163   :  { %8157 = vst [vmem:[#allocation8_spill] sm:$0xff] %v5819_v57  ;;  %v5879_v54 = vadd.f32 %v5819_v57, %v5863_v55 }
 0x164   :  { %v5825_v56 = vpop.f32.mrf.mxu0 }
 0x165   :  { %8160 = vst [vmem:[#allocation11_spill] sm:$0xff] %v5825_v56  ;;  %v5872_v1 = vadd.f32 %v5863_v55, %v5825_v56 }
 0x169   :  { %v5827_v23 = vpop.f32.mrf.mxu0 }
 0x16a   :  { %8161 = vst [vmem:[#allocation12_spill] sm:$0xff] %v5827_v23  ;;  %v5892_v8 = vadd.f32 %v5827_v23, %v5863_v55 }
 0x16b   :  { %v5833_v3 = vpop.f32.mrf.mxu0 }
 0x16c   :  { %8164 = vst [vmem:[#allocation15_spill] sm:$0xff] %v5833_v3  ;;  %v5883_v4 = vadd.f32 %v5863_v55, %v5833_v3 }
 0x171   :  { %v5838_v28 = vpop.f32.mrf.mxu0 }
 0x172   :  { %8166 = vst [vmem:[#allocation17_spill] sm:$0xff] %v5838_v28  ;;  %v5904_v13 = vadd.f32 %v5838_v28, %v5863_v55 }
 0x173   :  { %v5841_v34 = vpop.f32.mrf.mxu0 }
 0x174   :  { %8167 = vst [vmem:[#allocation18_spill] sm:$0xff] %v5841_v34  ;;  %v5897_v10 = vadd.f32 %v5863_v55, %v5841_v34 }
 0x179   :  { %v5846_v36 = vpop.f32.mrf.mxu0 }
 0x17a   :  { %8169 = vst [vmem:[#allocation20_spill] sm:$0xff] %v5846_v36 }
 0x17b   :  { %v5851_v40 = vpop.f32.mrf.mxu0 }
 0x17c   :  { %8170 = vst [vmem:[#allocation21_spill] sm:$0xff] %v5851_v40 }
 0x181   :  { %v5854_v44 = vpop.f32.mrf.mxu0 }
 0x182   :  { %8171 = vst [vmem:[#allocation22_spill] sm:$0xff] %v5854_v44  ;;  %v5925_v26 = vadd.f32 %v5854_v44, %v5863_v55 }
 0x183   :  { %v5865_v59 = vpop.f32.mrf.mxu0 }
 0x184   :  { %8172 = vst [vmem:[#allocation23_spill] sm:$0xff] %v5865_v59  ;;  %v5919_v24 = vadd.f32 %v5863_v55, %v5865_v59 }
 0x189   :  { %v5817_v20 = vpop.f32.mrf.mxu1  ;;  %v5874_v2 = vpop.f32.mrf.mxu0 }
 0x18a   :  { %8156 = vst [vmem:[#allocation7_spill] sm:$0xff] %v5817_v20  ;;  %8173 = vst [vmem:[#allocation24_spill] sm:$0xff] %v5874_v2 }
 0x18b   :  { %v5821_v21 = vpop.f32.mrf.mxu1  ;;  %v5899_v11 = vpop.f32.mrf.mxu0 }
 0x18c   :  { %8158 = vst [vmem:[#allocation9_spill] sm:$0xff] %v5821_v21  ;;  %8174 = vst [vmem:[#allocation25_spill] sm:$0xff] %v5899_v11 }
 0x18d   :  { %v5921_v52 = vpop.f32.mrf.mxu0 }
 0x18e   :  { %8175 = vst [vmem:[#allocation26_spill] sm:$0xff] %v5921_v52 }
 0x1a1   :  { %v5823_v22 = vpop.f32.mrf.mxu1 }
 0x1a2   :  { %8159 = vst [vmem:[#allocation10_spill] sm:$0xff] %v5823_v22 }
 0x1a3   :  { %v5829_v58 = vpop.f32.mrf.mxu1 }
 0x1a4   :  { %8162 = vst [vmem:[#allocation13_spill] sm:$0xff] %v5829_v58 }
 0x1b9   :  { %v5831_v25 = vpop.f32.mrf.mxu1 }
 0x1ba   :  { %8163 = vst [vmem:[#allocation14_spill] sm:$0xff] %v5831_v25 }
 0x1bb   :  { %v5836_v27 = vpop.f32.mrf.mxu1 }
 0x1bc   :  { %8165 = vst [vmem:[#allocation16_spill] sm:$0xff] %v5836_v27 }
 0x1bd   :  { %v4855_v30 = vpop.f32.mrf.mxu1 }
 0x1be   :  { %v5849_v39 = vadd.f32 %v4855_v30, %v849_v31 }
 0x1bf   :  { %v919_v32 = vpop.f32.mrf.mxu1 }
 0x1c0   :  { %v920_v43 = vadd.f32 %v919_v32, %v849_v31  ;;  %v979_v46 = vcombine.high %v5849_v39, %v5849_v39 }
 0x1c2   :  { %v937_v38 = vrot.slane %v920_v43, %v5844_v35  ;;  %v930_v47 = vcombine.high %v920_v43, %v920_v43  ;;  %v993_v61 = vrot.slane %v979_v46, %v5844_v35  ;;  %v5935_v43 = vadd.f32 %v5817_v20, %v5863_v55 }
 0x1c4   :  { %v945_v42 = vcombine.high %v937_v38, %v937_v38  ;;  %v953_v50 = vrot.slane %v937_v38, %v5844_v35  ;;  %v944_v62 = vrot.slane %v930_v47, %v5844_v35  ;;  %v995_v5 = vcombine.high %v993_v61, %v993_v61  ;;  %v5937_v38 = vpop.f32.mrf.mxu0 }
 0x1c5   :  { %v5907_v14 = vrot.slane %v993_v61, %v5844_v35  ;;  %8176 = vst [vmem:[#allocation27_spill] sm:$0xff] %v5937_v38 }
 0x1c6   :  { %v967_v48 = vrot.slane %v945_v42, %v5844_v35  ;;  %v975_v63 = vcombine.high %v953_v50, %v953_v50  ;;  %v1031_v0 = vrot.slane %v953_v50, %v5647_v53  ;;  %v5886_v41 = vrot.slane %v944_v62, %v5844_v35  ;;  %v5944_v47 = vpop.f32.mrf.mxu0 }
 0x1c7   :  { %v5911_v16 = vrot.slane %v995_v5, %v5844_v35  ;;  %v1025_v29 = vcombine.high %v5907_v14, %v5907_v14  ;;  %v5941_v42 = vadd.f32 %v5863_v55, %v5821_v21  ;;  %8177 = vst [vmem:[#allocation28_spill] sm:$0xff] %v5944_v47  ;;  %v946_v61 = vcombine.high %v944_v62, %v944_v62 }
 0x1c8   :  { %v1035_v45 = vrot.slane %v967_v48, %v5647_v53  ;;  %v1039_v6 = vrot.slane %v975_v63, %v5647_v53  ;;  %v1108_v7 = vadd.f32 %v1031_v0, %v5872_v1  ;;  %v1109_v9 = vadd.f32 %v1031_v0, %v5879_v54  ;;  %v51_v0 = vld [vmem:[%s8038_s3 + $0x8] sm:$0xff]  ;;  %v5964_v62 = vpop.f32.mrf.mxu0 }
 0x1c9   :  { %v1047_v17 = vrot.slane %v5886_v41, %v5647_v53  ;;  %v1083_v30 = vrot.slane %v5911_v16, %v5647_v53  ;;  %v1087_v46 = vrot.slane %v1025_v29, %v5647_v53  ;;  %v977_v63 = vcombine.high %v967_v48, %v967_v48  ;;  %8178 = vst [vmem:[#allocation29_spill] sm:$0xff] %v5964_v62 }
 0x1ca   :  { %v1110_v12 = vadd.f32 %v1035_v45, %v5883_v4  ;;  %v1111_v15 = vadd.f32 %v1035_v45, %v5892_v8  ;;  %v1112_v18 = vadd.f32 %v1039_v6, %v5897_v10  ;;  %4931 = vtanh.f32 %v1108_v7  ;;  %v5973_v29 = vpop.f32.mrf.mxu0 }
 0x1cb   :  { %v1113_v19 = vadd.f32 %v1039_v6, %v5904_v13  ;;  %4933 = vtanh.f32 %v1109_v9  ;;  %v1116_v31 = vadd.f32 %v1047_v17, %v5919_v24  ;;  %v1117_v32 = vadd.f32 %v1047_v17, %v5925_v26  ;;  %8179 = vst [vmem:[#allocation30_spill] sm:$0xff] %v5973_v29 }
 0x1cc   :  { %4935 = vtanh.f32 %v1110_v12  ;;  %v1135_v50 = vadd.f32 %v1083_v30, %v5935_v43  ;;  %v5952_v45 = vadd.f32 %v5863_v55, %v5829_v58  ;;  %v1134_v5 = vadd.f32 %v1083_v30, %v5941_v42 }
 0x1cd   :  { %4937 = vtanh.f32 %v1111_v15  ;;  %v5957_v6 = vadd.f32 %v5823_v22, %v5863_v55  ;;  %v5962_v48 = vrot.slane %v51_v0, %v382_v51  ;;  %v974_v12 = vrot.slane %v946_v61, %v5844_v35 }
 0x1ce   :  { %4939 = vtanh.f32 %v1112_v18  ;;  %v1136_v7 = vadd.f32 %v1087_v46, %v5952_v45  ;;  %v1043_v15 = vrot.slane %v977_v63, %v5647_v53 }
 0x1cf   :  { %4941 = vtanh.f32 %v1113_v19  ;;  %v1137_v9 = vadd.f32 %v1087_v46, %v5957_v6  ;;  %v5971_v19 = vadd.f32 %v5846_v36, %v5863_v55  ;;  %v1051_v61 = vrot.slane %v974_v12, %v5647_v53 }
 0x1d0   :  { %4943 = vtanh.f32 %v1116_v31  ;;  %v5978_v31 = vadd.f32 %v5863_v55, %v5851_v40 }
 0x1d1   :  { %4945 = vtanh.f32 %v1117_v32  ;;  %v976_v32 = vcombine.high %v5886_v41, %v5886_v41  ;;  %v1115_v63 = vadd.f32 %v1043_v15, %v5971_v19 }
 0x1d2   :  { %4947 = vtanh.f32 %v1135_v50 }
 0x1d3   :  { %4949 = vtanh.f32 %v1134_v5 }
 0x1d4   :  { %4951 = vtanh.f32 %v1136_v7 }
 0x1d5   :  { %4953 = vtanh.f32 %v1137_v9  ;;  %v5992_v9 = vadd.f32 %v5874_v2, %v5863_v55 }
 0x1d6   :  { %4955 = vtanh.f32 %v1115_v63 }
 0x1d7   :  { %v4932_v17 = vpop.eup %4931 }
 0x1d8   :  { %v4934_v18 = vpop.eup %4933  ;;  %v1176_v51 = vmul.f32 %v4932_v17, %v5962_v48  ;;  %v1114_v17 = vadd.f32 %v1043_v15, %v5978_v31  ;;  %v6000_v15 = vadd.f32 %v5863_v55, %v5899_v11 }
 0x1d9   :  { %v4936_v30 = vpop.eup %4935  ;;  %v1177_v46 = vmul.f32 %v4934_v18, %v5962_v48  ;;  %v5994_v18 = vpop.f32.mrf.mxu0 }
 0x1da   :  { %v4938_v50 = vpop.eup %4937  ;;  %v1208_v0 = vsel %vm484_vm0, %v1176_v51, 0.0  ;;  %v1178_v41 = vmul.f32 %v4936_v30, %v5962_v48  ;;  %8180 = vst [vmem:[#allocation31_spill] sm:$0xff] %v5994_v18  ;;  %v986_v51 = vrot.slane %v5849_v39, %v5844_v35  ;;  %v1119_v30 = vadd.f32 %v1051_v61, %v5992_v9 }
 0x1db   :  { %v4940_v5 = vpop.eup %4939  ;;  %v1211_v33 = vsel %vm484_vm0, %v1177_v46, 0.0  ;;  %1209 = vadd.xlane.f32.xlu1 %v1208_v0  ;;  %v1179_v7 = vmul.f32 %v4938_v50, %v5962_v48  ;;  %v978_v46 = vcombine.high %v974_v12, %v974_v12  ;;  %v1055_v50 = vrot.slane %v976_v32, %v5647_v53  ;;  %v6004_v0 = vpop.f32.mrf.mxu0 }
 0x1dc   :  { %v4942_v37 = vpop.eup %4941  ;;  %1212 = vadd.xlane.f32.xlu0 %v1211_v33  ;;  %8181 = vst [vmem:[#allocation32_spill] sm:$0xff] %v6004_v0  ;;  %v1118_v39 = vadd.f32 %v1051_v61, %v6000_v15  ;;  %4957 = vtanh.f32 %v1114_v17  ;;  %v1214_v33 = vsel %vm484_vm0, %v1178_v41, 0.0  ;;  %v1180_v12 = vmul.f32 %v4940_v5, %v5962_v48 }
 0x1dd   :  { %v1217_v60 = vsel %vm484_vm0, %v1179_v7, 0.0  ;;  %v1181_v2 = vmul.f32 %v4942_v37, %v5962_v48  ;;  %v4944_v36 = vpop.eup %4943  ;;  %v6013_v32 = vadd.f32 %v5921_v52, %v5863_v55  ;;  %v6016_v63 = vrot.slane %v986_v51, %v5844_v35  ;;  %v6024_v5 = vpop.f32.mrf.mxu0 }
 0x1de   :  { %v4946_v11 = vpop.eup %4945  ;;  %v6020_v37 = vadd.f32 %v5863_v55, %v5937_v38  ;;  %v994_v61 = vcombine.high %v986_v51, %v986_v51  ;;  %4959 = vtanh.f32 %v1119_v30  ;;  %8184 = vst [vmem:[#allocation35_spill] sm:$0xff] %v6024_v5  ;;  %v1184_v51 = vmul.f32 %v4944_v36, %v5962_v48 }
 0x1df   :  { %1218 = vadd.xlane.f32.xlu1 %v1217_v60  ;;  %8182 = vst [vmem:[#allocation33_spill] sm:$0xff] %v6013_v32  ;;  %v1059_v60 = vrot.slane %v978_v46, %v5647_v53  ;;  %v1121_v17 = vadd.f32 %v1055_v50, %v6013_v32  ;;  %v1223_v7 = vsel %vm484_vm0, %v1181_v2, 0.0  ;;  %v1185_v41 = vmul.f32 %v4946_v11, %v5962_v48  ;;  %v4948_v52 = vpop.eup %4947  ;;  %v6037_v2 = vpop.f32.mrf.mxu0 }
 0x1e0   :  { %1215 = vadd.xlane.f32.xlu0 %v1214_v33  ;;  %8183 = vst [vmem:[#allocation34_spill] sm:$0xff] %v6020_v37  ;;  %v1120_v40 = vadd.f32 %v1055_v50, %v6020_v37  ;;  %4961 = vtanh.f32 %v1118_v39  ;;  %v1220_v33 = vsel %vm484_vm0, %v1180_v12, 0.0  ;;  %v4950_v38 = vpop.eup %4949  ;;  %v6033_v46 = vadd.f32 %v5944_v47, %v5863_v55  ;;  %8186 = vst [vmem:[#allocation37_spill] sm:$0xff] %v6037_v2 }
 0x1e1   :  { %v1063_v30 = vrot.slane %v6016_v63, %v5647_v53  ;;  %v6041_v11 = vadd.f32 %v5863_v55, %v5964_v62  ;;  %v6045_v50 = vadd.f32 %v5973_v29, %v5863_v55  ;;  %v6049_v36 = vadd.f32 %v5863_v55, %v5994_v18  ;;  %v4952_v12 = vpop.eup %4951 }
 0x1e2   :  { %8185 = vst [vmem:[#allocation36_spill] sm:$0xff] %v6033_v46  ;;  %v1016_v39 = vrot.slane %v994_v61, %v5844_v35  ;;  %4963 = vtanh.f32 %v1121_v17  ;;  %v1203_v47 = vmul.f32 %v4948_v52, %v5962_v48  ;;  %v4954_v62 = vpop.eup %4953  ;;  %v1232_v58 = vsel %vm484_vm0, %v1184_v51, 0.0  ;;  %v6059_v61 = vpop.f32.mrf.mxu0 }
 0x1e3   :  { %1224 = vadd.xlane.f32.xlu1 %v1223_v7  ;;  %8187 = vst [vmem:[#allocation38_spill] sm:$0xff] %v6041_v11  ;;  %v1123_v7 = vadd.f32 %v1059_v60, %v6033_v46  ;;  %v1122_v22 = vadd.f32 %v1059_v60, %v6041_v11  ;;  %4965 = vtanh.f32 %v1120_v40  ;;  %v1202_v20 = vmul.f32 %v4950_v38, %v5962_v48 }
 0x1e4   :  { %1221 = vadd.xlane.f32.xlu0 %v1220_v33  ;;  %v1235_v33 = vsel %vm484_vm0, %v1185_v41, 0.0  ;;  %v1124_v21 = vadd.f32 %v1063_v30, %v6049_v36  ;;  %8188 = vst [vmem:[#allocation39_spill] sm:$0xff] %v6059_v61  ;;  %v1125_v17 = vadd.f32 %v1063_v30, %v6045_v50  ;;  %v1067_v41 = vrot.slane %v1016_v39, %v5647_v53  ;;  %v6063_v52 = vpop.f32.mrf.mxu0 }
 0x1e5   :  { %4967 = vtanh.f32 %v1123_v7  ;;  %8189 = vst [vmem:[#allocation40_spill] sm:$0xff] %v6063_v52  ;;  %v1289_v60 = vsel %vm484_vm0, %v1203_v47, 0.0  ;;  %v1205_v40 = vmul.f32 %v4954_v62, %v5962_v48  ;;  %v6069_v38 = vadd.f32 %v5863_v55, %v6024_v5 }
 0x1e6   :  { %4969 = vtanh.f32 %v1122_v22  ;;  %v1204_v51 = vmul.f32 %v4952_v12, %v5962_v48  ;;  %v1024_v7 = vcombine.high %v6016_v63, %v6016_v63  ;;  %v6077_v47 = vadd.f32 %v6004_v0, %v5863_v55 }
 0x1e7   :  { %1236 = vadd.xlane.f32.xlu1 %v1235_v33  ;;  %v4956_v33 = vpop.eup %4955  ;;  %4971 = vtanh.f32 %v1124_v21  ;;  %v1026_v22 = vcombine.high %v1016_v39, %v1016_v39  ;;  %v1295_v12 = vsel %vm484_vm0, %v1205_v40, 0.0  ;;  %v1126_v44 = vadd.f32 %v1067_v41, %v6069_v38 }
 0x1e8   :  { %1233 = vadd.xlane.f32.xlu0 %v1232_v58  ;;  %v1286_v58 = vsel %vm484_vm0, %v1202_v20, 0.0  ;;  %4973 = vtanh.f32 %v1125_v17  ;;  %v1127_v62 = vadd.f32 %v1067_v41, %v6077_v47  ;;  %v6084_v20 = vpop.f32.mrf.mxu0  ;;  %v1183_v63 = vmul.f32 %v4956_v33, %v5962_v48 }
 0x1e9   :  { %v4958_v30 = vpop.eup %4957  ;;  %8190 = vst [vmem:[#allocation41_spill] sm:$0xff] %v6084_v20  ;;  %v1292_v39 = vsel %vm484_vm0, %v1204_v51, 0.0  ;;  %v1071_v28 = vrot.slane %v1024_v7, %v5647_v53  ;;  %v6100_v40 = vadd.f32 %v6063_v52, %v5863_v55  ;;  %v1075_v41 = vrot.slane %v1026_v22, %v5647_v53 }
 0x1ea   :  { %v1182_v17 = vmul.f32 %v4958_v30, %v5962_v48  ;;  %v6096_v34 = vpop.f32.mrf.mxu0  ;;  %v6105_v33 = vadd.f32 %v5863_v55, %v6084_v20  ;;  %4975 = vtanh.f32 %v1127_v62  ;;  %v1229_v30 = vsel %vm484_vm0, %v1183_v63, 0.0 }
 0x1eb   :  { %1290 = vadd.xlane.f32.xlu1 %v1289_v60  ;;  %v6082_v60 = vadd.f32 %v6037_v2, %v5863_v55  ;;  %v4960_v21 = vpop.eup %4959  ;;  %8191 = vst [vmem:[#allocation42_spill] sm:$0xff] %v6096_v34  ;;  %8192 = vst [vmem:[#allocation43_spill] sm:$0xff] %v6100_v40  ;;  %4977 = vtanh.f32 %v1126_v44  ;;  %v1027_v62 = vcombine.high %v5911_v16, %v5911_v16 }
 0x1ec   :  { %1287 = vadd.xlane.f32.xlu0 %v1286_v58  ;;  %v6091_v58 = vadd.f32 %v5863_v55, %v6059_v61  ;;  %8193 = vst [vmem:[#allocation44_spill] sm:$0xff] %v6105_v33  ;;  %v1187_v7 = vmul.f32 %v4960_v21, %v5962_v48  ;;  %v1226_v52 = vsel %vm484_vm0, %v1182_v17, 0.0  ;;  %v6113_v3 = vpop.f32.mrf.mxu0  ;;  %v1131_v63 = vadd.f32 %v1075_v41, %v6100_v40 }
 0x1ed   :  { %v4962_v59 = vpop.eup %4961  ;;  %v1129_v51 = vadd.f32 %v1071_v28, %v6082_v60  ;;  %8194 = vst [vmem:[#allocation45_spill] sm:$0xff] %v6113_v3  ;;  %v1130_v21 = vadd.f32 %v1075_v41, %v6105_v33 }
 0x1ee   :  { %v1186_v22 = vmul.f32 %v4962_v59, %v5962_v48  ;;  %v1241_v44 = vsel %vm484_vm0, %v1187_v7, 0.0  ;;  %v1091_v7 = vrot.slane %v1027_v62, %v5647_v53  ;;  %v6146_v62 = vadd.f32 %v5863_v55, %v5836_v27 }
 0x1ef   :  { %1296 = vadd.xlane.f32.xlu1 %v1295_v12  ;;  %v4964_v12 = vpop.eup %4963  ;;  %4979 = vtanh.f32 %v1129_v51 }
 0x1f0   :  { %1293 = vadd.xlane.f32.xlu0 %v1292_v39  ;;  %v1128_v39 = vadd.f32 %v1071_v28, %v6091_v58  ;;  %v4966_v23 = vpop.eup %4965  ;;  %v6121_v28 = vadd.f32 %v6096_v34, %v5863_v55  ;;  %v1189_v59 = vmul.f32 %v4964_v12, %v5962_v48  ;;  %v1238_v16 = vsel %vm484_vm0, %v1186_v22, 0.0  ;;  %8198 = vst [vmem:[#allocation49_spill] sm:$0xff] %v6146_v62 }
 0x1f1   :  { %v1188_v41 = vmul.f32 %v4966_v23, %v5962_v48 }
 0x1f2   :  { %8195 = vst [vmem:[#allocation46_spill] sm:$0xff] %v6121_v28  ;;  %v4968_v17 = vpop.eup %4967  ;;  %4981 = vtanh.f32 %v1128_v39  ;;  %v1247_v34 = vsel %vm484_vm0, %v1189_v59, 0.0 }
 0x1f3   :  { %1230 = vadd.xlane.f32.xlu1 %v1229_v30  ;;  %v4970_v51 = vpop.eup %4969  ;;  %v1079_v30 = vrot.slane %v5907_v14, %v5647_v53  ;;  %4983 = vtanh.f32 %v1131_v63  ;;  %v1244_v23 = vsel %vm484_vm0, %v1188_v41, 0.0 }
 0x1f4   :  { %1227 = vadd.xlane.f32.xlu0 %v1226_v52  ;;  %v6127_v52 = vadd.f32 %v5863_v55, %v6113_v3  ;;  %v4972_v20 = vpop.eup %4971  ;;  %4985 = vtanh.f32 %v1130_v21  ;;  %v1190_v14 = vmul.f32 %v4970_v51, %v5962_v48 }
 0x1f5   :  { %v4974_v12 = vpop.eup %4973  ;;  %v1133_v39 = vadd.f32 %v1079_v30, %v6121_v28  ;;  %v1192_v51 = vmul.f32 %v4972_v20, %v5962_v48 }
 0x1f6   :  { %8196 = vst [vmem:[#allocation47_spill] sm:$0xff] %v6127_v52  ;;  %v1132_v22 = vadd.f32 %v1079_v30, %v6127_v52  ;;  %v1250_v41 = vsel %vm484_vm0, %v1190_v14, 0.0 }
 0x1f7   :  { %1242 = vadd.xlane.f32.xlu1 %v1241_v44  ;;  %v1191_v44 = vmul.f32 %v4968_v17, %v5962_v48  ;;  %4987 = vtanh.f32 %v1133_v39  ;;  %v4976_v59 = vpop.eup %4975  ;;  %v1138_v17 = vadd.f32 %v1091_v7, %v6146_v62 }
 0x1f8   :  { %1239 = vadd.xlane.f32.xlu0 %v1238_v16  ;;  %v6142_v16 = vadd.f32 %v5831_v25, %v5863_v55  ;;  %4989 = vtanh.f32 %v1132_v22  ;;  %v4978_v30 = vpop.eup %4977  ;;  %v1195_v39 = vmul.f32 %v4976_v59, %v5962_v48 }
 0x1f9   :  { %v1253_v21 = vsel %vm484_vm0, %v1191_v44, 0.0 }
 0x1fa   :  { %8197 = vst [vmem:[#allocation48_spill] sm:$0xff] %v6142_v16  ;;  %v1139_v63 = vadd.f32 %v1091_v7, %v6142_v16  ;;  %v1194_v7 = vmul.f32 %v4978_v30, %v5962_v48  ;;  %v1265_v22 = vsel %vm484_vm0, %v1195_v39, 0.0 }
 0x1fb   :  { %1248 = vadd.xlane.f32.xlu1 %v1247_v34  ;;  %v1193_v34 = vmul.f32 %v4974_v12, %v5962_v48  ;;  %v1256_v12 = vsel %vm484_vm0, %v1192_v51, 0.0 }
 0x1fc   :  { %1245 = vadd.xlane.f32.xlu0 %v1244_v23  ;;  %4991 = vtanh.f32 %v1139_v63  ;;  %v4980_v23 = vpop.eup %4979  ;;  %v1262_v63 = vsel %vm484_vm0, %v1194_v7, 0.0 }
 0x1fd   :  { %v1259_v55 = vsel %vm484_vm0, %v1193_v34, 0.0  ;;  %4993 = vtanh.f32 %v1138_v17  ;;  %v1197_v20 = vmul.f32 %v4980_v23, %v5962_v48 }
 0x1ff   :  { %1254 = vadd.xlane.f32.xlu1 %v1253_v21  ;;  %v4982_v44 = vpop.eup %4981  ;;  %v1271_v59 = vsel %vm484_vm0, %v1197_v20, 0.0 }
 0x200   :  { %1251 = vadd.xlane.f32.xlu0 %v1250_v41  ;;  %v4984_v14 = vpop.eup %4983  ;;  %v1196_v21 = vmul.f32 %v4982_v44, %v5962_v48 }
 0x201   :  { %v4986_v34 = vpop.eup %4985  ;;  %v1199_v17 = vmul.f32 %v4984_v14, %v5962_v48 }
 0x202   :  { %v1268_v51 = vsel %vm484_vm0, %v1196_v21, 0.0  ;;  %v1198_v30 = vmul.f32 %v4986_v34, %v5962_v48 }
 0x203   :  { %1260 = vadd.xlane.f32.xlu1 %v1259_v55  ;;  %v1277_v39 = vsel %vm484_vm0, %v1199_v17, 0.0  ;;  %v8088_v17 = vsub.s32 4, %v5641_v49 }
 0x204   :  { %1257 = vadd.xlane.f32.xlu0 %v1256_v12  ;;  %v4988_v41 = vpop.eup %4987  ;;  %v1274_v7 = vsel %vm484_vm0, %v1198_v30, 0.0 }
 0x205   :  { %v4990_v55 = vpop.eup %4989  ;;  %v1201_v23 = vmul.f32 %v4988_v41, %v5962_v48  ;;  %v5411_v41 = vld [vmem:[%s8038_s3] sm:$0xff] }
 0x206   :  { %v1200_v44 = vmul.f32 %v4990_v55, %v5962_v48 }
 0x207   :  { %1266 = vadd.xlane.f32.xlu1 %v1265_v22  ;;  %v1283_v20 = vsel %vm484_vm0, %v1201_v23, 0.0 }
 0x208   :  { %1263 = vadd.xlane.f32.xlu0 %v1262_v63  ;;  %v1280_v63 = vsel %vm484_vm0, %v1200_v44, 0.0 }
 0x209   :  { %v4992_v12 = vpop.eup %4991 }
 0x20a   :  { %v4994_v22 = vpop.eup %4993  ;;  %v1207_v14 = vmul.f32 %v4992_v12, %v5962_v48 }
 0x20b   :  { %1272 = vadd.xlane.f32.xlu1 %v1271_v59  ;;  %v1206_v21 = vmul.f32 %v4994_v22, %v5962_v48 }
 0x20c   :  { %1269 = vadd.xlane.f32.xlu0 %v1268_v51  ;;  %v1301_v34 = vsel %vm484_vm0, %v1207_v14, 0.0  ;;  %v1883_v51 = vrot.slane %v5411_v41, %v8088_v17 }
 0x20d   :  { %v1298_v59 = vsel %vm484_vm0, %v1206_v21, 0.0 }
 0x20f   :  { %1278 = vadd.xlane.f32.xlu1 %v1277_v39 }
 0x210   :  { %1275 = vadd.xlane.f32.xlu0 %v1274_v7 }
 0x213   :  { %1284 = vadd.xlane.f32.xlu1 %v1283_v20 }
 0x214   :  { %1281 = vadd.xlane.f32.xlu0 %v1280_v63 }
 0x217   :  { %1302 = vadd.xlane.f32.xlu1 %v1301_v34 }
 0x218   :  { %1299 = vadd.xlane.f32.xlu0 %v1298_v59 }
 0x22e   :  { %1885 = vrot.lane.b32.xlu0 %v1883_v51, %s5447_s22 }
 0x264   :  { %v1210_v48 = vpop.xlane.xlu1 %1209 }
 0x265   :  { %v1213_v30 = vpop.xlane.xlu0 %1212 }
 0x266   :  { %v1304_v55 = vmax.f32 %v1210_v48, %v1213_v30 }
 0x268   :  { %v1305_v39 = vrot.slane %v1304_v55, 4  ;;  %v1219_v23 = vpop.xlane.xlu1 %1218 }
 0x269   :  { %v1216_v12 = vpop.xlane.xlu0 %1215 }
 0x26a   :  { %v1306_v7 = vmax.f32 %v1304_v55, %v1305_v39  ;;  %v1311_v44 = vmax.f32 %v1216_v12, %v1219_v23 }
 0x26c   :  { %v1307_v22 = vrot.slane %v1306_v7, 2  ;;  %v1312_v20 = vrot.slane %v1311_v44, 4  ;;  %v1225_v14 = vpop.xlane.xlu1 %1224 }
 0x26d   :  { %v1222_v63 = vpop.xlane.xlu0 %1221 }
 0x26e   :  { %v1308_v21 = vmax.f32 %v1306_v7, %v1307_v22  ;;  %v1313_v34 = vmax.f32 %v1311_v44, %v1312_v20  ;;  %v1318_v59 = vmax.f32 %v1222_v63, %v1225_v14 }
 0x270   :  { %v1309_v25 = vrot.slane %v1308_v21, 1  ;;  %v1314_v41 = vrot.slane %v1313_v34, 2  ;;  %v1319_v17 = vrot.slane %v1318_v59, 4  ;;  %v6183_v27 = vpop.xlane.xlu1 %1236 }
 0x271   :  { %v6185_v51 = vpop.xlane.xlu0 %1233 }
 0x272   :  { %v1310_v3 = vmax.f32 %v1308_v21, %v1309_v25  ;;  %v1315_v2 = vmax.f32 %v1313_v34, %v1314_v41  ;;  %v1320_v61 = vmax.f32 %v1318_v59, %v1319_v17  ;;  %v1332_v55 = vmax.f32 %v6185_v51, %v6183_v27 }
 0x274   :  { %v1416_v39 = vsub.f32 %v1210_v48, %v1310_v3  ;;  %v1417_v0 = vsub.f32 %v1213_v30, %v1310_v3  ;;  %v1316_v5 = vrot.slane %v1315_v2, 1  ;;  %v1321_v57 = vrot.slane %v1320_v61, 2  ;;  %v6189_v7 = vpop.xlane.xlu1 %1290 }
 0x275   :  { %v1333_v44 = vrot.slane %v1332_v55, 4  ;;  %v6191_v22 = vpop.xlane.xlu0 %1287 }
 0x276   :  { %v1448_v20 = vmul.f32 1.442695, %v1416_v39  ;;  %v1450_v56 = vmul.f32 1.442695, %v1417_v0  ;;  %v1317_v29 = vmax.f32 %v1315_v2, %v1316_v5  ;;  %v1322_v18 = vmax.f32 %v1320_v61, %v1321_v57 }
 0x277   :  { %v1334_v53 = vmax.f32 %v1332_v55, %v1333_v44  ;;  %v1395_v25 = vmax.f32 %v6191_v22, %v6189_v7  ;;  %v4711_v55 = vld [vmem:[%s8037_s2 + $0x30] sm:$0xff] }
 0x278   :  { %4995 = vpow2.f32 %v1448_v20  ;;  %v1418_v17 = vsub.f32 %v1216_v12, %v1317_v29  ;;  %v1419_v21 = vsub.f32 %v1219_v23, %v1317_v29  ;;  %v1323_v48 = vrot.slane %v1322_v18, 1  ;;  %v6195_v3 = vpop.xlane.xlu1 %1296 }
 0x279   :  { %4997 = vpow2.f32 %v1450_v56  ;;  %v1335_v30 = vrot.slane %v1334_v53, 2  ;;  %v1396_v34 = vrot.slane %v1395_v25, 4  ;;  %v6197_v59 = vpop.xlane.xlu0 %1293  ;;  %v4712_v56 = vld [vmem:[%s8037_s2 + $0x38] sm:$0xff] }
 0x27a   :  { %v1452_v41 = vmul.f32 1.442695, %v1418_v17  ;;  %v1454_v39 = vmul.f32 1.442695, %v1419_v21  ;;  %v1324_v0 = vmax.f32 %v1322_v18, %v1323_v48  ;;  %v1402_v57 = vmax.f32 %v6197_v59, %v6195_v3  ;;  %4856 = vmatprep.subr.mxu1 %v4712_v56  ;;  %v4710_v17 = vld [vmem:[%s8037_s2 + $0x28] sm:$0xff] }
 0x27b   :  { %v1336_v5 = vmax.f32 %v1334_v53, %v1335_v30  ;;  %v1397_v2 = vmax.f32 %v1395_v25, %v1396_v34  ;;  %4857 = vmatpush3.msra.mxu1 %v4712_v56  ;;  %v4709_v34 = vld [vmem:[%s8037_s2 + $0x20] sm:$0xff] }
 0x27c   :  { %4999 = vpow2.f32 %v1452_v41  ;;  %v1420_v61 = vsub.f32 %v1222_v63, %v1324_v0  ;;  %v1421_v12 = vsub.f32 %v1225_v14, %v1324_v0  ;;  %v1403_v29 = vrot.slane %v1402_v57, 4  ;;  %v6201_v23 = vpop.xlane.xlu1 %1230  ;;  %4858 = vmatprep.subr.mxu1 %v4711_v55 }
 0x27d   :  { %5001 = vpow2.f32 %v1454_v39  ;;  %v1337_v18 = vrot.slane %v1336_v5, 1  ;;  %v1398_v44 = vrot.slane %v1397_v2, 2  ;;  %v6209_v20 = vpop.xlane.xlu0 %1227  ;;  %4859 = vmatpush3.msra.mxu1 %v4711_v55 }
 0x27e   :  { %v1456_v53 = vmul.f32 1.442695, %v1420_v61  ;;  %v1458_v63 = vmul.f32 1.442695, %v1421_v12  ;;  %v1404_v14 = vmax.f32 %v1402_v57, %v1403_v29  ;;  %v1325_v25 = vmax.f32 %v6209_v20, %v6201_v23  ;;  %4860 = vmatprep.subr.mxu1 %v4710_v17 }
 0x27f   :  { %v1338_v21 = vmax.f32 %v1336_v5, %v1337_v18  ;;  %v1399_v0 = vmax.f32 %v1397_v2, %v1398_v44  ;;  %4861 = vmatpush3.msra.mxu1 %v4710_v17 }
 0x280   :  { %v1326_v48 = vrot.slane %v1325_v25, 4  ;;  %v6216_v30 = vpop.xlane.xlu1 %1242  ;;  %5003 = vpow2.f32 %v1456_v53  ;;  %v1405_v41 = vrot.slane %v1404_v14, 2  ;;  %4862 = vmatprep.subr.mxu1 %v4709_v34 }
 0x281   :  { %v6221_v39 = vpop.xlane.xlu0 %1239  ;;  %5005 = vpow2.f32 %v1458_v63  ;;  %v1424_v5 = vsub.f32 %v6185_v51, %v1338_v21  ;;  %4863 = vmatpush3.msra.mxu1 %v4709_v34  ;;  %v1425_v53 = vsub.f32 %v6183_v27, %v1338_v21  ;;  %v1400_v35 = vrot.slane %v1399_v0, 1 }
 0x282   :  { %v1327_v57 = vmax.f32 %v1325_v25, %v1326_v48  ;;  %v1406_v56 = vmax.f32 %v1404_v14, %v1405_v41 }
 0x283   :  { %v1464_v63 = vmul.f32 1.442695, %v1424_v5  ;;  %v1466_v14 = vmul.f32 1.442695, %v1425_v53  ;;  %v1401_v41 = vmax.f32 %v1399_v0, %v1400_v35  ;;  %v1339_v35 = vmax.f32 %v6221_v39, %v6216_v30 }
 0x284   :  { %v1328_v61 = vrot.slane %v1327_v57, 2  ;;  %v6224_v12 = vpop.xlane.xlu1 %1248  ;;  %v1407_v48 = vrot.slane %v1406_v56, 1 }
 0x285   :  { %v4996_v29 = vpop.eup %4995  ;;  %v6226_v55 = vpop.xlane.xlu0 %1245  ;;  %5007 = vpow2.f32 %v1464_v63 }
 0x286   :  { %v4998_v18 = vpop.eup %4997  ;;  %v1624_v2 = vmul.f32 %v4996_v29, %v5872_v1  ;;  %v1329_v25 = vmax.f32 %v1327_v57, %v1328_v61  ;;  %5009 = vpow2.f32 %v1466_v14 }
 0x287   :  { %v1512_v49 = vadd.f32 %v4998_v18, %v4996_v29  ;;  %v1625_v44 = vmul.f32 %v4998_v18, %v5879_v54  ;;  %v1408_v29 = vmax.f32 %v1406_v56, %v1407_v48  ;;  %v1340_v48 = vrot.slane %v1339_v35, 4 }
 0x288   :  { %v6232_v62 = vpop.xlane.xlu1 %1254  ;;  %v1656_v54 = vsel %vm484_vm0, %v1624_v2, 0.0  ;;  %v1330_v5 = vrot.slane %v1329_v25, 1 }
 0x289   :  { %v5000_v51 = vpop.eup %4999  ;;  %v1513_v17 = vrot.slane %v1512_v49, 4  ;;  %v6234_v28 = vpop.xlane.xlu0 %1251  ;;  %v1657_v57 = vsel %vm484_vm0, %v1625_v44, 0.0  ;;  %v1443_v44 = vsub.f32 %v6189_v7, %v1401_v41  ;;  %v1444_v56 = vsub.f32 %v6197_v59, %v1408_v29 }
 0x28a   :  { %v5002_v16 = vpop.eup %5001  ;;  %v1626_v34 = vmul.f32 %v5000_v51, %v5883_v4  ;;  %v1331_v63 = vmax.f32 %v1329_v25, %v1330_v5  ;;  %v1341_v59 = vmax.f32 %v1339_v35, %v1340_v48 }
 0x28b   :  { %v1514_v27 = vadd.f32 %v1513_v17, %v1512_v49  ;;  %v1519_v21 = vadd.f32 %v5002_v16, %v5000_v51  ;;  %v1627_v1 = vmul.f32 %v5002_v16, %v5892_v8  ;;  %v1442_v49 = vsub.f32 %v6191_v22, %v1401_v41 }
 0x28c   :  { %v1665_v61 = vsel %vm484_vm0, %v1626_v34, 0.0  ;;  %v1658_v16 = vadd.f32 %v1657_v57, %v1656_v54  ;;  %v6245_v51 = vpop.xlane.xlu1 %1260  ;;  %v1502_v25 = vmul.f32 1.442695, %v1443_v44  ;;  %v1422_v41 = vsub.f32 %v6209_v20, %v1331_v63 }
 0x28d   :  { %v1666_v4 = vsel %vm484_vm0, %v1627_v1, 0.0  ;;  %v5004_v0 = vpop.eup %5003  ;;  %v1515_v8 = vrot.slane %v1514_v27, 2  ;;  %v1520_v53 = vrot.slane %v1519_v21, 4  ;;  %v6247_v17 = vpop.xlane.xlu0 %1257  ;;  %v1500_v22 = vmul.f32 1.442695, %v1442_v49 }
 0x28e   :  { %v5006_v18 = vpop.eup %5005  ;;  %v1667_v2 = vadd.f32 %v1666_v4, %v1665_v61  ;;  %v1628_v34 = vmul.f32 %v5004_v0, %v5897_v10  ;;  %v1445_v1 = vsub.f32 %v6195_v3, %v1408_v29  ;;  %v1659_v57 = vrot.slane %v1658_v16, 4 }
 0x28f   :  { %v1629_v14 = vmul.f32 %v5006_v18, %v5904_v13  ;;  %v1516_v54 = vadd.f32 %v1515_v8, %v1514_v27  ;;  %v1521_v61 = vadd.f32 %v1520_v53, %v1519_v21  ;;  %v1526_v4 = vadd.f32 %v5006_v18, %v5004_v0 }
 0x290   :  { %v1668_v7 = vrot.slane %v1667_v2, 4  ;;  %v1504_v5 = vmul.f32 1.442695, %v1444_v56  ;;  %v1423_v46 = vsub.f32 %v6201_v23, %v1331_v63  ;;  %v1674_v52 = vsel %vm484_vm0, %v1628_v34, 0.0  ;;  %v6257_v49 = vpop.xlane.xlu1 %1266 }
 0x291   :  { %v1675_v10 = vsel %vm484_vm0, %v1629_v14, 0.0  ;;  %5011 = vpow2.f32 %v1500_v22  ;;  %v1506_v13 = vmul.f32 1.442695, %v1445_v1  ;;  %v6259_v3 = vpop.xlane.xlu0 %1263  ;;  %v1517_v27 = vrot.slane %v1516_v54, 1 }
 0x292   :  { %v6261_v21 = vadd.f32 %v1659_v57, %v1658_v16  ;;  %v1522_v29 = vrot.slane %v1521_v61, 2  ;;  %v1527_v0 = vrot.slane %v1526_v4, 4  ;;  %v6263_v20 = vadd.f32 %v1668_v7, %v1667_v2  ;;  %v5008_v35 = vpop.eup %5007 }
 0x293   :  { %5013 = vpow2.f32 %v1502_v25  ;;  %v1460_v23 = vmul.f32 1.442695, %v1422_v41  ;;  %v1676_v18 = vadd.f32 %v1675_v10, %v1674_v52  ;;  %v1462_v8 = vmul.f32 1.442695, %v1423_v46  ;;  %v5010_v44 = vpop.eup %5009 }
 0x294   :  { %5015 = vpow2.f32 %v1504_v5  ;;  %v1342_v53 = vrot.slane %v1341_v59, 2  ;;  %v6265_v63 = vadd.f32 %v1517_v27, %v1516_v54  ;;  %v1523_v48 = vadd.f32 %v1522_v29, %v1521_v61  ;;  %v6270_v22 = vpop.xlane.xlu1 %1272 }
 0x295   :  { %5017 = vpow2.f32 %v1506_v13  ;;  %v1528_v16 = vadd.f32 %v1527_v0, %v1526_v4  ;;  %v1632_v2 = vmul.f32 %v5008_v35, %v5919_v24  ;;  %v6272_v52 = vpop.xlane.xlu0 %1269  ;;  %v1677_v46 = vrot.slane %v1676_v18, 4 }
 0x296   :  { %8199 = vst [vmem:[#allocation50_spill] sm:$0xff] %v6265_v63  ;;  %5019 = vpow2.f32 %v1460_v23  ;;  %v1343_v14 = vmax.f32 %v1341_v59, %v1342_v53  ;;  %v1346_v1 = vmax.f32 %v6226_v55, %v6224_v12  ;;  %v1353_v54 = vmax.f32 %v6234_v28, %v6232_v62 }
 0x297   :  { %5021 = vpow2.f32 %v1462_v8  ;;  %v1540_v57 = vadd.f32 %v5010_v44, %v5008_v35  ;;  %v1360_v4 = vmax.f32 %v6247_v17, %v6245_v51  ;;  %v1367_v24 = vmax.f32 %v6259_v3, %v6257_v49 }
 0x298   :  { %v1344_v61 = vrot.slane %v1343_v14, 1  ;;  %v1633_v7 = vmul.f32 %v5010_v44, %v5925_v26  ;;  %v1347_v25 = vrot.slane %v1346_v1, 4  ;;  %v1354_v41 = vrot.slane %v1353_v54, 4 }
 0x299   :  { %v1374_v5 = vmax.f32 %v6272_v52, %v6270_v22  ;;  %v1524_v59 = vrot.slane %v1523_v48, 1  ;;  %v1361_v13 = vrot.slane %v1360_v4, 4  ;;  %v1368_v27 = vrot.slane %v1367_v24, 4 }
 0x29a   :  { %v1345_v10 = vmax.f32 %v1343_v14, %v1344_v61  ;;  %v1529_v29 = vrot.slane %v1528_v16, 2  ;;  %v1348_v0 = vmax.f32 %v1346_v1, %v1347_v25  ;;  %v1355_v23 = vmax.f32 %v1353_v54, %v1354_v41  ;;  %v6291_v54 = vpop.xlane.xlu1 %1278  ;;  %v6293_v25 = vpop.xlane.xlu0 %1275 }
 0x29b   :  { %v1375_v35 = vrot.slane %v1374_v5, 4  ;;  %v1541_v8 = vrot.slane %v1540_v57, 4  ;;  %v1692_v53 = vsel %vm484_vm0, %v1632_v2, 0.0  ;;  %v1362_v34 = vmax.f32 %v1360_v4, %v1361_v13 }
 0x29c   :  { %v1369_v56 = vmax.f32 %v1367_v24, %v1368_v27  ;;  %v1693_v26 = vsel %vm484_vm0, %v1633_v7, 0.0  ;;  %v1349_v44 = vrot.slane %v1348_v0, 2  ;;  %v1356_v40 = vrot.slane %v1355_v23, 2 }
 0x29d   :  { %v1376_v33 = vmax.f32 %v1374_v5, %v1375_v35  ;;  %5023 = vrcp.f32 %v6265_v63  ;;  %v6288_v14 = vadd.f32 %v1677_v46, %v1676_v18  ;;  %v1426_v61 = vsub.f32 %v6221_v39, %v1345_v10 }
 0x29e   :  { %v5012_v32 = vpop.eup %5011  ;;  %v1363_v1 = vrot.slane %v1362_v34, 2  ;;  %v1427_v4 = vsub.f32 %v6216_v30, %v1345_v10  ;;  %v1350_v24 = vmax.f32 %v1348_v0, %v1349_v44  ;;  %v1370_v41 = vrot.slane %v1369_v56, 2 }
 0x29f   :  { %v1377_v7 = vrot.slane %v1376_v33, 2  ;;  %v6298_v5 = vadd.f32 %v1524_v59, %v1523_v48  ;;  %v6300_v27 = vadd.f32 %v1529_v29, %v1528_v16  ;;  %v6302_v18 = vadd.f32 %v1693_v26, %v1692_v53 }
 0x2a0   :  { %v5014_v2 = vpop.eup %5013  ;;  %v1650_v39 = vmul.f32 %v5012_v32, %v5941_v42  ;;  %v6307_v35 = vadd.f32 %v1541_v8, %v1540_v57  ;;  %v1351_v63 = vrot.slane %v1350_v24, 1  ;;  %v1357_v11 = vmax.f32 %v1355_v23, %v1356_v40  ;;  %v6319_v40 = vpop.xlane.xlu1 %1284 }
 0x2a1   :  { %v6296_v13 = vpop.eup %5015  ;;  %v1364_v30 = vmax.f32 %v1362_v34, %v1363_v1  ;;  %v6309_v10 = vadd.f32 %v5014_v2, %v5012_v32  ;;  %v1468_v0 = vmul.f32 1.442695, %v1426_v61  ;;  %v1371_v44 = vmax.f32 %v1369_v56, %v1370_v41  ;;  %v6321_v56 = vpop.xlane.xlu0 %1281 }
 0x2a2   :  { %v6305_v46 = vpop.eup %5017  ;;  %v1378_v37 = vmax.f32 %v1376_v33, %v1377_v7  ;;  %v1651_v16 = vmul.f32 %v5014_v2, %v5935_v43  ;;  %v1470_v59 = vmul.f32 1.442695, %v1427_v4  ;;  %v1352_v29 = vmax.f32 %v1350_v24, %v1351_v63 }
 0x2a3   :  { %v6311_v48 = vpop.eup %5019  ;;  %v1365_v53 = vrot.slane %v1364_v30, 1  ;;  %5025 = vrcp.f32 %v6298_v5  ;;  %v1372_v57 = vrot.slane %v1371_v44, 1  ;;  %v1381_v32 = vmax.f32 %v6293_v25, %v6291_v54 }
 0x2a4   :  { %v6314_v42 = vpop.eup %5021  ;;  %v1379_v8 = vrot.slane %v1378_v37, 1  ;;  %v1531_v33 = vrot.slane %v6300_v27, 1  ;;  %v1428_v43 = vsub.f32 %v6226_v55, %v1352_v29  ;;  %v1429_v63 = vsub.f32 %v6224_v12, %v1352_v29 }
 0x2a5   :  { %v1358_v34 = vrot.slane %v1357_v11, 1  ;;  %v6327_v23 = vsel %vm484_vm0, %v1650_v39, 0.0  ;;  %5027 = vpow2.f32 %v1468_v0  ;;  %v1366_v26 = vmax.f32 %v1364_v30, %v1365_v53 }
 0x2a6   :  { %v1373_v61 = vmax.f32 %v1371_v44, %v1372_v57  ;;  %v1533_v1 = vadd.f32 %v6314_v42, %v6311_v48  ;;  %5029 = vpow2.f32 %v1470_v59  ;;  %v1472_v2 = vmul.f32 1.442695, %v1428_v43  ;;  %v6340_v57 = vpop.xlane.xlu0 %1299 }
 0x2a7   :  { %v1380_v4 = vmax.f32 %v1378_v37, %v1379_v8  ;;  %v1474_v24 = vmul.f32 1.442695, %v1429_v63  ;;  %v1432_v41 = vsub.f32 %v6247_v17, %v1366_v26  ;;  %v1433_v55 = vsub.f32 %v6245_v51, %v1366_v26  ;;  %v6338_v37 = vpop.xlane.xlu1 %1302 }
 0x2a8   :  { %v1382_v7 = vrot.slane %v1381_v32, 4  ;;  %v1359_v12 = vmax.f32 %v1357_v11, %v1358_v34  ;;  %v1434_v29 = vsub.f32 %v6259_v3, %v1373_v61  ;;  %v1435_v39 = vsub.f32 %v6257_v49, %v1373_v61 }
 0x2a9   :  { %v1436_v30 = vsub.f32 %v6272_v52, %v1380_v4  ;;  %v1543_v0 = vrot.slane %v6307_v35, 2  ;;  %v1604_v44 = vrot.slane %v6309_v10, 4  ;;  %v1480_v59 = vmul.f32 1.442695, %v1432_v41 }
 0x2aa   :  { %v1482_v53 = vmul.f32 1.442695, %v1433_v55  ;;  %v6342_v17 = vpop.eup %5023  ;;  %v1534_v51 = vrot.slane %v1533_v1, 4  ;;  %5031 = vpow2.f32 %v1472_v2  ;;  %v1484_v11 = vmul.f32 1.442695, %v1434_v29 }
 0x2ab   :  { %v1437_v3 = vsub.f32 %v6270_v22, %v1380_v4  ;;  %5033 = vpow2.f32 %v1474_v24  ;;  %v1486_v49 = vmul.f32 1.442695, %v1435_v39  ;;  %v1383_v52 = vmax.f32 %v1381_v32, %v1382_v7 }
 0x2ac   :  { %v1388_v8 = vmax.f32 %v6321_v56, %v6319_v40  ;;  %v1430_v43 = vsub.f32 %v6234_v28, %v1359_v12  ;;  %5035 = vpow2.f32 %v1480_v59  ;;  %v1488_v63 = vmul.f32 1.442695, %v1436_v30 }
 0x2ad   :  { %v1409_v34 = vmax.f32 %v6340_v57, %v6338_v37  ;;  %5037 = vpow2.f32 %v1482_v53  ;;  %v1490_v26 = vmul.f32 1.442695, %v1437_v3  ;;  %v1384_v61 = vrot.slane %v1383_v52, 2 }
 0x2ae   :  { %v1389_v2 = vrot.slane %v1388_v8, 4  ;;  %v1535_v41 = vadd.f32 %v1534_v51, %v1533_v1  ;;  %v1431_v22 = vsub.f32 %v6232_v62, %v1359_v12  ;;  %5039 = vpow2.f32 %v1484_v11 }
 0x2af   :  { %v1410_v4 = vrot.slane %v1409_v34, 4  ;;  %v1774_v32 = vsel %vm484_vm0, %v1651_v16, 0.0  ;;  %5041 = vpow2.f32 %v1486_v49  ;;  %v1385_v24 = vmax.f32 %v1383_v52, %v1384_v61 }
 0x2b0   :  { %v1390_v55 = vmax.f32 %v1388_v8, %v1389_v2  ;;  %v6352_v28 = vpop.eup %5025  ;;  %v1610_v7 = vadd.f32 %v6305_v46, %v6296_v13  ;;  %v1630_v29 = vmul.f32 %v6311_v48, %v5978_v31  ;;  %5043 = vpow2.f32 %v1488_v63 }
 0x2b1   :  { %v1411_v39 = vmax.f32 %v1409_v34, %v1410_v4  ;;  %v1476_v1 = vmul.f32 1.442695, %v1430_v43  ;;  %5045 = vpow2.f32 %v1490_v26  ;;  %v1386_v62 = vrot.slane %v1385_v24, 1 }
 0x2b2   :  { %v1391_v12 = vrot.slane %v1390_v55, 2  ;;  %v5028_v30 = vpop.eup %5027  ;;  %v1536_v59 = vrot.slane %v1535_v41, 2  ;;  %v1631_v16 = vmul.f32 %v6314_v42, %v5971_v19  ;;  %v1478_v53 = vmul.f32 1.442695, %v1431_v22 }
 0x2b3   :  { %v1412_v51 = vrot.slane %v1411_v39, 2  ;;  %v5030_v11 = vpop.eup %5029  ;;  %v6363_v3 = vadd.f32 %v1531_v33, %v6300_v27  ;;  %v1652_v31 = vmul.f32 %v6296_v13, %v5952_v45  ;;  %v1387_v48 = vmax.f32 %v1385_v24, %v1386_v62 }
 0x2b4   :  { %v1392_v49 = vmax.f32 %v1390_v55, %v1391_v12  ;;  %v1605_v52 = vadd.f32 %v1604_v44, %v6309_v10  ;;  %v6369_v8 = vadd.f32 %v1774_v32, %v6327_v23  ;;  %v1611_v43 = vrot.slane %v1610_v7, 4 }
 0x2b5   :  { %v1413_v19 = vmax.f32 %v1411_v39, %v1412_v51  ;;  %5047 = vpow2.f32 %v1476_v1  ;;  %v1438_v42 = vsub.f32 %v6293_v25, %v1387_v48  ;;  %v1439_v63 = vsub.f32 %v6291_v54, %v1387_v48 }
 0x2b6   :  { %v1393_v34 = vrot.slane %v1392_v49, 1  ;;  %v1537_v27 = vadd.f32 %v1536_v59, %v1535_v41  ;;  %v1683_v33 = vsel %vm484_vm0, %v1630_v29, 0.0  ;;  %v1684_v45 = vsel %vm484_vm0, %v1631_v16, 0.0 }
 0x2b7   :  { %5049 = vpow2.f32 %v1478_v53  ;;  %v6375_v13 = vpop.eup %5031  ;;  %v1547_v10 = vadd.f32 %v5030_v11, %v5028_v30  ;;  %v1492_v44 = vmul.f32 1.442695, %v1438_v42  ;;  %v1494_v23 = vmul.f32 1.442695, %v1439_v63 }
 0x2b8   :  { %v1394_v26 = vmax.f32 %v1392_v49, %v1393_v34  ;;  %v6377_v61 = vpop.eup %5033  ;;  %v1606_v2 = vrot.slane %v1605_v52, 2  ;;  %v6379_v22 = vadd.f32 %v1611_v43, %v1610_v7  ;;  %v6383_v54 = vmul.f32 %v6305_v46, %v5957_v6 }
 0x2b9   :  { %v1414_v25 = vrot.slane %v1413_v19, 1  ;;  %v5036_v41 = vpop.eup %5035  ;;  %v1544_v4 = vadd.f32 %v1543_v0, %v6307_v35  ;;  %v6388_v32 = vadd.f32 %v1684_v45, %v1683_v33  ;;  %5051 = vpow2.f32 %v1492_v44 }
 0x2ba   :  { %v1440_v24 = vsub.f32 %v6321_v56, %v1394_v26  ;;  %v5038_v55 = vpop.eup %5037  ;;  %v1538_v29 = vrot.slane %v1537_v27, 1  ;;  %v1634_v7 = vmul.f32 %v5028_v30, %v6000_v15  ;;  %5053 = vpow2.f32 %v1494_v23 }
 0x2bb   :  { %v1441_v39 = vsub.f32 %v6319_v40, %v1394_v26  ;;  %v5040_v6 = vpop.eup %5039  ;;  %v6394_v46 = vsel %vm484_vm0, %v1652_v31, 0.0  ;;  %v1548_v1 = vrot.slane %v1547_v10, 4  ;;  %v1568_v62 = vadd.f32 %v5038_v55, %v5036_v41 }
 0x2bc   :  { %v1496_v12 = vmul.f32 1.442695, %v1440_v24  ;;  %v5042_v35 = vpop.eup %5041  ;;  %5055 = vrcp.f32 %v6363_v3  ;;  %v6397_v0 = vadd.f32 %v1606_v2, %v1605_v52  ;;  %v1613_v56 = vrot.slane %v6379_v22, 2 }
 0x2bd   :  { %v1415_v59 = vmax.f32 %v1413_v19, %v1414_v25  ;;  %v5044_v16 = vpop.eup %5043  ;;  %v1686_v15 = vrot.slane %v6388_v32, 4  ;;  %v1569_v30 = vrot.slane %v1568_v62, 4  ;;  %v1575_v40 = vadd.f32 %v5042_v35, %v5040_v6 }
 0x2be   :  { %v1498_v53 = vmul.f32 1.442695, %v1441_v39  ;;  %v5046_v51 = vpop.eup %5045  ;;  %v6402_v31 = vmul.f32 %v5030_v11, %v5992_v9  ;;  %v6405_v48 = vsel %vm484_vm0, %v1634_v7, 0.0  ;;  %v6407_v49 = vadd.f32 %v1538_v29, %v1537_v27 }
 0x2bf   :  { %v1545_v52 = vrot.slane %v1544_v4, 1  ;;  %v1549_v43 = vadd.f32 %v1548_v1, %v1547_v10  ;;  %v1570_v42 = vadd.f32 %v1569_v30, %v1568_v62  ;;  %v1582_v63 = vadd.f32 %v5046_v51, %v5044_v16 }
 0x2c0   :  { %5057 = vpow2.f32 %v1496_v12  ;;  %v1554_v19 = vadd.f32 %v6377_v61, %v6375_v13  ;;  %v1576_v34 = vrot.slane %v1575_v40, 4  ;;  %v1446_v33 = vsub.f32 %v6340_v57, %v1415_v59 }
 0x2c1   :  { %v8200_v9 = vrot.slane %v6261_v21, 2  ;;  %v1640_v45 = vmul.f32 %v5036_v41, %v6049_v36  ;;  %v1583_v44 = vrot.slane %v1582_v63, 4  ;;  %5059 = vpow2.f32 %v1498_v53 }
 0x2c2   :  { %v1447_v27 = vsub.f32 %v6338_v37, %v1415_v59  ;;  %v5048_v10 = vpop.eup %5047  ;;  %v1571_v23 = vrot.slane %v1570_v42, 2  ;;  %v1641_v26 = vmul.f32 %v5038_v55, %v6045_v50  ;;  %v1642_v2 = vmul.f32 %v5040_v6, %v6069_v38 }
 0x2c3   :  { %v1662_v11 = vadd.f32 %v8200_v9, %v6261_v21  ;;  %v1643_v25 = vmul.f32 %v5042_v35, %v6077_v47  ;;  %v1550_v57 = vrot.slane %v1549_v43, 2  ;;  %v1644_v29 = vmul.f32 %v5044_v16, %v6091_v58 }
 0x2c4   :  { %v6420_v24 = vpop.eup %5049  ;;  %v1645_v21 = vmul.f32 %v5046_v51, %v6082_v60  ;;  %v6424_v36 = vadd.f32 %v1545_v52, %v1544_v4  ;;  %v1577_v41 = vadd.f32 %v1576_v34, %v1575_v40  ;;  %v1584_v7 = vadd.f32 %v1583_v44, %v1582_v63  ;;  %v8202_v44 = vld [vmem:[#allocation34_spill] sm:$0xff] }
 0x2c5   :  { %v1508_v37 = vmul.f32 1.442695, %v1446_v33  ;;  %v8201_v39 = vrot.slane %v6263_v20, 2  ;;  %v1555_v55 = vrot.slane %v1554_v19, 4  ;;  %v1728_v38 = vsel %vm484_vm0, %v1640_v45, 0.0 }
 0x2c6   :  { %v1510_v47 = vmul.f32 1.442695, %v1447_v27  ;;  %v1663_v6 = vrot.slane %v1662_v11, 1  ;;  %v5052_v1 = vpop.eup %5051  ;;  %v1572_v62 = vadd.f32 %v1571_v23, %v1570_v42  ;;  %v1729_v58 = vsel %vm484_vm0, %v1641_v26, 0.0 }
 0x2c7   :  { %v1671_v50 = vadd.f32 %v8201_v39, %v6263_v20  ;;  %v1737_v60 = vsel %vm484_vm0, %v1642_v2, 0.0  ;;  %v1738_v4 = vsel %vm484_vm0, %v1643_v25, 0.0  ;;  %v5054_v12 = vpop.eup %5053  ;;  %v1561_v35 = vadd.f32 %v6420_v24, %v5048_v10 }
 0x2c8   :  { %v1746_v59 = vsel %vm484_vm0, %v1644_v29, 0.0  ;;  %v1747_v20 = vsel %vm484_vm0, %v1645_v21, 0.0  ;;  %v1551_v16 = vadd.f32 %v1550_v57, %v1549_v43  ;;  %v1578_v30 = vrot.slane %v1577_v41, 2 }
 0x2c9   :  { %v1585_v40 = vrot.slane %v1584_v7, 2  ;;  %v1589_v53 = vadd.f32 %v5054_v12, %v5052_v1  ;;  %5061 = vpow2.f32 %v1508_v37  ;;  %v6436_v51 = vpop.eup %5055  ;;  %v1556_v52 = vadd.f32 %v1555_v55, %v1554_v19 }
 0x2ca   :  { %v1730_v42 = vadd.f32 %v1729_v58, %v1728_v38  ;;  %v1739_v63 = vadd.f32 %v1738_v4, %v1737_v60  ;;  %5063 = vpow2.f32 %v1510_v47  ;;  %v1573_v34 = vrot.slane %v1572_v62, 1  ;;  %v8203_v47 = vld [vmem:[#allocation38_spill] sm:$0xff]  ;;  %v8204_v60 = vld [vmem:[#allocation44_spill] sm:$0xff] }
 0x2cb   :  { %v1748_v33 = vadd.f32 %v1747_v20, %v1746_v59  ;;  %v1672_v9 = vrot.slane %v1671_v50, 1  ;;  %v1679_v45 = vrot.slane %v6288_v14, 2  ;;  %v1636_v27 = vmul.f32 %v6375_v13, %v8202_v44 }
 0x2cc   :  { %v1562_v23 = vrot.slane %v1561_v35, 4  ;;  %v6441_v43 = vadd.f32 %v1663_v6, %v1662_v11  ;;  %v1687_v26 = vadd.f32 %v1686_v15, %v6388_v32  ;;  %v1579_v19 = vadd.f32 %v1578_v30, %v1577_v41  ;;  %v8205_v32 = vld [vmem:[#allocation43_spill] sm:$0xff] }
 0x2cd   :  { %v5058_v2 = vpop.eup %5057  ;;  %v1586_v25 = vadd.f32 %v1585_v40, %v1584_v7  ;;  %v1590_v57 = vrot.slane %v1589_v53, 4  ;;  %v1552_v29 = vrot.slane %v1551_v16, 1  ;;  %v1731_v21 = vrot.slane %v1730_v42, 4  ;;  %v8206_v7 = vld [vmem:[#allocation33_spill] sm:$0xff] }
 0x2ce   :  { %v1740_v37 = vrot.slane %v1739_v63, 4  ;;  %v1557_v39 = vrot.slane %v1556_v52, 2  ;;  %v1563_v55 = vadd.f32 %v1562_v23, %v1561_v35  ;;  %v5060_v38 = vpop.eup %5059  ;;  %v1638_v58 = vmul.f32 %v5048_v10, %v8203_v47 }
 0x2cf   :  { %v6447_v13 = vadd.f32 %v1573_v34, %v1572_v62  ;;  %v1749_v11 = vrot.slane %v1748_v33, 4  ;;  %v6449_v6 = vadd.f32 %v1672_v9, %v1671_v50  ;;  %v1646_v4 = vmul.f32 %v5052_v1, %v8204_v60 }
 0x2d0   :  { %v1647_v15 = vmul.f32 %v5054_v12, %v8205_v32  ;;  %v1596_v41 = vadd.f32 %v5060_v38, %v5058_v2  ;;  %v1637_v59 = vmul.f32 %v6377_v61, %v8206_v7  ;;  %v1580_v20 = vrot.slane %v1579_v19, 1  ;;  %v8207_v12 = vld [vmem:[#allocation47_spill] sm:$0xff] }
 0x2d1   :  { %v1587_v30 = vrot.slane %v1586_v25, 1  ;;  %v1591_v40 = vadd.f32 %v1590_v57, %v1589_v53  ;;  %v1564_v35 = vrot.slane %v1563_v55, 2  ;;  %v6455_v44 = vadd.f32 %v1731_v21, %v1730_v42 }
 0x2d2   :  { %v6457_v10 = vadd.f32 %v1740_v37, %v1739_v63  ;;  %v6459_v62 = vadd.f32 %v1552_v29, %v1551_v16  ;;  %v1558_v50 = vadd.f32 %v1557_v39, %v1556_v52  ;;  %5065 = vrcp.f32 %v6447_v13  ;;  %v8208_v52 = vld [vmem:[#allocation36_spill] sm:$0xff] }
 0x2d3   :  { %v6462_v1 = vadd.f32 %v1749_v11, %v1748_v33  ;;  %v1648_v34 = vmul.f32 %v5058_v2, %v8207_v12  ;;  %v1565_v9 = vadd.f32 %v1564_v35, %v1563_v55  ;;  %v1755_v61 = vsel %vm484_vm0, %v1646_v4, 0.0  ;;  %v8209_v4 = vld [vmem:[#allocation46_spill] sm:$0xff] }
 0x2d4   :  { %v1756_v23 = vsel %vm484_vm0, %v1647_v15, 0.0  ;;  %v1597_v53 = vrot.slane %v1596_v41, 4  ;;  %v1695_v42 = vrot.slane %v6302_v18, 4  ;;  %v6468_v57 = vadd.f32 %v1580_v20, %v1579_v19 }
 0x2d5   :  { %v6470_v63 = vadd.f32 %v1587_v30, %v1586_v25  ;;  %v1592_v16 = vrot.slane %v1591_v40, 2  ;;  %v1639_v29 = vmul.f32 %v6420_v24, %v8208_v52  ;;  %v1559_v21 = vrot.slane %v1558_v50, 1 }
 0x2d6   :  { %v6474_v33 = vpop.eup %5061  ;;  %v1566_v2 = vrot.slane %v1565_v9, 1  ;;  %v1688_v37 = vrot.slane %v1687_v26, 2  ;;  %v1702_v39 = vsel %vm484_vm0, %v6402_v31, 0.0  ;;  %v1757_v47 = vadd.f32 %v1756_v23, %v1755_v61 }
 0x2d7   :  { %v6478_v55 = vpop.eup %5063  ;;  %v1764_v19 = vsel %vm484_vm0, %v1648_v34, 0.0  ;;  %v1680_v25 = vadd.f32 %v1679_v45, %v6288_v14  ;;  %v1703_v11 = vadd.f32 %v1702_v39, %v6405_v48  ;;  %v1598_v60 = vadd.f32 %v1597_v53, %v1596_v41 }
 0x2d8   :  { %v1649_v24 = vmul.f32 %v5060_v38, %v8209_v4  ;;  %v1696_v32 = vadd.f32 %v1695_v42, %v6302_v18  ;;  %v1710_v15 = vsel %vm484_vm0, %v1636_v27, 0.0  ;;  %v1593_v7 = vadd.f32 %v1592_v16, %v1591_v40 }
 0x2d9   :  { %v1704_v20 = vrot.slane %v1703_v11, 4  ;;  %v1711_v31 = vsel %vm484_vm0, %v1637_v59, 0.0  ;;  %v1719_v30 = vsel %vm484_vm0, %v1638_v58, 0.0  ;;  %v1617_v35 = vadd.f32 %v6478_v55, %v6474_v33 }
 0x2da   :  { %v6490_v12 = vadd.f32 %v1559_v21, %v1558_v50  ;;  %v6492_v14 = vadd.f32 %v1566_v2, %v1565_v9  ;;  %v1689_v48 = vadd.f32 %v1688_v37, %v1687_v26  ;;  %v1712_v38 = vadd.f32 %v1711_v31, %v1710_v15  ;;  %v8210_v26 = vld [vmem:[#allocation50_spill] sm:$0xff] }
 0x2db   :  { %v1705_v45 = vadd.f32 %v1704_v20, %v1703_v11  ;;  %v1720_v18 = vsel %vm484_vm0, %v1639_v29, 0.0  ;;  %5067 = vrcp.f32 %v6407_v49  ;;  %v1599_v27 = vrot.slane %v1598_v60, 2 }
 0x2dc   :  { %v1697_v41 = vrot.slane %v1696_v32, 2  ;;  %v1721_v40 = vadd.f32 %v1720_v18, %v1719_v30  ;;  %5069 = vrcp.f32 %v6424_v36  ;;  %v1765_v58 = vsel %vm484_vm0, %v1649_v24, 0.0 }
 0x2dd   :  { %v1706_v59 = vrot.slane %v1705_v45, 2  ;;  %v1713_v34 = vrot.slane %v1712_v38, 4  ;;  %5071 = vrcp.f32 %v6459_v62  ;;  %v1816_v9 = vmul.f32 %v6342_v17, %v8210_v26 }
 0x2de   :  { %v1722_v50 = vrot.slane %v1721_v40, 4  ;;  %5073 = vrcp.f32 %v6490_v12  ;;  %v1817_v61 = vmul.f32 %v6352_v28, %v6298_v5  ;;  %v1594_v23 = vrot.slane %v1593_v7, 1 }
 0x2df   :  { %v1714_v53 = vadd.f32 %v1713_v34, %v1712_v38  ;;  %5075 = vrcp.f32 %v6492_v14  ;;  %v1818_v42 = vmul.f32 %v6436_v51, %v6363_v3  ;;  %v6507_v16 = vpop.eup %5065  ;;  %v1600_v52 = vadd.f32 %v1599_v27, %v1598_v60 }
 0x2e0   :  { %v1618_v29 = vrot.slane %v1617_v35, 4  ;;  %v1698_v21 = vadd.f32 %v1697_v41, %v1696_v32  ;;  %v1723_v2 = vadd.f32 %v1722_v50, %v1721_v40  ;;  %5077 = vrcp.f32 %v6468_v57 }
 0x2e1   :  { %v1758_v37 = vrot.slane %v1757_v47, 4  ;;  %v1707_v39 = vadd.f32 %v1706_v59, %v1705_v45  ;;  %v1833_v11 = vsub.f32 2.0, %v1817_v61  ;;  %5079 = vrcp.f32 %v6470_v63  ;;  %v8211_v45 = vld [vmem:[#allocation49_spill] sm:$0xff] }
 0x2e2   :  { %v1681_v5 = vrot.slane %v1680_v25, 1  ;;  %v1715_v4 = vrot.slane %v1714_v53, 2  ;;  %v1832_v24 = vsub.f32 2.0, %v1816_v9  ;;  %v6511_v15 = vadd.f32 %v1594_v23, %v1593_v7 }
 0x2e3   :  { %v6513_v3 = vadd.f32 %v1765_v58, %v1764_v19  ;;  %v1690_v20 = vrot.slane %v1689_v48, 1  ;;  %v1834_v60 = vsub.f32 2.0, %v1818_v42  ;;  %v1601_v31 = vrot.slane %v1600_v52, 1 }
 0x2e4   :  { %v1619_v32 = vadd.f32 %v1618_v29, %v1617_v35  ;;  %v1699_v30 = vrot.slane %v1698_v21, 1  ;;  %v1724_v38 = vrot.slane %v1723_v2, 2  ;;  %v6515_v18 = vadd.f32 %v1758_v37, %v1757_v47  ;;  %v8212_v37 = vld [vmem:[#allocation48_spill] sm:$0xff] }
 0x2e5   :  { %v6519_v27 = vmul.f32 %v6474_v33, %v8211_v45  ;;  %v1708_v41 = vrot.slane %v1707_v39, 1  ;;  %v1849_v40 = vmul.f32 %v6352_v28, %v1833_v11  ;;  %v1682_v7 = vadd.f32 %v1681_v5, %v1680_v25 }
 0x2e6   :  { %v1716_v59 = vadd.f32 %v1715_v4, %v1714_v53  ;;  %v1848_v19 = vmul.f32 %v6342_v17, %v1832_v24  ;;  %v1614_v35 = vadd.f32 %v1613_v56, %v6379_v22  ;;  %5081 = vrcp.f32 %v6511_v15 }
 0x2e7   :  { %v1767_v47 = vrot.slane %v6513_v3, 4  ;;  %v1691_v58 = vadd.f32 %v1690_v20, %v1689_v48  ;;  %v1850_v33 = vmul.f32 %v6436_v51, %v1834_v60  ;;  %v1700_v50 = vadd.f32 %v1699_v30, %v1698_v21 }
 0x2e8   :  { %v5068_v34 = vpop.eup %5067  ;;  %v1725_v28 = vadd.f32 %v1724_v38, %v1723_v2  ;;  %v6529_v25 = vadd.f32 %v1601_v31, %v1600_v52  ;;  %v1620_v17 = vrot.slane %v1619_v32, 2  ;;  %v1709_v9 = vadd.f32 %v1708_v41, %v1707_v39 }
 0x2e9   :  { %v5070_v26 = vpop.eup %5069  ;;  %v1819_v61 = vmul.f32 %v5068_v34, %v6407_v49  ;;  %v1865_v22 = vmul.f32 %v1849_v40, %v6449_v6  ;;  %v1608_v56 = vrot.slane %v6397_v0, 1  ;;  %v1717_v23 = vrot.slane %v1716_v59, 1 }
 0x2ea   :  { %v5072_v48 = vpop.eup %5071  ;;  %v1820_v51 = vmul.f32 %v5070_v26, %v6424_v36  ;;  %v1864_v53 = vmul.f32 %v1848_v19, %v6441_v43  ;;  %v1615_v42 = vrot.slane %v1614_v35, 1  ;;  %v1866_v2 = vmul.f32 %v1850_v33, %v1682_v7 }
 0x2eb   :  { %v5074_v52 = vpop.eup %5073  ;;  %v1821_v29 = vmul.f32 %v5072_v48, %v6459_v62  ;;  %v1835_v21 = vsub.f32 2.0, %v1819_v61  ;;  %v1655_v49 = vmul.f32 %v6478_v55, %v8212_v37  ;;  %v1726_v39 = vrot.slane %v1725_v28, 1 }
 0x2ec   :  { %v5076_v6 = vpop.eup %5075  ;;  %v1822_v11 = vmul.f32 %v5074_v52, %v6490_v12  ;;  %v1836_v5 = vsub.f32 2.0, %v1820_v51  ;;  %v1621_v4 = vadd.f32 %v1620_v17, %v1619_v32  ;;  %v1946_v20 = vsel %vm1945_vm1, %v1865_v22, %v1864_v53 }
 0x2ed   :  { %v1823_v36 = vmul.f32 %v5076_v6, %v6492_v14  ;;  %v1837_v24 = vsub.f32 2.0, %v1821_v29  ;;  %v1851_v43 = vmul.f32 %v5068_v34, %v1835_v21  ;;  %v6542_v60 = vpop.eup %5077  ;;  %v1718_v62 = vadd.f32 %v1717_v23, %v1716_v59 }
 0x2ee   :  { %v1838_v31 = vsub.f32 2.0, %v1822_v11  ;;  %v1852_v30 = vmul.f32 %v5070_v26, %v1836_v5  ;;  %v1783_v55 = vsel %vm484_vm0, %v6383_v54, 0.0  ;;  %v6546_v38 = vpop.eup %5079  ;;  %v1948_v32 = vsel %vm1947_vm2, %v1866_v2, %v1946_v20 }
 0x2ef   :  { %v1839_v45 = vsub.f32 2.0, %v1823_v36  ;;  %v1853_v12 = vmul.f32 %v5072_v48, %v1837_v24  ;;  %v1867_v41 = vmul.f32 %v1851_v43, %v1691_v58  ;;  %v1727_v14 = vadd.f32 %v1726_v39, %v1725_v28 }
 0x2f0   :  { %v1854_v40 = vmul.f32 %v5074_v52, %v1838_v31  ;;  %v1868_v7 = vmul.f32 %v1852_v30, %v1700_v50  ;;  %v1622_v19 = vrot.slane %v1621_v4, 1  ;;  %v1784_v17 = vadd.f32 %v1783_v55, %v6394_v46 }
 0x2f1   :  { %v1855_v33 = vmul.f32 %v5076_v6, %v1839_v45  ;;  %v1869_v34 = vmul.f32 %v1853_v12, %v1709_v9  ;;  %v1950_v59 = vsel %vm1949_vm3, %v1867_v41, %v1948_v32  ;;  %v6553_v61 = vadd.f32 %v1608_v56, %v6397_v0 }
 0x2f2   :  { %v1870_v26 = vmul.f32 %v1854_v40, %v1718_v62  ;;  %v1952_v54 = vsel %vm1951_vm4, %v1868_v7, %v1950_v59  ;;  %v6555_v22 = vadd.f32 %v1615_v42, %v1614_v35  ;;  %v1791_v50 = vsel %vm484_vm0, %v6519_v27, 0.0 }
 0x2f3   :  { %v1871_v58 = vmul.f32 %v1855_v33, %v1727_v14  ;;  %v1954_v28 = vsel %vm1953_vm5, %v1869_v34, %v1952_v54  ;;  %v1792_v9 = vsel %vm484_vm0, %v1655_v49, 0.0  ;;  %v5082_v48 = vpop.eup %5081  ;;  %v6562_v46 = vadd.f32 %v1622_v19, %v1621_v4 }
 0x2f4   :  { %v1956_v23 = vsel %vm1955_vm6, %v1870_v26, %v1954_v28  ;;  %v1776_v51 = vrot.slane %v6369_v8, 4  ;;  %v1793_v53 = vadd.f32 %v1792_v9, %v1791_v50  ;;  %v1785_v35 = vrot.slane %v1784_v17, 4 }
 0x2f5   :  { %v1958_v0 = vsel %vm1957_vm7, %v1871_v58, %v1956_v23  ;;  %5083 = vrcp.f32 %v6529_v25  ;;  %v1733_v56 = vrot.slane %v6455_v44, 2  ;;  %v1742_v42 = vrot.slane %v6457_v10, 2 }
 0x2f6   :  { %4864 = vmatprep.mubr.msk.f32.mxu1 %vm484_vm0, %v1958_v0  ;;  %v1794_v27 = vrot.slane %v1793_v53, 4  ;;  %5085 = vrcp.f32 %v6553_v61  ;;  %v1751_v52 = vrot.slane %v6462_v1, 2  ;;  %v1760_v29 = vrot.slane %v6515_v18, 2 }
 0x2f7   :  { %v1768_v21 = vadd.f32 %v1767_v47, %v6513_v3  ;;  %5087 = vrcp.f32 %v6555_v22  ;;  %v1824_v2 = vmul.f32 %v6507_v16, %v6447_v13  ;;  %v1825_v37 = vmul.f32 %v6542_v60, %v6468_v57 }
 0x2f8   :  { %v1777_v49 = vadd.f32 %v1776_v51, %v6369_v8  ;;  %5089 = vrcp.f32 %v6562_v46  ;;  %v1786_v6 = vadd.f32 %v1785_v35, %v1784_v17  ;;  %v1826_v39 = vmul.f32 %v6546_v38, %v6470_v63 }
 0x2f9   :  { %v1734_v11 = vadd.f32 %v1733_v56, %v6455_v44  ;;  %v1743_v3 = vadd.f32 %v1742_v42, %v6457_v10  ;;  %v1795_v47 = vadd.f32 %v1794_v27, %v1793_v53  ;;  %v1827_v5 = vmul.f32 %v5082_v48, %v6511_v15 }
 0x2fa   :  { %v1752_v13 = vadd.f32 %v1751_v52, %v6462_v1  ;;  %v1761_v4 = vadd.f32 %v1760_v29, %v6515_v18  ;;  %v1769_v57 = vrot.slane %v1768_v21, 2  ;;  %v1840_v36 = vsub.f32 2.0, %v1824_v2 }
 0x2fb   :  { %v1841_v8 = vsub.f32 2.0, %v1825_v37  ;;  %v1778_v24 = vrot.slane %v1777_v49, 2  ;;  %v1787_v43 = vrot.slane %v1786_v6, 2  ;;  %v1842_v20 = vsub.f32 2.0, %v1826_v39 }
 0x2fc   :  { %v1735_v62 = vrot.slane %v1734_v11, 1  ;;  %v1744_v31 = vrot.slane %v1743_v3, 1  ;;  %v1796_v63 = vrot.slane %v1795_v47, 2  ;;  %v1843_v30 = vsub.f32 2.0, %v1827_v5 }
 0x2fd   :  { %v1753_v44 = vrot.slane %v1752_v13, 1  ;;  %v1762_v55 = vrot.slane %v1761_v4, 1  ;;  %v1770_v10 = vadd.f32 %v1769_v57, %v1768_v21  ;;  %v1779_v45 = vadd.f32 %v1778_v24, %v1777_v49  ;;  %v8213_v57 = vld [vmem:[#allocation5_spill] sm:$0xff] }
 0x2fe   :  { %v1856_v15 = vmul.f32 %v6507_v16, %v1840_v36  ;;  %v1857_v1 = vmul.f32 %v6542_v60, %v1841_v8  ;;  %v1788_v12 = vadd.f32 %v1787_v43, %v1786_v6  ;;  %v1858_v18 = vmul.f32 %v6546_v38, %v1842_v20  ;;  %v5413_v43 = vld [vmem:[%s8038_s3] sm:$0xff] }
 0x2ff   :  { %v1736_v32 = vadd.f32 %v1735_v62, %v1734_v11  ;;  %v1745_v14 = vadd.f32 %v1744_v31, %v1743_v3  ;;  %v1797_v40 = vadd.f32 %v1796_v63, %v1795_v47  ;;  %v1859_v7 = vmul.f32 %v5082_v48, %v1843_v30  ;;  %v8215_v30 = vld [vmem:[#allocation19_spill] sm:$0xff] }
 0x300   :  { %v1754_v33 = vadd.f32 %v1753_v44, %v1752_v13  ;;  %v1763_v34 = vadd.f32 %v1762_v55, %v1761_v4  ;;  %v1771_v59 = vrot.slane %v1770_v10, 1  ;;  %v1780_v54 = vrot.slane %v1779_v45, 1  ;;  %v5412_v4 = vld [vmem:[%s8038_s3 + $0x8] sm:$0xff] }
 0x301   :  { %v1872_v58 = vmul.f32 %v1856_v15, %v1736_v32  ;;  %v1873_v60 = vmul.f32 %v1857_v1, %v1745_v14  ;;  %v1789_v50 = vrot.slane %v1788_v12, 1  ;;  %v1798_v51 = vrot.slane %v1797_v40, 1 }
 0x302   :  { %v5084_v41 = vpop.eup %5083  ;;  %v1874_v23 = vmul.f32 %v1858_v18, %v1754_v33  ;;  %v1875_v0 = vmul.f32 %v1859_v7, %v1763_v34  ;;  %v1772_v35 = vadd.f32 %v1771_v59, %v1770_v10  ;;  %v1781_v42 = vadd.f32 %v1780_v54, %v1779_v45 }
 0x303   :  { %v5086_v19 = vpop.eup %5085  ;;  %v1828_v17 = vmul.f32 %v5084_v41, %v6529_v25  ;;  %v1790_v29 = vadd.f32 %v1789_v50, %v1788_v12  ;;  %v1799_v37 = vadd.f32 %v1798_v51, %v1797_v40  ;;  %v8214_v36 = vsub.s32 2, %v8213_v57  ;;  %v8216_v12 = vld [vmem:[#allocation6_spill] sm:$0xff] }
 0x304   :  { %v5088_v26 = vpop.eup %5087  ;;  %v1829_v16 = vmul.f32 %v5086_v19, %v6553_v61  ;;  %v1959_v61 = vsel %vm1945_vm1, %v1873_v60, %v1872_v58  ;;  %v1927_v24 = vsub.s32 7, %v8213_v57 }
 0x305   :  { %v5090_v28 = vpop.eup %5089  ;;  %v1830_v38 = vmul.f32 %v5088_v26, %v6555_v22  ;;  %v1844_v9 = vsub.f32 2.0, %v1828_v17  ;;  %v1960_v22 = vsel %vm1947_vm2, %v1874_v23, %v1959_v61  ;;  %v2324_v8 = vrot.slane %v5412_v4, %v8214_v36  ;;  %v8219_v36 = vld [vmem:[#allocation11_spill] sm:$0xff] }
 0x306   :  { %v1831_v48 = vmul.f32 %v5090_v28, %v6562_v46  ;;  %v1845_v53 = vsub.f32 2.0, %v1829_v16  ;;  %v1961_v46 = vsel %vm1949_vm3, %v1875_v0, %v1960_v22  ;;  %v1928_v20 = vrot.slane %v5413_v43, %v1927_v24  ;;  %v8220_v24 = vld [vmem:[#allocation8_spill] sm:$0xff] }
 0x307   :  { %v1846_v56 = vsub.f32 2.0, %v1830_v38  ;;  %v1860_v25 = vmul.f32 %v5084_v41, %v1844_v9  ;;  %2326 = vrot.lane.b32.xlu0 %v2324_v8, %s5447_s22 }
 0x308   :  { %v1847_v27 = vsub.f32 2.0, %v1831_v48  ;;  %v1861_v52 = vmul.f32 %v5086_v19, %v1845_v53 }
 0x309   :  { %v1862_v21 = vmul.f32 %v5088_v26, %v1846_v56  ;;  %v1876_v2 = vmul.f32 %v1860_v25, %v1772_v35 }
 0x30a   :  { %v1863_v49 = vmul.f32 %v5090_v28, %v1847_v27  ;;  %v1877_v6 = vmul.f32 %v1861_v52, %v1781_v42 }
 0x30b   :  { %v1878_v39 = vmul.f32 %v1862_v21, %v1790_v29  ;;  %v1962_v11 = vsel %vm1951_vm4, %v1876_v2, %v1961_v46  ;;  %v8217_v46 = vld [vmem:[#allocation31_spill] sm:$0xff] }
 0x30c   :  { %v1879_v3 = vmul.f32 %v1863_v49, %v1799_v37  ;;  %v1963_v47 = vsel %vm1953_vm5, %v1877_v6, %v1962_v11  ;;  %v6659_v49 = vpop.permute.xlu0 %1885  ;;  %v8218_v11 = vld [vmem:[#allocation30_spill] sm:$0xff] }
 0x30d   :  { %v1964_v5 = vsel %vm1955_vm6, %v1878_v39, %v1963_v47  ;;  %v6665_v39 = vadd.f32 %v6659_v49, %v8217_v46  ;;  %v6675_v8 = vadd.f32 %v6659_v49, %v8219_v36  ;;  %v6679_v43 = vadd.f32 %v8220_v24, %v6659_v49 }
 0x30e   :  { %v1965_v13 = vsel %vm1957_vm7, %v1879_v3, %v1964_v5  ;;  %v6669_v3 = vadd.f32 %v8218_v11, %v6659_v49 }
 0x30f   :  { %4865 = vmatmul.mubr.msk.f32.vlgmr.msra.gmra.mxu1 %vm484_vm0, %v1965_v13 }
 0x379   :  { %v6661_v6 = vpop.permute.xlu0 %2326 }
 0x3cf   :  { %v4866_v62 = vpop.f32.mrf.mxu1 }
 0x3d0   :  { %v2042_v31 = vadd.f32 %v4866_v62, %v1928_v20 }
 0x3d1   :  { %v2036_v63 = vpop.f32.mrf.mxu1 }
 0x3d2   :  { %v2103_v44 = vrot.slane %v2042_v31, %v8215_v30  ;;  %v2037_v55 = vadd.f32 %v2036_v63, %v1928_v20  ;;  %v2096_v15 = vcombine.high %v2042_v31, %v2042_v31  ;;  %v8221_v20 = vld [vmem:[#allocation35_spill] sm:$0xff]  ;;  %v8222_v63 = vld [vmem:[#allocation32_spill] sm:$0xff] }
 0x3d3   :  { %v6683_v62 = vadd.f32 %v6659_v49, %v8221_v20 }
 0x3d4   :  { %v2111_v10 = vcombine.high %v2103_v44, %v2103_v44  ;;  %v2119_v45 = vrot.slane %v2103_v44, %v8215_v30  ;;  %v2054_v1 = vrot.slane %v2037_v55, %v8215_v30  ;;  %v2047_v41 = vcombine.high %v2037_v55, %v2037_v55 }
 0x3d5   :  { %v2110_v7 = vrot.slane %v2096_v15, %v8215_v30  ;;  %v6687_v44 = vadd.f32 %v8222_v63, %v6659_v49 }
 0x3d6   :  { %v2180_v18 = vrot.slane %v2119_v45, %v8216_v12  ;;  %v2062_v32 = vcombine.high %v2054_v1, %v2054_v1  ;;  %v2070_v14 = vrot.slane %v2054_v1, %v8215_v30  ;;  %v2133_v40 = vrot.slane %v2111_v10, %v8215_v30 }
 0x3d7   :  { %v2141_v33 = vcombine.high %v2119_v45, %v2119_v45  ;;  %v2061_v34 = vrot.slane %v2047_v41, %v8215_v30  ;;  %v2126_v26 = vrot.slane %v2110_v7, %v8215_v30  ;;  %v2112_v23 = vcombine.high %v2110_v7, %v2110_v7 }
 0x3d8   :  { %2225 = vrot.lane.b32.xlu1 %v2180_v18, %s5447_s22  ;;  %v2184_v19 = vrot.slane %v2133_v40, %v8216_v12  ;;  %v2084_v59 = vrot.slane %v2062_v32, %v8215_v30  ;;  %v2148_v17 = vrot.slane %v2070_v14, %v8216_v12  ;;  %v2092_v60 = vcombine.high %v2070_v14, %v2070_v14  ;;  %v8223_v18 = vld [vmem:[#allocation39_spill] sm:$0xff]  ;;  %v8224_v32 = vld [vmem:[#allocation37_spill] sm:$0xff] }
 0x3d9   :  { %v2188_v54 = vrot.slane %v2141_v33, %v8216_v12  ;;  %v2077_v16 = vrot.slane %v2061_v34, %v8215_v30  ;;  %v2196_v28 = vrot.slane %v2126_v26, %v8216_v12  ;;  %v2063_v50 = vcombine.high %v2061_v34, %v2061_v34  ;;  %v8225_v33 = vld [vmem:[#allocation45_spill] sm:$0xff] }
 0x3da   :  { %2227 = vrot.lane.b32.xlu0 %v2184_v19, %s5447_s22  ;;  %v2152_v58 = vrot.slane %v2084_v59, %v8216_v12  ;;  %v2094_v38 = vcombine.high %v2084_v59, %v2084_v59  ;;  %v2143_v51 = vcombine.high %v2133_v40, %v2133_v40  ;;  %v2156_v48 = vrot.slane %v2092_v60, %v8216_v12  ;;  %v8226_v59 = vld [vmem:[#allocation42_spill] sm:$0xff]  ;;  %v8227_v60 = vld [vmem:[#allocation15_spill] sm:$0xff] }
 0x3db   :  { %v2164_v9 = vrot.slane %v2077_v16, %v8216_v12  ;;  %v2091_v53 = vrot.slane %v2063_v50, %v8215_v30  ;;  %v2140_v35 = vrot.slane %v2112_v23, %v8215_v30  ;;  %v2093_v25 = vcombine.high %v2077_v16, %v2077_v16 }
 0x3dc   :  { %2209 = vrot.lane.b32.xlu1 %v2148_v17, %s5447_s22  ;;  %v2160_v0 = vrot.slane %v2094_v38, %v8216_v12  ;;  %v2192_v56 = vrot.slane %v2143_v51, %v8216_v12  ;;  %v2142_v27 = vcombine.high %v2126_v26, %v2126_v26  ;;  %v6695_v41 = vadd.f32 %v6659_v49, %v8223_v18  ;;  %v8228_v38 = vld [vmem:[#allocation12_spill] sm:$0xff] }
 0x3dd   :  { %v2168_v42 = vrot.slane %v2091_v53, %v8216_v12  ;;  %v2200_v52 = vrot.slane %v2140_v35, %v8216_v12  ;;  %v2172_v61 = vrot.slane %v2093_v25, %v8216_v12  ;;  %v2144_v29 = vcombine.high %v2140_v35, %v2140_v35  ;;  %v8229_v35 = vld [vmem:[#allocation18_spill] sm:$0xff] }
 0x3de   :  { %2229 = vrot.lane.b32.xlu0 %v2188_v54, %s5447_s22  ;;  %v2204_v21 = vrot.slane %v2142_v27, %v8216_v12  ;;  %v2095_v22 = vcombine.high %v2091_v53, %v2091_v53  ;;  %v6699_v14 = vadd.f32 %v8224_v32, %v6659_v49  ;;  %v6705_v34 = vadd.f32 %v6659_v49, %v8225_v33 }
 0x3df   :  { %v2208_v2 = vrot.slane %v2144_v29, %v8216_v12  ;;  %v6709_v17 = vadd.f32 %v8226_v59, %v6659_v49 }
 0x3e0   :  { %2211 = vrot.lane.b32.xlu1 %v2152_v58, %s5447_s22  ;;  %v2176_v37 = vrot.slane %v2095_v22, %v8216_v12 }
 0x3e2   :  { %2233 = vrot.lane.b32.xlu0 %v2196_v28, %s5447_s22  ;;  %v6715_v28 = vadd.f32 %v6659_v49, %v8227_v60 }
 0x3e4   :  { %2217 = vrot.lane.b32.xlu1 %v2164_v9, %s5447_s22  ;;  %v6719_v9 = vadd.f32 %v8228_v38, %v6659_v49 }
 0x3e6   :  { %2213 = vrot.lane.b32.xlu0 %v2156_v48, %s5447_s22 }
 0x3e8   :  { %2215 = vrot.lane.b32.xlu1 %v2160_v0, %s5447_s22 }
 0x3ea   :  { %2231 = vrot.lane.b32.xlu0 %v2192_v56, %s5447_s22  ;;  %v6728_v56 = vadd.f32 %v6659_v49, %v8229_v35 }
 0x3ec   :  { %2219 = vrot.lane.b32.xlu1 %v2168_v42, %s5447_s22  ;;  %v8230_v42 = vld [vmem:[#allocation17_spill] sm:$0xff] }
 0x3ed   :  { %v6733_v27 = vadd.f32 %v8230_v42, %v6659_v49 }
 0x3ee   :  { %2235 = vrot.lane.b32.xlu0 %v2200_v52, %s5447_s22 }
 0x3f0   :  { %2221 = vrot.lane.b32.xlu1 %v2172_v61, %s5447_s22 }
 0x3f2   :  { %2237 = vrot.lane.b32.xlu0 %v2204_v21, %s5447_s22 }
 0x3f4   :  { %2239 = vrot.lane.b32.xlu1 %v2208_v2, %s5447_s22 }
 0x3f8   :  { %2223 = vrot.lane.b32.xlu1 %v2176_v37, %s5447_s22 }
 0x44a   :  { %v2226_v47 = vpop.permute.xlu1 %2225 }
 0x44b   :  { %v2273_v5 = vadd.f32 %v2226_v47, %v6665_v39  ;;  %v2274_v13 = vadd.f32 %v2226_v47, %v6669_v3 }
 0x44c   :  { %v2228_v4 = vpop.permute.xlu0 %2227 }
 0x44d   :  { %5091 = vtanh.f32 %v2273_v5  ;;  %v2275_v45 = vadd.f32 %v2228_v4, %v6683_v62  ;;  %v2276_v15 = vadd.f32 %v2228_v4, %v6687_v44 }
 0x44e   :  { %5093 = vtanh.f32 %v2274_v13  ;;  %v2210_v31 = vpop.permute.xlu1 %2209  ;;  %v8231_v13 = vld [vmem:[#allocation23_spill] sm:$0xff] }
 0x44f   :  { %v2257_v55 = vadd.f32 %v2210_v31, %v6675_v8  ;;  %v2258_v10 = vadd.f32 %v2210_v31, %v6679_v43  ;;  %v6741_v4 = vadd.f32 %v6659_v49, %v8231_v13  ;;  %v8232_v31 = vld [vmem:[#allocation22_spill] sm:$0xff] }
 0x450   :  { %v2230_v1 = vpop.permute.xlu0 %2229 }
 0x451   :  { %5095 = vtanh.f32 %v2257_v55  ;;  %v2277_v40 = vadd.f32 %v2230_v1, %v6695_v41  ;;  %v2278_v7 = vadd.f32 %v2230_v1, %v6699_v14  ;;  %v6746_v55 = vadd.f32 %v8232_v31, %v6659_v49 }
 0x452   :  { %5097 = vtanh.f32 %v2258_v10  ;;  %v2212_v54 = vpop.permute.xlu1 %2211 }
 0x453   :  { %5099 = vtanh.f32 %v2275_v45  ;;  %v2259_v48 = vadd.f32 %v2212_v54, %v6715_v28  ;;  %v2260_v0 = vadd.f32 %v2212_v54, %v6719_v9  ;;  %v8234_v54 = vld [vmem:[#allocation40_spill] sm:$0xff] }
 0x454   :  { %5101 = vtanh.f32 %v2276_v15  ;;  %v2234_v19 = vpop.permute.xlu0 %2233 }
 0x455   :  { %5103 = vtanh.f32 %v2277_v40  ;;  %v2281_v26 = vadd.f32 %v2234_v19, %v6705_v34  ;;  %v2282_v16 = vadd.f32 %v2234_v19, %v6709_v17  ;;  %v8233_v19 = vld [vmem:[#allocation41_spill] sm:$0xff] }
 0x456   :  { %5105 = vtanh.f32 %v2278_v7  ;;  %v2218_v2 = vpop.permute.xlu1 %2217 }
 0x457   :  { %5107 = vtanh.f32 %v2281_v26  ;;  %v2265_v10 = vadd.f32 %v2218_v2, %v6741_v4  ;;  %v2266_v1 = vadd.f32 %v2218_v2, %v6746_v55  ;;  %v6755_v26 = vadd.f32 %v6659_v49, %v8233_v19 }
 0x458   :  { %v2214_v23 = vpop.permute.xlu0 %2213  ;;  %5109 = vtanh.f32 %v2282_v16  ;;  %v6760_v16 = vadd.f32 %v8234_v54, %v6659_v49  ;;  %v8244_v54 = vld [vmem:[#allocation27_spill] sm:$0xff] }
 0x459   :  { %5111 = vtanh.f32 %v2259_v48  ;;  %v2261_v61 = vadd.f32 %v2214_v23, %v6728_v56  ;;  %v2262_v22 = vadd.f32 %v2214_v23, %v6733_v27 }
 0x45a   :  { %v5092_v58 = vpop.eup %5091  ;;  %5113 = vtanh.f32 %v2260_v0  ;;  %v2216_v48 = vpop.permute.xlu1 %2215 }
 0x45b   :  { %v5094_v50 = vpop.eup %5093  ;;  %v2345_v51 = vmul.f32 %v5092_v58, %v6661_v6  ;;  %5115 = vtanh.f32 %v2261_v61 }
 0x45c   :  { %v2346_v53 = vmul.f32 %v5094_v50, %v6661_v6  ;;  %v2232_v37 = vpop.permute.xlu0 %2231  ;;  %5117 = vtanh.f32 %v2262_v22 }
 0x45d   :  { %2425 = vrot.lane.b32.xlu1 %v2345_v51, %s5448_s9  ;;  %5119 = vtanh.f32 %v2265_v10  ;;  %v2279_v50 = vadd.f32 %v2232_v37, %v6755_v26 }
 0x45e   :  { %2427 = vrot.lane.b32.xlu0 %v2346_v53, %s5448_s9  ;;  %v5096_v25 = vpop.eup %5095  ;;  %5121 = vtanh.f32 %v2266_v1  ;;  %v2280_v53 = vadd.f32 %v2232_v37, %v6760_v16 }
 0x45f   :  { %v5098_v52 = vpop.eup %5097  ;;  %v2329_v29 = vmul.f32 %v5096_v25, %v6661_v6  ;;  %5123 = vtanh.f32 %v2279_v50 }
 0x460   :  { %v5100_v21 = vpop.eup %5099  ;;  %v2330_v47 = vmul.f32 %v5098_v52, %v6661_v6  ;;  %v2236_v58 = vpop.permute.xlu0 %2235  ;;  %v8235_v52 = vld [vmem:[#allocation9_spill] sm:$0xff]  ;;  %5125 = vtanh.f32 %v2280_v53 }
 0x461   :  { %v5102_v5 = vpop.eup %5101  ;;  %2393 = vrot.lane.b32.xlu1 %v2329_v29, %s5448_s9  ;;  %v2347_v45 = vmul.f32 %v5100_v21, %v6661_v6  ;;  %v6769_v61 = vadd.f32 %v6659_v49, %v8235_v52  ;;  %v8236_v29 = vld [vmem:[#allocation7_spill] sm:$0xff] }
 0x462   :  { %2395 = vrot.lane.b32.xlu0 %v2330_v47, %s5448_s9  ;;  %v5104_v15 = vpop.eup %5103  ;;  %v2348_v40 = vmul.f32 %v5102_v5, %v6661_v6  ;;  %v6774_v21 = vadd.f32 %v8236_v29, %v6659_v49 }
 0x463   :  { %v5106_v7 = vpop.eup %5105  ;;  %v2349_v23 = vmul.f32 %v5104_v15, %v6661_v6  ;;  %v2283_v2 = vadd.f32 %v2236_v58, %v6769_v61  ;;  %v8237_v15 = vld [vmem:[#allocation13_spill] sm:$0xff] }
 0x464   :  { %v5108_v51 = vpop.eup %5107  ;;  %v2350_v0 = vmul.f32 %v5106_v7, %v6661_v6  ;;  %v2284_v47 = vadd.f32 %v2236_v58, %v6774_v21  ;;  %v2238_v5 = vpop.permute.xlu0 %2237  ;;  %v6783_v1 = vadd.f32 %v6659_v49, %v8237_v15  ;;  %v8238_v7 = vld [vmem:[#allocation10_spill] sm:$0xff] }
 0x465   :  { %2429 = vrot.lane.b32.xlu1 %v2347_v45, %s5448_s9  ;;  %v5110_v25 = vpop.eup %5109  ;;  %v2353_v22 = vmul.f32 %v5108_v51, %v6661_v6  ;;  %v6788_v50 = vadd.f32 %v8238_v7, %v6659_v49  ;;  %5127 = vtanh.f32 %v2283_v2 }
 0x466   :  { %2431 = vrot.lane.b32.xlu0 %v2348_v40, %s5448_s9  ;;  %v5112_v37 = vpop.eup %5111  ;;  %v2354_v10 = vmul.f32 %v5110_v25, %v6661_v6  ;;  %v2220_v40 = vpop.permute.xlu1 %2219  ;;  %v2285_v58 = vadd.f32 %v2238_v5, %v6783_v1  ;;  %5129 = vtanh.f32 %v2284_v47 }
 0x467   :  { %v5114_v45 = vpop.eup %5113  ;;  %8239 = vst [vmem:[#allocation34_spill] sm:$0xff] %v6788_v50  ;;  %v2286_v53 = vadd.f32 %v2238_v5, %v6788_v50 }
 0x468   :  { %v5116_v51 = vpop.eup %5115  ;;  %5131 = vtanh.f32 %v2285_v58 }
 0x469   :  { %2433 = vrot.lane.b32.xlu1 %v2349_v23, %s5448_s9  ;;  %v2331_v23 = vmul.f32 %v5112_v37, %v6661_v6  ;;  %v5118_v25 = vpop.eup %5117  ;;  %v2333_v47 = vmul.f32 %v5116_v51, %v6661_v6  ;;  %5133 = vtanh.f32 %v2286_v53 }
 0x46a   :  { %2435 = vrot.lane.b32.xlu0 %v2350_v0, %s5448_s9  ;;  %v2332_v0 = vmul.f32 %v5114_v45, %v6661_v6  ;;  %v5120_v5 = vpop.eup %5119  ;;  %v2222_v7 = vpop.permute.xlu1 %2221 }
 0x46b   :  { %v5122_v29 = vpop.eup %5121  ;;  %v2337_v58 = vmul.f32 %v5120_v5, %v6661_v6 }
 0x46c   :  { %v5124_v51 = vpop.eup %5123 }
 0x46d   :  { %2441 = vrot.lane.b32.xlu1 %v2353_v22, %s5448_s9  ;;  %v8240_v22 = vld [vmem:[#allocation21_spill] sm:$0xff] }
 0x46e   :  { %2443 = vrot.lane.b32.xlu0 %v2354_v10, %s5448_s9  ;;  %v6797_v15 = vadd.f32 %v6659_v49, %v8240_v22  ;;  %v8241_v10 = vld [vmem:[#allocation20_spill] sm:$0xff]  ;;  %v2334_v22 = vmul.f32 %v5118_v25, %v6661_v6  ;;  %v2338_v25 = vmul.f32 %v5122_v29, %v6661_v6 }
 0x46f   :  { %v6802_v2 = vadd.f32 %v8241_v10, %v6659_v49 }
 0x470   :  { %v2263_v37 = vadd.f32 %v2216_v48, %v6797_v15 }
 0x471   :  { %2397 = vrot.lane.b32.xlu1 %v2331_v23, %s5448_s9  ;;  %v2264_v45 = vadd.f32 %v2216_v48, %v6802_v2  ;;  %v8242_v23 = vld [vmem:[#allocation25_spill] sm:$0xff] }
 0x472   :  { %2399 = vrot.lane.b32.xlu0 %v2332_v0, %s5448_s9  ;;  %v6811_v52 = vadd.f32 %v6659_v49, %v8242_v23  ;;  %v8243_v0 = vld [vmem:[#allocation24_spill] sm:$0xff]  ;;  %5135 = vtanh.f32 %v2263_v37  ;;  %v5126_v23 = vpop.eup %5125 }
 0x473   :  { %v6816_v10 = vadd.f32 %v8243_v0, %v6659_v49  ;;  %5137 = vtanh.f32 %v2264_v45  ;;  %v2240_v0 = vpop.permute.xlu1 %2239  ;;  %v5128_v29 = vpop.eup %5127 }
 0x474   :  { %v2267_v48 = vadd.f32 %v2220_v40, %v6811_v52  ;;  %v5130_v19 = vpop.eup %5129 }
 0x475   :  { %2401 = vrot.lane.b32.xlu1 %v2333_v47, %s5448_s9  ;;  %v2268_v53 = vadd.f32 %v2220_v40, %v6816_v10  ;;  %v6825_v47 = vadd.f32 %v6659_v49, %v8244_v54  ;;  %v2351_v40 = vmul.f32 %v5124_v51, %v6661_v6  ;;  %v2352_v54 = vmul.f32 %v5126_v23, %v6661_v6 }
 0x476   :  { %2403 = vrot.lane.b32.xlu0 %v2334_v22, %s5448_s9  ;;  %v8245_v22 = vld [vmem:[#allocation26_spill] sm:$0xff]  ;;  %5139 = vtanh.f32 %v2267_v48 }
 0x477   :  { %v6830_v37 = vadd.f32 %v8245_v22, %v6659_v49  ;;  %v2269_v5 = vadd.f32 %v2222_v7, %v6825_v47  ;;  %5141 = vtanh.f32 %v2268_v53  ;;  %v5132_v53 = vpop.eup %5131  ;;  %v2224_v22 = vpop.permute.xlu1 %2223 }
 0x478   :  { %v5134_v13 = vpop.eup %5133 }
 0x479   :  { %2409 = vrot.lane.b32.xlu1 %v2337_v58, %s5448_s9  ;;  %v2270_v45 = vadd.f32 %v2222_v7, %v6830_v37  ;;  %v8246_v58 = vld [vmem:[#allocation16_spill] sm:$0xff]  ;;  %5143 = vtanh.f32 %v2269_v5  ;;  %v2355_v7 = vmul.f32 %v5128_v29, %v6661_v6 }
 0x47a   :  { %2411 = vrot.lane.b32.xlu0 %v2338_v25, %s5448_s9  ;;  %v6839_v31 = vadd.f32 %v6659_v49, %v8246_v58  ;;  %v8248_v25 = vld [vmem:[#allocation14_spill] sm:$0xff]  ;;  %v2356_v58 = vmul.f32 %v5130_v19, %v6661_v6 }
 0x47b   :  { %v6844_v48 = vadd.f32 %v8248_v25, %v6659_v49  ;;  %5145 = vtanh.f32 %v2270_v45 }
 0x47c   :  { %8247 = vst [vmem:[#allocation38_spill] sm:$0xff] %v6839_v31  ;;  %v2287_v51 = vadd.f32 %v2240_v0, %v6839_v31 }
 0x47d   :  { %2437 = vrot.lane.b32.xlu1 %v2351_v40, %s5448_s9  ;;  %8249 = vst [vmem:[#allocation44_spill] sm:$0xff] %v6844_v48  ;;  %v2288_v23 = vadd.f32 %v2240_v0, %v6844_v48  ;;  %v8250_v40 = vld [vmem:[#allocation29_spill] sm:$0xff]  ;;  %v2357_v0 = vmul.f32 %v5132_v53, %v6661_v6 }
 0x47e   :  { %2439 = vrot.lane.b32.xlu0 %v2352_v54, %s5448_s9  ;;  %v6853_v42 = vadd.f32 %v6659_v49, %v8250_v40  ;;  %v8251_v54 = vld [vmem:[#allocation28_spill] sm:$0xff]  ;;  %5147 = vtanh.f32 %v2287_v51  ;;  %v2358_v40 = vmul.f32 %v5134_v13, %v6661_v6 }
 0x47f   :  { %v6858_v5 = vadd.f32 %v8251_v54, %v6659_v49  ;;  %v5136_v45 = vpop.eup %5135  ;;  %5149 = vtanh.f32 %v2288_v23 }
 0x480   :  { %v2271_v29 = vadd.f32 %v2224_v22, %v6853_v42  ;;  %v5138_v25 = vpop.eup %5137  ;;  %v2335_v49 = vmul.f32 %v5136_v45, %v6661_v6 }
 0x481   :  { %2445 = vrot.lane.b32.xlu1 %v2355_v7, %s5448_s9  ;;  %8252 = vst [vmem:[#allocation43_spill] sm:$0xff] %v6858_v5  ;;  %v2272_v19 = vadd.f32 %v2224_v22, %v6858_v5  ;;  %v2336_v51 = vmul.f32 %v5138_v25, %v6661_v6 }
 0x482   :  { %2447 = vrot.lane.b32.xlu0 %v2356_v58, %s5448_s9  ;;  %5151 = vtanh.f32 %v2271_v29 }
 0x483   :  { %v5140_v58 = vpop.eup %5139  ;;  %5153 = vtanh.f32 %v2272_v19 }
 0x484   :  { %v5142_v7 = vpop.eup %5141  ;;  %v2339_v22 = vmul.f32 %v5140_v58, %v6661_v6 }
 0x485   :  { %2449 = vrot.lane.b32.xlu1 %v2357_v0, %s5448_s9  ;;  %v2340_v53 = vmul.f32 %v5142_v7, %v6661_v6 }
 0x486   :  { %2451 = vrot.lane.b32.xlu0 %v2358_v40, %s5448_s9  ;;  %v5144_v13 = vpop.eup %5143 }
 0x487   :  { %v2341_v40 = vmul.f32 %v5144_v13, %v6661_v6 }
 0x488   :  { %v5146_v23 = vpop.eup %5145 }
 0x489   :  { %2405 = vrot.lane.b32.xlu1 %v2335_v49, %s5448_s9  ;;  %v2342_v25 = vmul.f32 %v5146_v23, %v6661_v6 }
 0x48a   :  { %2407 = vrot.lane.b32.xlu0 %v2336_v51, %s5448_s9 }
 0x48b   :  { %v5148_v29 = vpop.eup %5147 }
 0x48c   :  { %v5150_v0 = vpop.eup %5149  ;;  %v2359_v45 = vmul.f32 %v5148_v29, %v6661_v6 }
 0x48d   :  { %2413 = vrot.lane.b32.xlu1 %v2339_v22, %s5448_s9  ;;  %v2360_v49 = vmul.f32 %v5150_v0, %v6661_v6 }
 0x48e   :  { %2415 = vrot.lane.b32.xlu0 %v2340_v53, %s5448_s9 }
 0x48f   :  { %v5152_v19 = vpop.eup %5151 }
 0x490   :  { %v5154_v58 = vpop.eup %5153  ;;  %v2343_v51 = vmul.f32 %v5152_v19, %v6661_v6 }
 0x491   :  { %2417 = vrot.lane.b32.xlu1 %v2341_v40, %s5448_s9  ;;  %v2344_v7 = vmul.f32 %v5154_v58, %v6661_v6 }
 0x492   :  { %2419 = vrot.lane.b32.xlu0 %v2342_v25, %s5448_s9 }
 0x495   :  { %2453 = vrot.lane.b32.xlu1 %v2359_v45, %s5448_s9 }
 0x496   :  { %2455 = vrot.lane.b32.xlu0 %v2360_v49, %s5448_s9 }
 0x499   :  { %2421 = vrot.lane.b32.xlu1 %v2343_v51, %s5448_s9 }
 0x49a   :  { %2423 = vrot.lane.b32.xlu0 %v2344_v7, %s5448_s9 }
 0x4cf   :  { %v2426_v22 = vpop.permute.xlu1 %2425 }
 0x4d0   :  { %v2428_v13 = vpop.permute.xlu0 %2427  ;;  %v2537_v53 = vsel %vm484_vm0, %v2426_v22, 0.0 }
 0x4d1   :  { %2538 = vadd.xlane.f32.xlu0 %v2537_v53  ;;  %v2540_v23 = vsel %vm484_vm0, %v2428_v13, 0.0 }
 0x4d2   :  { %2541 = vadd.xlane.f32.xlu1 %v2540_v23 }
 0x4d3   :  { %v2394_v40 = vpop.permute.xlu1 %2393 }
 0x4d4   :  { %v2396_v29 = vpop.permute.xlu0 %2395  ;;  %v2489_v25 = vsel %vm484_vm0, %v2394_v40, 0.0 }
 0x4d5   :  { %v2492_v0 = vsel %vm484_vm0, %v2396_v29, 0.0 }
 0x4d6   :  { %2490 = vadd.xlane.f32.xlu1 %v2489_v25  ;;  %2493 = vadd.xlane.f32.xlu0 %v2492_v0 }
 0x4d7   :  { %v2430_v6 = vpop.permute.xlu1 %2429 }
 0x4d8   :  { %v2432_v45 = vpop.permute.xlu0 %2431  ;;  %v2543_v19 = vsel %vm484_vm0, %v2430_v6, 0.0 }
 0x4d9   :  { %v2546_v49 = vsel %vm484_vm0, %v2432_v45, 0.0 }
 0x4da   :  { %2544 = vadd.xlane.f32.xlu0 %v2543_v19  ;;  %2547 = vadd.xlane.f32.xlu1 %v2546_v49 }
 0x4db   :  { %v2434_v58 = vpop.permute.xlu1 %2433 }
 0x4dc   :  { %v2436_v51 = vpop.permute.xlu0 %2435  ;;  %v2549_v7 = vsel %vm484_vm0, %v2434_v58, 0.0 }
 0x4dd   :  { %v2552_v22 = vsel %vm484_vm0, %v2436_v51, 0.0 }
 0x4de   :  { %2550 = vadd.xlane.f32.xlu0 %v2549_v7  ;;  %2553 = vadd.xlane.f32.xlu1 %v2552_v22 }
 0x4df   :  { %v2442_v13 = vpop.permute.xlu1 %2441 }
 0x4e0   :  { %v2444_v53 = vpop.permute.xlu0 %2443  ;;  %v2561_v23 = vsel %vm484_vm0, %v2442_v13, 0.0 }
 0x4e1   :  { %v2564_v40 = vsel %vm484_vm0, %v2444_v53, 0.0 }
 0x4e2   :  { %2562 = vadd.xlane.f32.xlu0 %v2561_v23  ;;  %2565 = vadd.xlane.f32.xlu1 %v2564_v40 }
 0x4e3   :  { %v2398_v29 = vpop.permute.xlu1 %2397 }
 0x4e4   :  { %v2400_v25 = vpop.permute.xlu0 %2399  ;;  %v2495_v0 = vsel %vm484_vm0, %v2398_v29, 0.0 }
 0x4e5   :  { %v2498_v6 = vsel %vm484_vm0, %v2400_v25, 0.0 }
 0x4e6   :  { %2496 = vadd.xlane.f32.xlu0 %v2495_v0  ;;  %2499 = vadd.xlane.f32.xlu1 %v2498_v6 }
 0x4e7   :  { %v2402_v45 = vpop.permute.xlu1 %2401 }
 0x4e8   :  { %v2404_v19 = vpop.permute.xlu0 %2403  ;;  %v2501_v49 = vsel %vm484_vm0, %v2402_v45, 0.0 }
 0x4e9   :  { %v2504_v58 = vsel %vm484_vm0, %v2404_v19, 0.0 }
 0x4ea   :  { %2502 = vadd.xlane.f32.xlu0 %v2501_v49  ;;  %2505 = vadd.xlane.f32.xlu1 %v2504_v58 }
 0x4eb   :  { %v2410_v51 = vpop.permute.xlu1 %2409 }
 0x4ec   :  { %v2412_v7 = vpop.permute.xlu0 %2411  ;;  %v2513_v22 = vsel %vm484_vm0, %v2410_v51, 0.0 }
 0x4ed   :  { %v2516_v13 = vsel %vm484_vm0, %v2412_v7, 0.0 }
 0x4ee   :  { %2514 = vadd.xlane.f32.xlu0 %v2513_v22  ;;  %2517 = vadd.xlane.f32.xlu1 %v2516_v13 }
 0x4ef   :  { %v2438_v53 = vpop.permute.xlu1 %2437 }
 0x4f0   :  { %v2440_v23 = vpop.permute.xlu0 %2439  ;;  %v2555_v40 = vsel %vm484_vm0, %v2438_v53, 0.0 }
 0x4f1   :  { %v2558_v29 = vsel %vm484_vm0, %v2440_v23, 0.0 }
 0x4f2   :  { %2556 = vadd.xlane.f32.xlu0 %v2555_v40  ;;  %2559 = vadd.xlane.f32.xlu1 %v2558_v29 }
 0x4f3   :  { %v2446_v25 = vpop.permute.xlu1 %2445 }
 0x4f4   :  { %v2448_v0 = vpop.permute.xlu0 %2447  ;;  %v2567_v6 = vsel %vm484_vm0, %v2446_v25, 0.0 }
 0x4f5   :  { %v2570_v45 = vsel %vm484_vm0, %v2448_v0, 0.0 }
 0x4f6   :  { %2568 = vadd.xlane.f32.xlu0 %v2567_v6  ;;  %2571 = vadd.xlane.f32.xlu1 %v2570_v45 }
 0x4f7   :  { %v2450_v19 = vpop.permute.xlu1 %2449 }
 0x4f8   :  { %v2452_v49 = vpop.permute.xlu0 %2451  ;;  %v2573_v58 = vsel %vm484_vm0, %v2450_v19, 0.0 }
 0x4f9   :  { %v2576_v51 = vsel %vm484_vm0, %v2452_v49, 0.0 }
 0x4fa   :  { %2574 = vadd.xlane.f32.xlu0 %v2573_v58  ;;  %2577 = vadd.xlane.f32.xlu1 %v2576_v51 }
 0x4fb   :  { %v2406_v7 = vpop.permute.xlu1 %2405 }
 0x4fc   :  { %v2408_v22 = vpop.permute.xlu0 %2407  ;;  %v2507_v13 = vsel %vm484_vm0, %v2406_v7, 0.0 }
 0x4fd   :  { %v2510_v53 = vsel %vm484_vm0, %v2408_v22, 0.0 }
 0x4fe   :  { %2508 = vadd.xlane.f32.xlu0 %v2507_v13  ;;  %2511 = vadd.xlane.f32.xlu1 %v2510_v53 }
 0x4ff   :  { %v2414_v23 = vpop.permute.xlu1 %2413 }
 0x500   :  { %v2416_v40 = vpop.permute.xlu0 %2415  ;;  %v2519_v29 = vsel %vm484_vm0, %v2414_v23, 0.0 }
 0x501   :  { %v2522_v25 = vsel %vm484_vm0, %v2416_v40, 0.0 }
 0x502   :  { %2520 = vadd.xlane.f32.xlu0 %v2519_v29  ;;  %2523 = vadd.xlane.f32.xlu1 %v2522_v25 }
 0x503   :  { %v2418_v0 = vpop.permute.xlu1 %2417 }
 0x504   :  { %v2420_v6 = vpop.permute.xlu0 %2419  ;;  %v2525_v45 = vsel %vm484_vm0, %v2418_v0, 0.0 }
 0x505   :  { %v2528_v19 = vsel %vm484_vm0, %v2420_v6, 0.0 }
 0x506   :  { %2526 = vadd.xlane.f32.xlu0 %v2525_v45  ;;  %2529 = vadd.xlane.f32.xlu1 %v2528_v19 }
 0x507   :  { %v2454_v49 = vpop.permute.xlu1 %2453 }
 0x508   :  { %v2456_v58 = vpop.permute.xlu0 %2455  ;;  %v2579_v53 = vsel %vm484_vm0, %v2454_v49, 0.0 }
 0x509   :  { %v2582_v23 = vsel %vm484_vm0, %v2456_v58, 0.0 }
 0x50b   :  { %v2422_v51 = vpop.permute.xlu1 %2421 }
 0x50c   :  { %v2424_v7 = vpop.permute.xlu0 %2423  ;;  %v2531_v22 = vsel %vm484_vm0, %v2422_v51, 0.0 }
 0x50d   :  { %2532 = vadd.xlane.f32.xlu0 %v2531_v22  ;;  %v2534_v13 = vsel %vm484_vm0, %v2424_v7, 0.0 }
 0x50e   :  { %2535 = vadd.xlane.f32.xlu1 %v2534_v13 }
 0x511   :  { %2580 = vadd.xlane.f32.xlu0 %v2579_v53 }
 0x512   :  { %2583 = vadd.xlane.f32.xlu1 %v2582_v23 }
 0x55a   :  { %v2539_v40 = vpop.xlane.xlu0 %2538 }
 0x55b   :  { %v2542_v29 = vpop.xlane.xlu1 %2541 }
 0x55c   :  { %v2641_v25 = vmax.f32 %v2539_v40, %v2542_v29 }
 0x55e   :  { %v2642_v0 = vrot.slane %v2641_v25, 4 }
 0x55f   :  { %v2491_v6 = vpop.xlane.xlu1 %2490  ;;  %v2494_v19 = vpop.xlane.xlu0 %2493 }
 0x560   :  { %v2643_v45 = vmax.f32 %v2641_v25, %v2642_v0  ;;  %v2585_v54 = vmax.f32 %v2491_v6, %v2494_v19 }
 0x562   :  { %v2644_v35 = vrot.slane %v2643_v45, 2  ;;  %v2586_v51 = vrot.slane %v2585_v54, 4 }
 0x563   :  { %v2548_v38 = vpop.xlane.xlu1 %2547  ;;  %v2545_v7 = vpop.xlane.xlu0 %2544 }
 0x564   :  { %v2645_v22 = vmax.f32 %v2643_v45, %v2644_v35  ;;  %v2587_v13 = vmax.f32 %v2585_v54, %v2586_v51  ;;  %v2648_v60 = vmax.f32 %v2545_v7, %v2548_v38 }
 0x566   :  { %v2646_v49 = vrot.slane %v2645_v22, 1  ;;  %v2588_v53 = vrot.slane %v2587_v13, 2  ;;  %v2649_v59 = vrot.slane %v2648_v60, 4 }
 0x567   :  { %v2554_v23 = vpop.xlane.xlu1 %2553  ;;  %v2551_v33 = vpop.xlane.xlu0 %2550 }
 0x568   :  { %v2647_v58 = vmax.f32 %v2645_v22, %v2646_v49  ;;  %v2589_v32 = vmax.f32 %v2587_v13, %v2588_v53  ;;  %v2650_v18 = vmax.f32 %v2648_v60, %v2649_v59  ;;  %v2655_v63 = vmax.f32 %v2551_v33, %v2554_v23 }
 0x56a   :  { %v2713_v20 = vsub.f32 %v2539_v40, %v2647_v58  ;;  %v2714_v25 = vsub.f32 %v2542_v29, %v2647_v58  ;;  %v2590_v0 = vrot.slane %v2589_v32, 1  ;;  %v2651_v24 = vrot.slane %v2650_v18, 2 }
 0x56b   :  { %v2656_v36 = vrot.slane %v2655_v63, 4  ;;  %v6919_v45 = vpop.xlane.xlu1 %2565  ;;  %v6921_v54 = vpop.xlane.xlu0 %2562 }
 0x56c   :  { %v2761_v11 = vmul.f32 1.442695, %v2713_v20  ;;  %v2763_v35 = vmul.f32 1.442695, %v2714_v25  ;;  %v2591_v51 = vmax.f32 %v2589_v32, %v2590_v0  ;;  %v2652_v46 = vmax.f32 %v2650_v18, %v2651_v24 }
 0x56d   :  { %v2657_v30 = vmax.f32 %v2655_v63, %v2656_v36  ;;  %v2669_v22 = vmax.f32 %v6921_v54, %v6919_v45 }
 0x56e   :  { %5155 = vpow2.f32 %v2761_v11  ;;  %v2697_v59 = vsub.f32 %v2491_v6, %v2591_v51  ;;  %v2698_v60 = vsub.f32 %v2494_v19, %v2591_v51  ;;  %v2653_v40 = vrot.slane %v2652_v46, 1 }
 0x56f   :  { %5157 = vpow2.f32 %v2763_v35  ;;  %v2658_v29 = vrot.slane %v2657_v30, 2  ;;  %v2670_v13 = vrot.slane %v2669_v22, 4  ;;  %v6925_v49 = vpop.xlane.xlu1 %2499  ;;  %v2497_v20 = vpop.xlane.xlu0 %2496 }
 0x570   :  { %v2729_v53 = vmul.f32 1.442695, %v2697_v59  ;;  %v2731_v58 = vmul.f32 1.442695, %v2698_v60  ;;  %v2654_v25 = vmax.f32 %v2652_v46, %v2653_v40  ;;  %v2592_v32 = vmax.f32 %v2497_v20, %v6925_v49 }
 0x571   :  { %v2659_v24 = vmax.f32 %v2657_v30, %v2658_v29  ;;  %v2671_v36 = vmax.f32 %v2669_v22, %v2670_v13 }
 0x572   :  { %5159 = vpow2.f32 %v2729_v53  ;;  %v2715_v63 = vsub.f32 %v2545_v7, %v2654_v25  ;;  %v2716_v18 = vsub.f32 %v2548_v38, %v2654_v25  ;;  %v2593_v11 = vrot.slane %v2592_v32, 4 }
 0x573   :  { %5161 = vpow2.f32 %v2731_v58  ;;  %v2660_v6 = vrot.slane %v2659_v24, 1  ;;  %v2672_v19 = vrot.slane %v2671_v36, 2  ;;  %v6928_v0 = vpop.xlane.xlu1 %2505  ;;  %v6930_v35 = vpop.xlane.xlu0 %2502 }
 0x574   :  { %v2765_v51 = vmul.f32 1.442695, %v2715_v63  ;;  %v2767_v12 = vmul.f32 1.442695, %v2716_v18  ;;  %v2594_v59 = vmax.f32 %v2592_v32, %v2593_v11  ;;  %v2599_v46 = vmax.f32 %v6930_v35, %v6928_v0 }
 0x575   :  { %v2661_v60 = vmax.f32 %v2659_v24, %v2660_v6  ;;  %v2673_v30 = vmax.f32 %v2671_v36, %v2672_v19 }
 0x576   :  { %5163 = vpow2.f32 %v2765_v51  ;;  %v2595_v22 = vrot.slane %v2594_v59, 2  ;;  %v2600_v7 = vrot.slane %v2599_v46, 4 }
 0x577   :  { %5165 = vpow2.f32 %v2767_v12  ;;  %v2717_v38 = vsub.f32 %v2551_v33, %v2661_v60  ;;  %v2718_v40 = vsub.f32 %v2554_v23, %v2661_v60  ;;  %v2674_v29 = vrot.slane %v2673_v30, 1  ;;  %v6938_v51 = vpop.xlane.xlu1 %2517 }
 0x578   :  { %v2596_v13 = vmax.f32 %v2594_v59, %v2595_v22  ;;  %v2601_v53 = vmax.f32 %v2599_v46, %v2600_v7  ;;  %v6940_v59 = vpop.xlane.xlu0 %2514 }
 0x579   :  { %v2769_v58 = vmul.f32 1.442695, %v2717_v38  ;;  %v2771_v25 = vmul.f32 1.442695, %v2718_v40  ;;  %v2675_v57 = vmax.f32 %v2673_v30, %v2674_v29 }
 0x57a   :  { %v2597_v18 = vrot.slane %v2596_v13, 1  ;;  %v2602_v32 = vrot.slane %v2601_v53, 2 }
 0x57b   :  { %v5156_v63 = vpop.eup %5155  ;;  %5167 = vpow2.f32 %v2769_v58  ;;  %v2721_v36 = vsub.f32 %v6921_v54, %v2675_v57  ;;  %v2722_v12 = vsub.f32 %v6919_v45, %v2675_v57 }
 0x57c   :  { %v5158_v11 = vpop.eup %5157  ;;  %v2921_v24 = vmul.f32 %v5156_v63, %v6665_v39  ;;  %5169 = vpow2.f32 %v2771_v25  ;;  %v2598_v33 = vmax.f32 %v2596_v13, %v2597_v18  ;;  %v2603_v19 = vmax.f32 %v2601_v53, %v2602_v32 }
 0x57d   :  { %v2849_v6 = vadd.f32 %v5158_v11, %v5156_v63  ;;  %v2922_v23 = vmul.f32 %v5158_v11, %v6669_v3  ;;  %v2777_v54 = vmul.f32 1.442695, %v2721_v36  ;;  %v2779_v45 = vmul.f32 1.442695, %v2722_v12  ;;  %v6951_v11 = vpop.xlane.xlu1 %2559 }
 0x57e   :  { %v2699_v60 = vsub.f32 %v2497_v20, %v2598_v33  ;;  %v2700_v30 = vsub.f32 %v6925_v49, %v2598_v33  ;;  %v3010_v22 = vsel %vm2937_vm8, %v2921_v24, 0.0  ;;  %v2604_v7 = vrot.slane %v2603_v19, 1  ;;  %v6953_v24 = vpop.xlane.xlu0 %2556 }
 0x57f   :  { %v2850_v46 = vrot.slane %v2849_v6, 4  ;;  %v5160_v39 = vpop.eup %5159  ;;  %v3011_v29 = vsel %vm2937_vm8, %v2922_v23, 0.0  ;;  %v2613_v25 = vmax.f32 %v6940_v59, %v6938_v51 }
 0x580   :  { %v5162_v38 = vpop.eup %5161  ;;  %v2905_v57 = vmul.f32 %v5160_v39, %v6675_v8  ;;  %v2733_v3 = vmul.f32 1.442695, %v2699_v60  ;;  %v2735_v58 = vmul.f32 1.442695, %v2700_v30  ;;  %v2605_v49 = vmax.f32 %v2603_v19, %v2604_v7 }
 0x581   :  { %v2851_v40 = vadd.f32 %v2850_v46, %v2849_v6  ;;  %v2793_v13 = vadd.f32 %v5162_v38, %v5160_v39  ;;  %v2906_v53 = vmul.f32 %v5162_v38, %v6679_v43  ;;  %v3012_v43 = vadd.f32 %v3011_v29, %v3010_v22 }
 0x582   :  { %5171 = vpow2.f32 %v2733_v3  ;;  %v2938_v32 = vsel %vm2937_vm8, %v2905_v57, 0.0  ;;  %v2701_v12 = vsub.f32 %v6930_v35, %v2605_v49  ;;  %v2702_v39 = vsub.f32 %v6928_v0, %v2605_v49 }
 0x583   :  { %v2852_v20 = vrot.slane %v2851_v40, 2  ;;  %v5164_v63 = vpop.eup %5163  ;;  %v2794_v18 = vrot.slane %v2793_v13, 4  ;;  %v2939_v8 = vsel %vm2937_vm8, %v2906_v53, 0.0  ;;  %5173 = vpow2.f32 %v2735_v58 }
 0x584   :  { %v5166_v36 = vpop.eup %5165  ;;  %v2923_v6 = vmul.f32 %v5164_v63, %v6683_v62  ;;  %5175 = vpow2.f32 %v2777_v54  ;;  %v2940_v60 = vadd.f32 %v2939_v8, %v2938_v32  ;;  %v2737_v57 = vmul.f32 1.442695, %v2701_v12 }
 0x585   :  { %v2795_v33 = vadd.f32 %v2794_v18, %v2793_v13  ;;  %v2856_v23 = vadd.f32 %v5166_v36, %v5164_v63  ;;  %v2924_v19 = vmul.f32 %v5166_v36, %v6687_v44  ;;  %5177 = vpow2.f32 %v2779_v45  ;;  %v6961_v13 = vpop.xlane.xlu1 %2571  ;;  %v6963_v44 = vpop.xlane.xlu0 %2568  ;;  %v4718_v63 = vld [vmem:[%s8037_s2 + $0x58] sm:$0xff]  ;;  %v4717_v18 = vld [vmem:[%s8037_s2 + $0x50] sm:$0xff] }
 0x586   :  { %v2853_v46 = vadd.f32 %v2852_v20, %v2851_v40  ;;  %v3019_v30 = vsel %vm2937_vm8, %v2923_v6, 0.0  ;;  %v2739_v54 = vmul.f32 1.442695, %v2702_v39  ;;  %v2614_v3 = vrot.slane %v2613_v25, 4  ;;  %4867 = vmatprep.subr.mxu1 %v4718_v63 }
 0x587   :  { %v2796_v7 = vrot.slane %v2795_v33, 2  ;;  %v2857_v38 = vrot.slane %v2856_v23, 4  ;;  %v3020_v22 = vsel %vm2937_vm8, %v2924_v19, 0.0  ;;  %v3013_v29 = vrot.slane %v3012_v43, 4  ;;  %4868 = vmatpush3.msra.mxu1 %v4718_v63 }
 0x588   :  { %v5168_v62 = vpop.eup %5167  ;;  %v2854_v40 = vrot.slane %v2853_v46, 1  ;;  %v3021_v45 = vadd.f32 %v3020_v22, %v3019_v30  ;;  %v2941_v20 = vrot.slane %v2940_v60, 4  ;;  %5179 = vpow2.f32 %v2737_v57  ;;  %4869 = vmatprep.subr.mxu1 %v4717_v18 }
 0x589   :  { %v5170_v35 = vpop.eup %5169  ;;  %v2797_v58 = vadd.f32 %v2796_v7, %v2795_v33  ;;  %v2858_v0 = vadd.f32 %v2857_v38, %v2856_v23  ;;  %5181 = vpow2.f32 %v2739_v54  ;;  %v2615_v49 = vmax.f32 %v2613_v25, %v2614_v3  ;;  %v6978_v30 = vpop.xlane.xlu1 %2577  ;;  %4870 = vmatpush3.msra.mxu1 %v4717_v18 }
 0x58a   :  { %v2863_v53 = vadd.f32 %v5170_v35, %v5168_v62  ;;  %v6971_v32 = vadd.f32 %v3013_v29, %v3012_v43  ;;  %v6973_v8 = vadd.f32 %v2854_v40, %v2853_v46  ;;  %v3022_v36 = vrot.slane %v3021_v45, 4  ;;  %v6980_v39 = vpop.xlane.xlu0 %2574 }
 0x58b   :  { %v2798_v33 = vrot.slane %v2797_v58, 1  ;;  %v6975_v23 = vadd.f32 %v2941_v20, %v2940_v60  ;;  %v2859_v25 = vrot.slane %v2858_v0, 2  ;;  %v2925_v19 = vmul.f32 %v5168_v62, %v6695_v41 }
 0x58c   :  { %8253 = vst [vmem:[#allocation33_spill] sm:$0xff] %v6971_v32  ;;  %8254 = vst [vmem:[#allocation47_spill] sm:$0xff] %v6973_v8  ;;  %v2864_v6 = vrot.slane %v2863_v53, 4  ;;  %v2926_v7 = vmul.f32 %v5170_v35, %v6699_v14  ;;  %v2616_v46 = vrot.slane %v2615_v49, 2  ;;  %5183 = vrcp.f32 %v6973_v8 }
 0x58d   :  { %v6985_v60 = vadd.f32 %v3022_v36, %v3021_v45  ;;  %v6987_v62 = vadd.f32 %v2798_v33, %v2797_v58  ;;  %v2860_v29 = vadd.f32 %v2859_v25, %v2858_v0  ;;  %v3028_v40 = vsel %vm2937_vm8, %v2925_v19, 0.0  ;;  %v7001_v0 = vpop.xlane.xlu1 %2511 }
 0x58e   :  { %v2865_v54 = vadd.f32 %v2864_v6, %v2863_v53  ;;  %v3029_v14 = vsel %vm2937_vm8, %v2926_v7, 0.0  ;;  %v2617_v63 = vmax.f32 %v2615_v49, %v2616_v46  ;;  %v2662_v45 = vmax.f32 %v6953_v24, %v6951_v11  ;;  %v7003_v36 = vpop.xlane.xlu0 %2508 }
 0x58f   :  { %v5172_v12 = vpop.eup %5171  ;;  %8255 = vst [vmem:[#allocation36_spill] sm:$0xff] %v6985_v60  ;;  %8256 = vst [vmem:[#allocation46_spill] sm:$0xff] %v6987_v62  ;;  %v2676_v53 = vmax.f32 %v6963_v44, %v6961_v13  ;;  %v2683_v58 = vmax.f32 %v6980_v39, %v6978_v30  ;;  %5185 = vrcp.f32 %v6987_v62 }
 0x590   :  { %v5174_v43 = vpop.eup %5173  ;;  %v2907_v20 = vmul.f32 %v5172_v12, %v6715_v28  ;;  %v2866_v6 = vrot.slane %v2865_v54, 2  ;;  %v2618_v49 = vrot.slane %v2617_v63, 1  ;;  %v2663_v33 = vrot.slane %v2662_v45, 4 }
 0x591   :  { %v5176_v38 = vpop.eup %5175  ;;  %v2800_v41 = vadd.f32 %v5174_v43, %v5172_v12  ;;  %v2908_v18 = vmul.f32 %v5174_v43, %v6719_v9  ;;  %v3030_v12 = vadd.f32 %v3029_v14, %v3028_v40  ;;  %v2677_v25 = vrot.slane %v2676_v53, 4 }
 0x592   :  { %v5178_v57 = vpop.eup %5177  ;;  %v2929_v35 = vmul.f32 %v5176_v38, %v6705_v34  ;;  %v2861_v43 = vrot.slane %v2860_v29, 1  ;;  %v2619_v7 = vmax.f32 %v2617_v63, %v2618_v49  ;;  %v2684_v46 = vrot.slane %v2683_v58, 4  ;;  %v7012_v63 = vpop.xlane.xlu1 %2523 }
 0x593   :  { %v2801_v28 = vrot.slane %v2800_v41, 4  ;;  %v2877_v9 = vadd.f32 %v5178_v57, %v5176_v38  ;;  %v2947_v3 = vsel %vm2937_vm8, %v2907_v20, 0.0  ;;  %v2948_v8 = vsel %vm2937_vm8, %v2908_v18, 0.0  ;;  %v7014_v49 = vpop.xlane.xlu0 %2520 }
 0x594   :  { %v2664_v32 = vmax.f32 %v2662_v45, %v2663_v33  ;;  %v2678_v34 = vmax.f32 %v2676_v53, %v2677_v25  ;;  %v2867_v60 = vadd.f32 %v2866_v6, %v2865_v54  ;;  %v2930_v48 = vmul.f32 %v5178_v57, %v6709_v17 }
 0x595   :  { %v5180_v19 = vpop.eup %5179  ;;  %v2802_v40 = vadd.f32 %v2801_v28, %v2800_v41  ;;  %v2705_v38 = vsub.f32 %v6940_v59, %v2619_v7  ;;  %v2706_v50 = vsub.f32 %v6938_v51, %v2619_v7  ;;  %v7017_v20 = vsel %vm2937_vm8, %v2929_v35, 0.0 }
 0x596   :  { %v5182_v22 = vpop.eup %5181  ;;  %v2665_v31 = vrot.slane %v2664_v32, 2  ;;  %v2679_v62 = vrot.slane %v2678_v34, 2  ;;  %v2949_v18 = vadd.f32 %v2948_v8, %v2947_v3  ;;  %v2685_v54 = vmax.f32 %v2683_v58, %v2684_v46 }
 0x597   :  { %v2807_v14 = vadd.f32 %v5182_v22, %v5180_v19  ;;  %v2745_v45 = vmul.f32 1.442695, %v2705_v38  ;;  %v3031_v53 = vrot.slane %v3030_v12, 4  ;;  %v2878_v17 = vrot.slane %v2877_v9, 4  ;;  %v7034_v46 = vpop.xlane.xlu0 %2526 }
 0x598   :  { %v2747_v57 = vmul.f32 1.442695, %v2706_v50  ;;  %v2666_v41 = vmax.f32 %v2664_v32, %v2665_v31  ;;  %v7019_v59 = vadd.f32 %v2861_v43, %v2860_v29  ;;  %v2868_v6 = vrot.slane %v2867_v60, 1  ;;  %v7032_v43 = vpop.xlane.xlu1 %2529 }
 0x599   :  { %v2803_v51 = vrot.slane %v2802_v40, 2  ;;  %5187 = vpow2.f32 %v2745_v45  ;;  %v7021_v28 = vpop.eup %5183  ;;  %v2808_v33 = vrot.slane %v2807_v14, 4  ;;  %v2680_v7 = vmax.f32 %v2678_v34, %v2679_v62 }
 0x59a   :  { %8257 = vst [vmem:[#allocation50_spill] sm:$0xff] %v7019_v59  ;;  %8258 = vst [vmem:[#allocation49_spill] sm:$0xff] %v7021_v28  ;;  %v2667_v25 = vrot.slane %v2666_v41, 1  ;;  %v2606_v35 = vmax.f32 %v7003_v36, %v7001_v0  ;;  %v7026_v8 = vsel %vm2937_vm8, %v2930_v48, 0.0  ;;  %v2950_v3 = vrot.slane %v2949_v18, 4 }
 0x59b   :  { %5189 = vpow2.f32 %v2747_v57  ;;  %v2686_v50 = vrot.slane %v2685_v54, 2  ;;  %v7028_v31 = vadd.f32 %v3031_v53, %v3030_v12  ;;  %v2620_v58 = vmax.f32 %v7014_v49, %v7012_v63 }
 0x59c   :  { %v2668_v32 = vmax.f32 %v2666_v41, %v2667_v25  ;;  %v2607_v29 = vrot.slane %v2606_v35, 4  ;;  %v7036_v62 = vadd.f32 %v2868_v6, %v2867_v60  ;;  %v7038_v34 = vadd.f32 %v2878_v17, %v2877_v9 }
 0x59d   :  { %8259 = vst [vmem:[#allocation48_spill] sm:$0xff] %v7028_v31  ;;  %v2804_v48 = vadd.f32 %v2803_v51, %v2802_v40  ;;  %v2909_v38 = vmul.f32 %v5180_v19, %v6728_v56  ;;  %v2809_v45 = vadd.f32 %v2808_v33, %v2807_v14  ;;  %v2681_v57 = vrot.slane %v2680_v7, 1  ;;  %v7046_v31 = vpop.eup %5185  ;;  %v7050_v19 = vpop.xlane.xlu1 %2535 }
 0x59e   :  { %8260 = vst [vmem:[#allocation51_spill] sm:$0xff] %v7036_v62  ;;  %v2608_v12 = vmax.f32 %v2606_v35, %v2607_v29  ;;  %v2621_v53 = vrot.slane %v2620_v58, 4  ;;  %5191 = vrcp.f32 %v7019_v59  ;;  %v7042_v41 = vadd.f32 %v2950_v3, %v2949_v18  ;;  %8261 = vst [vmem:[#allocation52_spill] sm:$0xff] %v7046_v31  ;;  %v7052_v14 = vpop.xlane.xlu0 %2532 }
 0x59f   :  { %v2687_v25 = vmax.f32 %v2685_v54, %v2686_v50  ;;  %v2627_v28 = vmax.f32 %v7034_v46, %v7032_v43  ;;  %v2910_v60 = vmul.f32 %v5182_v22, %v6733_v27  ;;  %v2719_v9 = vsub.f32 %v6953_v24, %v2668_v32 }
 0x5a0   :  { %v2609_v40 = vrot.slane %v2608_v12, 2  ;;  %v2622_v56 = vmax.f32 %v2620_v58, %v2621_v53  ;;  %5193 = vrcp.f32 %v7036_v62  ;;  %v2805_v18 = vrot.slane %v2804_v48, 1 }
 0x5a1   :  { %v2956_v54 = vsel %vm2937_vm8, %v2909_v38, 0.0  ;;  %v2720_v17 = vsub.f32 %v6951_v11, %v2668_v32  ;;  %v2810_v6 = vrot.slane %v2809_v45, 2  ;;  %v2682_v51 = vmax.f32 %v2680_v7, %v2681_v57  ;;  %v7064_v59 = vpop.xlane.xlu1 %2583 }
 0x5a2   :  { %v2610_v33 = vmax.f32 %v2608_v12, %v2609_v40  ;;  %v2623_v35 = vrot.slane %v2622_v56, 2  ;;  %v2688_v24 = vrot.slane %v2687_v25, 1  ;;  %v2628_v22 = vrot.slane %v2627_v28, 4  ;;  %v7066_v31 = vpop.xlane.xlu0 %2580 }
 0x5a3   :  { %v2634_v3 = vmax.f32 %v7052_v14, %v7050_v19  ;;  %v2957_v50 = vsel %vm2937_vm8, %v2910_v60, 0.0  ;;  %v2773_v29 = vmul.f32 1.442695, %v2719_v9  ;;  %v7061_v62 = vadd.f32 %v2805_v18, %v2804_v48 }
 0x5a4   :  { %v2611_v58 = vrot.slane %v2610_v33, 1  ;;  %v2624_v53 = vmax.f32 %v2622_v56, %v2623_v35  ;;  %v2775_v38 = vmul.f32 1.442695, %v2720_v17  ;;  %v2629_v11 = vmax.f32 %v2627_v28, %v2628_v22 }
 0x5a5   :  { %v2635_v32 = vrot.slane %v2634_v3, 4  ;;  %v2811_v57 = vadd.f32 %v2810_v6, %v2809_v45  ;;  %v2723_v12 = vsub.f32 %v6963_v44, %v2682_v51  ;;  %v2724_v60 = vsub.f32 %v6961_v13, %v2682_v51 }
 0x5a6   :  { %v5188_v7 = vpop.eup %5187  ;;  %v2612_v40 = vmax.f32 %v2610_v33, %v2611_v58  ;;  %v2625_v27 = vrot.slane %v2624_v53, 1  ;;  %v2689_v9 = vmax.f32 %v2687_v25, %v2688_v24  ;;  %v2630_v5 = vrot.slane %v2629_v11, 2 }
 0x5a7   :  { %v2636_v56 = vmax.f32 %v2634_v3, %v2635_v32  ;;  %5195 = vpow2.f32 %v2773_v29  ;;  %v2690_v6 = vmax.f32 %v7066_v31, %v7064_v59  ;;  %v2812_v51 = vrot.slane %v2811_v57, 1 }
 0x5a8   :  { %v5190_v48 = vpop.eup %5189  ;;  %v2703_v28 = vsub.f32 %v7003_v36, %v2612_v40  ;;  %v2704_v18 = vsub.f32 %v7001_v0, %v2612_v40  ;;  %v2626_v45 = vmax.f32 %v2624_v53, %v2625_v27  ;;  %5197 = vpow2.f32 %v2775_v38 }
 0x5a9   :  { %v2821_v17 = vadd.f32 %v5190_v48, %v5188_v7  ;;  %v2631_v44 = vmax.f32 %v2629_v11, %v2630_v5  ;;  %v2958_v24 = vadd.f32 %v2957_v50, %v2956_v54  ;;  %v2637_v3 = vrot.slane %v2636_v56, 2 }
 0x5aa   :  { %v2741_v33 = vmul.f32 1.442695, %v2703_v28  ;;  %v2743_v35 = vmul.f32 1.442695, %v2704_v18  ;;  %v2707_v13 = vsub.f32 %v7014_v49, %v2626_v45  ;;  %v2708_v25 = vsub.f32 %v7012_v63, %v2626_v45 }
 0x5ab   :  { %v2632_v22 = vrot.slane %v2631_v44, 1  ;;  %v7075_v36 = vpop.eup %5191  ;;  %v2781_v0 = vmul.f32 1.442695, %v2723_v12  ;;  %v2783_v5 = vmul.f32 1.442695, %v2724_v60  ;;  %v2638_v53 = vmax.f32 %v2636_v56, %v2637_v3 }
 0x5ac   :  { %5199 = vpow2.f32 %v2741_v33  ;;  %v2749_v27 = vmul.f32 1.442695, %v2707_v13  ;;  %v2751_v29 = vmul.f32 1.442695, %v2708_v25  ;;  %v2822_v11 = vrot.slane %v2821_v17, 4 }
 0x5ad   :  { %5201 = vpow2.f32 %v2743_v35  ;;  %v2633_v58 = vmax.f32 %v2631_v44, %v2632_v22  ;;  %v7077_v38 = vpop.eup %5193  ;;  %v2725_v49 = vsub.f32 %v6980_v39, %v2689_v9  ;;  %v2691_v63 = vrot.slane %v2690_v6, 4 }
 0x5ae   :  { %5203 = vpow2.f32 %v2749_v27  ;;  %v2726_v54 = vsub.f32 %v6978_v30, %v2689_v9  ;;  %v2639_v12 = vrot.slane %v2638_v53, 1  ;;  %v8262_v60 = vrot.slane %v6975_v23, 2 }
 0x5af   :  { %5205 = vpow2.f32 %v2751_v29  ;;  %v2709_v50 = vsub.f32 %v7034_v46, %v2633_v58  ;;  %v2710_v32 = vsub.f32 %v7032_v43, %v2633_v58  ;;  %v2692_v40 = vmax.f32 %v2690_v6, %v2691_v63 }
 0x5b0   :  { %5207 = vpow2.f32 %v2781_v0  ;;  %v2944_v56 = vadd.f32 %v8262_v60, %v6975_v23  ;;  %v2913_v28 = vmul.f32 %v5188_v7, %v6741_v4  ;;  %v2914_v39 = vmul.f32 %v5190_v48, %v6746_v55 }
 0x5b1   :  { %v2753_v18 = vmul.f32 1.442695, %v2709_v50  ;;  %v2755_v45 = vmul.f32 1.442695, %v2710_v32  ;;  %5209 = vrcp.f32 %v7061_v62  ;;  %v7089_v30 = vadd.f32 %v2812_v51, %v2811_v57 }
 0x5b2   :  { %v2823_v46 = vadd.f32 %v2822_v11, %v2821_v17  ;;  %v2640_v9 = vmax.f32 %v2638_v53, %v2639_v12  ;;  %v2880_v43 = vrot.slane %v7038_v34, 2  ;;  %v2785_v44 = vmul.f32 1.442695, %v2725_v49 }
 0x5b3   :  { %5211 = vpow2.f32 %v2753_v18  ;;  %v2693_v6 = vrot.slane %v2692_v40, 2  ;;  %v7094_v23 = vadd.f32 %v7026_v8, %v7017_v20  ;;  %v2959_v4 = vrot.slane %v2958_v24, 4 }
 0x5b4   :  { %5213 = vpow2.f32 %v2783_v5  ;;  %v2787_v55 = vmul.f32 1.442695, %v2726_v54  ;;  %v5196_v7 = vpop.eup %5195  ;;  %v2974_v48 = vsel %vm2937_vm8, %v2913_v28, 0.0  ;;  %v2975_v57 = vsel %vm2937_vm8, %v2914_v39, 0.0 }
 0x5b5   :  { %5215 = vpow2.f32 %v2755_v45  ;;  %v2945_v17 = vrot.slane %v2944_v56, 1  ;;  %v5198_v33 = vpop.eup %5197  ;;  %v2824_v35 = vrot.slane %v2823_v46, 2  ;;  %v2711_v13 = vsub.f32 %v7052_v14, %v2640_v9 }
 0x5b6   :  { %5217 = vrcp.f32 %v7089_v30  ;;  %v8263_v20 = vrot.slane %v7042_v41, 2  ;;  %v7106_v25 = vadd.f32 %v2880_v43, %v7038_v34  ;;  %v2712_v51 = vsub.f32 %v7050_v19, %v2640_v9 }
 0x5b7   :  { %5219 = vpow2.f32 %v2785_v44  ;;  %v2694_v22 = vmax.f32 %v2692_v40, %v2693_v6  ;;  %v7109_v3 = vadd.f32 %v2959_v4, %v2958_v24  ;;  %v7111_v0 = vadd.f32 %v2975_v57, %v2974_v48 }
 0x5b8   :  { %v7103_v8 = vadd.f32 %v8263_v20, %v7042_v41  ;;  %5221 = vpow2.f32 %v2787_v55  ;;  %v2757_v27 = vmul.f32 1.442695, %v2711_v13  ;;  %v2927_v14 = vmul.f32 %v5196_v7, %v6755_v26 }
 0x5b9   :  { %v5200_v29 = vpop.eup %5199  ;;  %v2759_v5 = vmul.f32 1.442695, %v2712_v51  ;;  %v2695_v58 = vrot.slane %v2694_v22, 1  ;;  %v7114_v41 = vadd.f32 %v2945_v17, %v2944_v56  ;;  %v2825_v34 = vadd.f32 %v2824_v35, %v2823_v46 }
 0x5ba   :  { %v5202_v53 = vpop.eup %5201  ;;  %v7116_v11 = vadd.f32 %v5198_v33, %v5196_v7  ;;  %v2911_v19 = vmul.f32 %v5200_v29, %v6797_v15  ;;  %v2954_v24 = vrot.slane %v7103_v8, 1  ;;  %5223 = vpow2.f32 %v2757_v27 }
 0x5bb   :  { %v5204_v49 = vpop.eup %5203  ;;  %v2814_v63 = vadd.f32 %v5202_v53, %v5200_v29  ;;  %v2912_v54 = vmul.f32 %v5202_v53, %v6802_v2  ;;  %v2696_v50 = vmax.f32 %v2694_v22, %v2695_v58  ;;  %v2928_v26 = vmul.f32 %v5198_v33, %v6760_v16 }
 0x5bc   :  { %v5206_v32 = vpop.eup %5205  ;;  %v2965_v12 = vsel %vm2937_vm8, %v2911_v19, 0.0  ;;  %v2915_v40 = vmul.f32 %v5204_v49, %v6811_v52  ;;  %5225 = vpow2.f32 %v2759_v5  ;;  %v3037_v18 = vsel %vm2937_vm8, %v2927_v14, 0.0 }
 0x5bd   :  { %v5208_v60 = vpop.eup %5207  ;;  %v2815_v56 = vrot.slane %v2814_v63, 4  ;;  %v2966_v15 = vsel %vm2937_vm8, %v2912_v54, 0.0  ;;  %v2828_v28 = vadd.f32 %v5206_v32, %v5204_v49  ;;  %v2916_v39 = vmul.f32 %v5206_v32, %v6816_v10 }
 0x5be   :  { %v2727_v2 = vsub.f32 %v7066_v31, %v2696_v50  ;;  %v2728_v45 = vsub.f32 %v7064_v59, %v2696_v50  ;;  %v2826_v46 = vrot.slane %v2825_v34, 1  ;;  %v7129_v16 = vpop.eup %5209  ;;  %v2983_v52 = vsel %vm2937_vm8, %v2915_v40, 0.0 }
 0x5bf   :  { %v2816_v9 = vadd.f32 %v2815_v56, %v2814_v63  ;;  %v2829_v43 = vrot.slane %v2828_v28, 4  ;;  %v2984_v44 = vsel %vm2937_vm8, %v2916_v39, 0.0  ;;  %v2931_v4 = vmul.f32 %v5208_v60, %v6769_v61 }
 0x5c0   :  { %v5212_v6 = vpop.eup %5211  ;;  %v2967_v55 = vadd.f32 %v2966_v15, %v2965_v12  ;;  %v2789_v10 = vmul.f32 1.442695, %v2727_v2  ;;  %v2791_v7 = vmul.f32 1.442695, %v2728_v45  ;;  %v2871_v31 = vrot.slane %v7116_v11, 4 }
 0x5c1   :  { %v5214_v48 = vpop.eup %5213  ;;  %v2817_v57 = vrot.slane %v2816_v9, 2  ;;  %v2830_v59 = vadd.f32 %v2829_v43, %v2828_v28  ;;  %v2917_v17 = vmul.f32 %v5212_v6, %v6825_v47  ;;  %v3038_v35 = vsel %vm2937_vm8, %v2928_v26, 0.0 }
 0x5c2   :  { %v5216_v33 = vpop.eup %5215  ;;  %v2985_v13 = vadd.f32 %v2984_v44, %v2983_v52  ;;  %5227 = vpow2.f32 %v2789_v10  ;;  %v7137_v20 = vadd.f32 %v2826_v46, %v2825_v34  ;;  %v7142_v5 = vadd.f32 %v5214_v48, %v5208_v60  ;;  %v8264_v52 = vld [vmem:[#allocation43_spill] sm:$0xff] }
 0x5c3   :  { %v7139_v51 = vpop.eup %5217  ;;  %v2818_v61 = vadd.f32 %v2817_v57, %v2816_v9  ;;  %v2831_v22 = vrot.slane %v2830_v59, 2  ;;  %v2835_v27 = vadd.f32 %v5216_v33, %v5212_v6  ;;  %v2918_v29 = vmul.f32 %v5216_v33, %v6830_v37 }
 0x5c4   :  { %v5220_v14 = vpop.eup %5219  ;;  %v7145_v58 = vmul.f32 %v5214_v48, %v6774_v21  ;;  %v2968_v47 = vrot.slane %v2967_v55, 4  ;;  %5229 = vpow2.f32 %v2791_v7  ;;  %v2992_v63 = vsel %vm2937_vm8, %v2917_v17, 0.0 }
 0x5c5   :  { %v7147_v53 = vpop.eup %5221  ;;  %v2819_v19 = vrot.slane %v2818_v61, 1  ;;  %v2832_v34 = vadd.f32 %v2831_v22, %v2830_v59  ;;  %v2836_v49 = vrot.slane %v2835_v27, 4  ;;  %v7150_v54 = vadd.f32 %v3038_v35, %v3037_v18 }
 0x5c6   :  { %v7153_v50 = vsel %vm2937_vm8, %v2931_v4, 0.0  ;;  %v2977_v37 = vrot.slane %v7111_v0, 4  ;;  %v2993_v32 = vsel %vm2937_vm8, %v2918_v29, 0.0  ;;  %v2986_v12 = vrot.slane %v2985_v13, 4 }
 0x5c7   :  { %v2837_v21 = vadd.f32 %v2836_v49, %v2835_v27  ;;  %v2833_v26 = vrot.slane %v2832_v34, 1  ;;  %5231 = vrcp.f32 %v7137_v20  ;;  %v5224_v40 = vpop.eup %5223  ;;  %v2872_v60 = vadd.f32 %v2871_v31, %v7116_v11 }
 0x5c8   :  { %v7160_v56 = vmul.f32 %v5220_v14, %v6783_v1  ;;  %v7162_v15 = vadd.f32 %v2819_v19, %v2818_v61  ;;  %v2994_v28 = vadd.f32 %v2993_v32, %v2992_v63  ;;  %v2891_v18 = vadd.f32 %v7147_v53, %v5220_v14  ;;  %v8265_v63 = vld [vmem:[#allocation46_spill] sm:$0xff] }
 0x5c9   :  { %v5226_v39 = vpop.eup %5225  ;;  %v2919_v2 = vmul.f32 %v5224_v40, %v6853_v42  ;;  %v2838_v45 = vrot.slane %v2837_v21, 2  ;;  %v2969_v46 = vadd.f32 %v2968_v47, %v2967_v55  ;;  %v7166_v43 = vadd.f32 %v2833_v26, %v2832_v34 }
 0x5ca   :  { %v2842_v9 = vadd.f32 %v5226_v39, %v5224_v40  ;;  %v2920_v44 = vmul.f32 %v5226_v39, %v8264_v52  ;;  %v2978_v11 = vadd.f32 %v2977_v37, %v7111_v0  ;;  %v2987_v1 = vadd.f32 %v2986_v12, %v2985_v13  ;;  %v8266_v37 = vld [vmem:[#allocation52_spill] sm:$0xff] }
 0x5cb   :  { %v2839_v6 = vadd.f32 %v2838_v45, %v2837_v21  ;;  %v2995_v4 = vrot.slane %v2994_v28, 4  ;;  %v3001_v10 = vsel %vm2937_vm8, %v2919_v2, 0.0  ;;  %v2961_v48 = vrot.slane %v7109_v3, 2 }
 0x5cc   :  { %v2843_v7 = vrot.slane %v2842_v9, 4  ;;  %v3002_v31 = vsel %vm2937_vm8, %v2920_v44, 0.0  ;;  %5233 = vrcp.f32 %v7162_v15  ;;  %v2885_v42 = vrot.slane %v7142_v5, 4 }
 0x5cd   :  { %v2840_v55 = vrot.slane %v2839_v6, 1  ;;  %v2970_v57 = vrot.slane %v2969_v46, 2  ;;  %v3003_v59 = vadd.f32 %v3002_v31, %v3001_v10  ;;  %v3040_v17 = vrot.slane %v7150_v54, 4 }
 0x5ce   :  { %v2844_v0 = vadd.f32 %v2843_v7, %v2842_v9  ;;  %v2979_v33 = vrot.slane %v2978_v11, 2  ;;  %5235 = vrcp.f32 %v7166_v43  ;;  %v2988_v61 = vrot.slane %v2987_v1, 2 }
 0x5cf   :  { %v5228_v35 = vpop.eup %5227  ;;  %v7177_v13 = vadd.f32 %v2840_v55, %v2839_v6  ;;  %v2996_v22 = vadd.f32 %v2995_v4, %v2994_v28  ;;  %v3004_v27 = vrot.slane %v3003_v59, 4  ;;  %v2873_v29 = vrot.slane %v2872_v60, 2 }
 0x5d0   :  { %v2892_v14 = vrot.slane %v2891_v18, 4  ;;  %v2845_v47 = vrot.slane %v2844_v0, 2  ;;  %v2962_v19 = vadd.f32 %v2961_v48, %v7109_v3  ;;  %v2971_v49 = vadd.f32 %v2970_v57, %v2969_v46 }
 0x5d1   :  { %v7180_v34 = vpop.eup %5229  ;;  %5237 = vrcp.f32 %v7177_v13  ;;  %v3098_v32 = vmul.f32 %v8266_v37, %v8265_v63  ;;  %v3099_v21 = vmul.f32 %v7129_v16, %v7061_v62  ;;  %v3005_v40 = vadd.f32 %v3004_v27, %v3003_v59 }
 0x5d2   :  { %v2898_v26 = vadd.f32 %v7180_v34, %v5228_v35  ;;  %v2846_v12 = vadd.f32 %v2845_v47, %v2844_v0  ;;  %v3100_v28 = vmul.f32 %v7139_v51, %v7089_v30  ;;  %v2886_v3 = vadd.f32 %v2885_v42, %v7142_v5 }
 0x5d3   :  { %v2980_v39 = vadd.f32 %v2979_v33, %v2978_v11  ;;  %v2989_v2 = vadd.f32 %v2988_v61, %v2987_v1  ;;  %v2997_v45 = vrot.slane %v2996_v22, 2  ;;  %v2874_v9 = vadd.f32 %v2873_v29, %v2872_v60 }
 0x5d4   :  { %v5232_v46 = vpop.eup %5231  ;;  %v2899_v52 = vrot.slane %v2898_v26, 4  ;;  %v2847_v44 = vrot.slane %v2846_v12, 1  ;;  %v2955_v62 = vadd.f32 %v2954_v24, %v7103_v8  ;;  %v2893_v6 = vadd.f32 %v2892_v14, %v2891_v18 }
 0x5d5   :  { %v2963_v4 = vrot.slane %v2962_v19, 1  ;;  %v2972_v10 = vrot.slane %v2971_v49, 1  ;;  %v3115_v7 = vsub.f32 2.0, %v3099_v21  ;;  %v3006_v30 = vrot.slane %v3005_v40, 2 }
 0x5d6   :  { %v7194_v48 = vadd.f32 %v2847_v44, %v2846_v12  ;;  %v3114_v31 = vsub.f32 2.0, %v3098_v32  ;;  %v3116_v5 = vsub.f32 2.0, %v3100_v28  ;;  %v2981_v11 = vrot.slane %v2980_v39, 1  ;;  %v8267_v12 = vld [vmem:[#allocation38_spill] sm:$0xff] }
 0x5d7   :  { %v2990_v1 = vrot.slane %v2989_v2, 1  ;;  %v2998_v42 = vadd.f32 %v2997_v45, %v2996_v22  ;;  %v3102_v60 = vmul.f32 %v5232_v46, %v7137_v20  ;;  %v2875_v55 = vrot.slane %v2874_v9, 1 }
 0x5d8   :  { %v2887_v57 = vrot.slane %v2886_v3, 2  ;;  %5239 = vrcp.f32 %v7194_v48  ;;  %v2900_v59 = vadd.f32 %v2899_v52, %v2898_v26  ;;  %v2964_v24 = vadd.f32 %v2963_v4, %v2962_v19 }
 0x5d9   :  { %v5234_v8 = vpop.eup %5233  ;;  %v2973_v18 = vadd.f32 %v2972_v10, %v2971_v49  ;;  %v3131_v0 = vmul.f32 %v7129_v16, %v3115_v7  ;;  %v2894_v33 = vrot.slane %v2893_v6, 2  ;;  %v3007_v61 = vadd.f32 %v3006_v30, %v3005_v40 }
 0x5da   :  { %v3101_v27 = vmul.f32 %v5234_v8, %v7162_v15  ;;  %v3130_v29 = vmul.f32 %v8266_v37, %v3114_v31  ;;  %v3132_v22 = vmul.f32 %v7139_v51, %v3116_v5  ;;  %v2982_v20 = vadd.f32 %v2981_v11, %v2980_v39  ;;  %v8269_v11 = vld [vmem:[#allocation44_spill] sm:$0xff] }
 0x5db   :  { %v5236_v14 = vpop.eup %5235  ;;  %v2991_v47 = vadd.f32 %v2990_v1, %v2989_v2  ;;  %v2999_v63 = vrot.slane %v2998_v42, 1  ;;  %v3118_v32 = vsub.f32 2.0, %v3102_v60  ;;  %v2888_v19 = vadd.f32 %v2887_v57, %v2886_v3  ;;  %v4715_v1 = vld [vmem:[%s8037_s2 + $0x40] sm:$0xff] }
 0x5dc   :  { %v3103_v21 = vmul.f32 %v5236_v14, %v7166_v43  ;;  %v3117_v26 = vsub.f32 2.0, %v3101_v27  ;;  %v2901_v49 = vrot.slane %v2900_v59, 2  ;;  %v2935_v16 = vmul.f32 %v5228_v35, %v8267_v12  ;;  %v8268_v35 = vld [vmem:[#allocation34_spill] sm:$0xff] }
 0x5dd   :  { %v3147_v28 = vmul.f32 %v3131_v0, %v2955_v62  ;;  %v7204_v40 = vadd.f32 %v2875_v55, %v2874_v9  ;;  %v2895_v15 = vadd.f32 %v2894_v33, %v2893_v6  ;;  %v3008_v37 = vrot.slane %v3007_v61, 1 }
 0x5de   :  { %v5238_v45 = vpop.eup %5237  ;;  %v3146_v51 = vmul.f32 %v3130_v29, %v7114_v41  ;;  %v3148_v52 = vmul.f32 %v3132_v22, %v2964_v24  ;;  %v2882_v39 = vrot.slane %v7106_v25, 1  ;;  %v3119_v44 = vsub.f32 2.0, %v3103_v21 }
 0x5df   :  { %v3104_v2 = vmul.f32 %v5238_v45, %v7177_v13  ;;  %v3133_v43 = vmul.f32 %v5234_v8, %v3117_v26  ;;  %v3134_v4 = vmul.f32 %v5232_v46, %v3118_v32  ;;  %v3000_v3 = vadd.f32 %v2999_v63, %v2998_v42  ;;  %v4716_v13 = vld [vmem:[%s8037_s2 + $0x48] sm:$0xff] }
 0x5e0   :  { %v2889_v10 = vrot.slane %v2888_v19, 1  ;;  %v2902_v7 = vadd.f32 %v2901_v49, %v2900_v59  ;;  %v2934_v9 = vmul.f32 %v7147_v53, %v8268_v35  ;;  %v3227_v6 = vsel %vm1945_vm1, %v3147_v28, %v3146_v51  ;;  %4871 = vmatprep.subr.mxu1 %v4716_v13 }
 0x5e1   :  { %v3120_v62 = vsub.f32 2.0, %v3104_v2  ;;  %v2896_v30 = vrot.slane %v2895_v15, 1  ;;  %v3056_v41 = vsel %vm2937_vm8, %v7145_v58, 0.0  ;;  %v3009_v31 = vadd.f32 %v3008_v37, %v3007_v61  ;;  %4872 = vmatpush3.msra.mxu1 %v4716_v13  ;;  %v8271_v37 = vld [vmem:[#allocation50_spill] sm:$0xff] }
 0x5e2   :  { %v3228_v46 = vsel %vm1947_vm2, %v3148_v52, %v3227_v6  ;;  %v7219_v5 = vadd.f32 %v2882_v39, %v7106_v25  ;;  %v2936_v53 = vmul.f32 %v7180_v34, %v8269_v11  ;;  %v3135_v42 = vmul.f32 %v5236_v14, %v3119_v44  ;;  %4873 = vmatprep.subr.mxu1 %v4715_v1  ;;  %v8272_v39 = vld [vmem:[#allocation33_spill] sm:$0xff] }
 0x5e3   :  { %v3149_v58 = vmul.f32 %v3133_v43, %v2973_v18  ;;  %v3150_v60 = vmul.f32 %v3134_v4, %v2982_v20  ;;  %v3057_v55 = vadd.f32 %v3056_v41, %v7153_v50  ;;  %v7227_v57 = vadd.f32 %v2889_v10, %v2888_v19  ;;  %4874 = vmatpush3.msra.mxu1 %v4715_v1  ;;  %v8274_v4 = vld [vmem:[#allocation51_spill] sm:$0xff]  ;;  %v8275_v10 = vld [vmem:[#allocation36_spill] sm:$0xff]  ;;  %v8278_v6 = vld [vmem:[#allocation49_spill] sm:$0xff] }
 0x5e4   :  { %v2903_v59 = vrot.slane %v2902_v7, 1  ;;  %v3064_v25 = vsel %vm2937_vm8, %v7160_v56, 0.0  ;;  %v3065_v8 = vsel %vm2937_vm8, %v2934_v9, 0.0  ;;  %v3136_v24 = vmul.f32 %v5238_v45, %v3120_v62  ;;  %v8277_v62 = vld [vmem:[#allocation47_spill] sm:$0xff] }
 0x5e5   :  { %v5240_v34 = vpop.eup %5239  ;;  %v7232_v0 = vadd.f32 %v2896_v30, %v2895_v15  ;;  %v3041_v18 = vadd.f32 %v3040_v17, %v7150_v54  ;;  %v3066_v33 = vadd.f32 %v3065_v8, %v3064_v25  ;;  %v3049_v61 = vrot.slane %v7094_v23, 4  ;;  %v8270_v17 = vld [vmem:[#allocation48_spill] sm:$0xff] }
 0x5e6   :  { %v3105_v50 = vmul.f32 %v5240_v34, %v7194_v48  ;;  %v3073_v27 = vsel %vm2937_vm8, %v2935_v16, 0.0  ;;  %v3074_v56 = vsel %vm2937_vm8, %v2936_v53, 0.0  ;;  %v3151_v29 = vmul.f32 %v3135_v42, %v2991_v47 }
 0x5e7   :  { %v3229_v22 = vsel %vm1949_vm3, %v3149_v58, %v3228_v46  ;;  %v3058_v14 = vrot.slane %v3057_v55, 4  ;;  %v3075_v20 = vadd.f32 %v3074_v56, %v3073_v27  ;;  %v7242_v32 = vadd.f32 %v2903_v59, %v2902_v7 }
 0x5e8   :  { %v3121_v63 = vsub.f32 2.0, %v3105_v50  ;;  %v3067_v21 = vrot.slane %v3066_v33, 4  ;;  %5241 = vrcp.f32 %v7204_v40  ;;  %v3152_v54 = vmul.f32 %v3136_v24, %v3000_v3 }
 0x5e9   :  { %v3033_v48 = vrot.slane %v8270_v17, 2  ;;  %v3076_v26 = vrot.slane %v3075_v20, 4  ;;  %5243 = vrcp.f32 %v7219_v5  ;;  %v3230_v49 = vsel %vm1951_vm4, %v3150_v60, %v3229_v22 }
 0x5ea   :  { %v3137_v19 = vmul.f32 %v5240_v34, %v3121_v63  ;;  %v3042_v47 = vrot.slane %v3041_v18, 2  ;;  %5245 = vrcp.f32 %v7227_v57  ;;  %v3231_v12 = vsel %vm1953_vm5, %v3151_v29, %v3230_v49 }
 0x5eb   :  { %v3050_v16 = vadd.f32 %v3049_v61, %v7094_v23  ;;  %v3059_v28 = vadd.f32 %v3058_v14, %v3057_v55  ;;  %5247 = vrcp.f32 %v7232_v0  ;;  %v3068_v45 = vadd.f32 %v3067_v21, %v3066_v33 }
 0x5ec   :  { %v3153_v15 = vmul.f32 %v3137_v19, %v3009_v31  ;;  %5249 = vrcp.f32 %v7242_v32  ;;  %v3107_v51 = vmul.f32 %v7075_v36, %v8271_v37  ;;  %v3232_v52 = vsel %vm1955_vm6, %v3152_v54, %v3231_v12 }
 0x5ed   :  { %v8273_v2 = vrot.slane %v8272_v39, 2  ;;  %v3077_v43 = vadd.f32 %v3076_v26, %v3075_v20  ;;  %v3108_v23 = vmul.f32 %v7077_v38, %v8274_v4  ;;  %v8276_v7 = vrot.slane %v8275_v10, 2 }
 0x5ee   :  { %v3233_v3 = vsel %vm1957_vm7, %v3153_v15, %v3232_v52  ;;  %v3034_v9 = vadd.f32 %v3033_v48, %v8270_v17  ;;  %v3106_v30 = vmul.f32 %v8278_v6, %v8277_v62  ;;  %v3043_v41 = vadd.f32 %v3042_v47, %v3041_v18 }
 0x5ef   :  { %v3016_v44 = vadd.f32 %v8273_v2, %v8272_v39  ;;  %v3025_v35 = vadd.f32 %v8276_v7, %v8275_v10  ;;  %3241 = vrot.lane.b32.xlu0 %v3233_v3, %s5448_s9  ;;  %v3051_v13 = vrot.slane %v3050_v16, 2  ;;  %v3060_v31 = vrot.slane %v3059_v28, 2 }
 0x5f0   :  { %v3069_v46 = vrot.slane %v3068_v45, 2  ;;  %v3123_v11 = vsub.f32 2.0, %v3107_v51  ;;  %v3078_v1 = vrot.slane %v3077_v43, 2  ;;  %v3124_v42 = vsub.f32 2.0, %v3108_v23 }
 0x5f1   :  { %v3017_v53 = vrot.slane %v3016_v44, 1  ;;  %v3026_v58 = vrot.slane %v3025_v35, 1  ;;  %v3035_v60 = vrot.slane %v3034_v9, 1  ;;  %v3122_v55 = vsub.f32 2.0, %v3106_v30 }
 0x5f2   :  { %v3044_v59 = vrot.slane %v3043_v41, 1  ;;  %v3052_v25 = vadd.f32 %v3051_v13, %v3050_v16  ;;  %v3061_v8 = vadd.f32 %v3060_v31, %v3059_v28  ;;  %v3070_v34 = vadd.f32 %v3069_v46, %v3068_v45 }
 0x5f3   :  { %v3139_v24 = vmul.f32 %v7075_v36, %v3123_v11  ;;  %v3018_v50 = vadd.f32 %v3017_v53, %v3016_v44  ;;  %v3079_v61 = vadd.f32 %v3078_v1, %v3077_v43  ;;  %v3140_v18 = vmul.f32 %v7077_v38, %v3124_v42  ;;  %v5414_v11 = vld [vmem:[%s8038_s3] sm:$0xff] }
 0x5f4   :  { %v3027_v56 = vadd.f32 %v3026_v58, %v3025_v35  ;;  %v3036_v29 = vadd.f32 %v3035_v60, %v3034_v9  ;;  %v3138_v14 = vmul.f32 %v8278_v6, %v3122_v55  ;;  %v3045_v63 = vadd.f32 %v3044_v59, %v3043_v41  ;;  %v8279_v6 = vld [vmem:[#allocation5_spill] sm:$0xff]  ;;  %v8281_v59 = vld [vmem:[#allocation6_spill] sm:$0xff] }
 0x5f5   :  { %v5242_v33 = vpop.eup %5241  ;;  %v3053_v21 = vrot.slane %v3052_v25, 1  ;;  %v3062_v54 = vrot.slane %v3061_v8, 1  ;;  %v3071_v36 = vrot.slane %v3070_v34, 1  ;;  %v3080_v47 = vrot.slane %v3079_v61, 1  ;;  %v5415_v58 = vld [vmem:[%s8038_s3 + $0x8] sm:$0xff] }
 0x5f6   :  { %v5244_v27 = vpop.eup %5243  ;;  %v3109_v22 = vmul.f32 %v5242_v33, %v7204_v40  ;;  %v3155_v49 = vmul.f32 %v3139_v24, %v3027_v56  ;;  %v3156_v40 = vmul.f32 %v3140_v18, %v3036_v29  ;;  %v3154_v37 = vmul.f32 %v3138_v14, %v3018_v50 }
 0x5f7   :  { %v5246_v20 = vpop.eup %5245  ;;  %v3110_v17 = vmul.f32 %v5244_v27, %v7219_v5  ;;  %v3054_v51 = vadd.f32 %v3053_v21, %v3052_v25  ;;  %v3063_v52 = vadd.f32 %v3062_v54, %v3061_v8  ;;  %v3072_v4 = vadd.f32 %v3071_v36, %v3070_v34 }
 0x5f8   :  { %v5248_v48 = vpop.eup %5247  ;;  %v3111_v26 = vmul.f32 %v5246_v20, %v7227_v57  ;;  %v3125_v19 = vsub.f32 2.0, %v3109_v22  ;;  %v3234_v43 = vsel %vm1945_vm1, %v3155_v49, %v3154_v37  ;;  %v3081_v10 = vadd.f32 %v3080_v47, %v3079_v61 }
 0x5f9   :  { %v5250_v38 = vpop.eup %5249  ;;  %v3112_v12 = vmul.f32 %v5248_v48, %v7232_v0  ;;  %v3126_v16 = vsub.f32 2.0, %v3110_v17  ;;  %v3235_v0 = vsel %vm1947_vm2, %v3156_v40, %v3234_v43  ;;  %v3164_v30 = vsub.s32 5, %v8279_v6 }
 0x5fa   :  { %v3113_v28 = vmul.f32 %v5250_v38, %v7242_v32  ;;  %v3127_v15 = vsub.f32 2.0, %v3111_v26  ;;  %v3141_v45 = vmul.f32 %v5242_v33, %v3125_v19  ;;  %v8280_v60 = vsub.s32 3, %v8279_v6  ;;  %v8282_v33 = vld [vmem:[#allocation19_spill] sm:$0xff] }
 0x5fb   :  { %v3128_v5 = vsub.f32 2.0, %v3112_v12  ;;  %v3142_v39 = vmul.f32 %v5244_v27, %v3126_v16  ;;  %v3165_v53 = vrot.slane %v5414_v11, %v3164_v30  ;;  %v3210_v25 = vrot.slane %v5415_v58, %v8281_v59  ;;  %v8283_v30 = vld [vmem:[#allocation31_spill] sm:$0xff] }
 0x5fc   :  { %v3129_v2 = vsub.f32 2.0, %v3113_v28  ;;  %v3143_v44 = vmul.f32 %v5246_v20, %v3127_v15  ;;  %v3157_v57 = vmul.f32 %v3141_v45, %v3045_v63  ;;  %v3603_v55 = vrot.slane %v5415_v58, %v8280_v60  ;;  %v8286_v58 = vld [vmem:[#allocation8_spill] sm:$0xff] }
 0x5fd   :  { %v3144_v23 = vmul.f32 %v5248_v48, %v3128_v5  ;;  %v3158_v3 = vmul.f32 %v3142_v39, %v3054_v51 }
 0x5fe   :  { %v3145_v7 = vmul.f32 %v5250_v38, %v3129_v2  ;;  %v3159_v32 = vmul.f32 %v3143_v44, %v3063_v52  ;;  %v3236_v35 = vsel %vm1949_vm3, %v3157_v57, %v3235_v0  ;;  %3605 = vrot.lane.b32.xlu0 %v3603_v55, %s5449_s18 }
 0x5ff   :  { %v3160_v9 = vmul.f32 %v3144_v23, %v3072_v4  ;;  %v3237_v62 = vsel %vm1951_vm4, %v3158_v3, %v3236_v35 }
 0x600   :  { %v3161_v41 = vmul.f32 %v3145_v7, %v3081_v10  ;;  %v3238_v13 = vsel %vm1953_vm5, %v3159_v32, %v3237_v62 }
 0x601   :  { %v3239_v31 = vsel %vm1955_vm6, %v3160_v9, %v3238_v13  ;;  %v8284_v13 = vld [vmem:[#allocation30_spill] sm:$0xff] }
 0x602   :  { %v3240_v46 = vsel %vm1957_vm7, %v3161_v41, %v3239_v31 }
 0x603   :  { %3243 = vrot.lane.b32.xlu1 %v3240_v46, %s5448_s9 }
 0x607   :  { %3167 = vrot.lane.b32.xlu1 %v3165_v53, %s5449_s18 }
 0x661   :  { %v3242_v1 = vpop.permute.xlu0 %3241 }
 0x662   :  { %4875 = vmatprep.mubr.msk.f32.mxu1 %vm484_vm0, %v3242_v1  ;;  %v8285_v1 = vld [vmem:[#allocation11_spill] sm:$0xff] }
 0x670   :  { %v7345_v62 = vpop.permute.xlu0 %3605 }
 0x675   :  { %v3244_v42 = vpop.permute.xlu1 %3243 }
 0x676   :  { %4876 = vmatmul.mubr.msk.f32.vlgmr.msra.gmra.mxu1 %vm484_vm0, %v3244_v42 }
 0x679   :  { %v7343_v9 = vpop.permute.xlu1 %3167 }
 0x67a   :  { %v7349_v41 = vadd.f32 %v7343_v9, %v8283_v30  ;;  %v7353_v31 = vadd.f32 %v8284_v13, %v7343_v9  ;;  %v7359_v42 = vadd.f32 %v7343_v9, %v8285_v1  ;;  %v7363_v60 = vadd.f32 %v8286_v58, %v7343_v9 }
 0x736   :  { %v4877_v8 = vpop.f32.mrf.mxu1 }
 0x737   :  { %v3321_v34 = vadd.f32 %v4877_v8, %v3210_v25  ;;  %v8287_v8 = vld [vmem:[#allocation35_spill] sm:$0xff] }
 0x738   :  { %v3315_v24 = vpop.f32.mrf.mxu1 }
 0x739   :  { %v3382_v50 = vrot.slane %v3321_v34, %v8282_v33  ;;  %v3316_v61 = vadd.f32 %v3315_v24, %v3210_v25  ;;  %v3375_v54 = vcombine.high %v3321_v34, %v3321_v34  ;;  %v7369_v34 = vadd.f32 %v7343_v9, %v8287_v8  ;;  %v8288_v24 = vld [vmem:[#allocation32_spill] sm:$0xff] }
 0x73b   :  { %v3398_v18 = vrot.slane %v3382_v50, %v8282_v33  ;;  %v3326_v27 = vcombine.high %v3316_v61, %v3316_v61  ;;  %v3333_v56 = vrot.slane %v3316_v61, %v8282_v33  ;;  %v3390_v29 = vcombine.high %v3382_v50, %v3382_v50 }
 0x73c   :  { %v3389_v19 = vrot.slane %v3375_v54, %v8282_v33  ;;  %v8291_v54 = vld [vmem:[#allocation45_spill] sm:$0xff] }
 0x73d   :  { %v3459_v22 = vrot.slane %v3398_v18, %v8281_v59  ;;  %v3340_v14 = vrot.slane %v3326_v27, %v8282_v33  ;;  %v3341_v20 = vcombine.high %v3333_v56, %v3333_v56  ;;  %v3349_v63 = vrot.slane %v3333_v56, %v8282_v33  ;;  %v8289_v27 = vld [vmem:[#allocation39_spill] sm:$0xff] }
 0x73e   :  { %v3412_v17 = vrot.slane %v3390_v29, %v8282_v33  ;;  %v3420_v49 = vcombine.high %v3398_v18, %v3398_v18  ;;  %v3405_v40 = vrot.slane %v3389_v19, %v8282_v33  ;;  %v3391_v15 = vcombine.high %v3389_v19, %v3389_v19  ;;  %v8290_v29 = vld [vmem:[#allocation37_spill] sm:$0xff] }
 0x73f   :  { %v3363_v21 = vrot.slane %v3341_v20, %v8282_v33  ;;  %3504 = vrot.lane.b32.xlu1 %v3459_v22, %s5449_s18  ;;  %v3427_v48 = vrot.slane %v3349_v63, %v8281_v59  ;;  %v3356_v36 = vrot.slane %v3340_v14, %v8282_v33  ;;  %v3342_v47 = vcombine.high %v3340_v14, %v3340_v14 }
 0x740   :  { %v3463_v38 = vrot.slane %v3412_v17, %v8281_v59  ;;  %v3467_v28 = vrot.slane %v3420_v49, %v8281_v59  ;;  %v3371_v51 = vcombine.high %v3349_v63, %v3349_v63  ;;  %v3475_v52 = vrot.slane %v3405_v40, %v8281_v59 }
 0x741   :  { %v3431_v26 = vrot.slane %v3363_v21, %v8281_v59  ;;  %3488 = vrot.lane.b32.xlu0 %v3427_v48, %s5449_s18  ;;  %v3373_v12 = vcombine.high %v3363_v21, %v3363_v21  ;;  %v3443_v16 = vrot.slane %v3356_v36, %v8281_v59  ;;  %v3370_v45 = vrot.slane %v3342_v47, %v8282_v33  ;;  %v8292_v48 = vld [vmem:[#allocation42_spill] sm:$0xff]  ;;  %v8294_v47 = vld [vmem:[#allocation12_spill] sm:$0xff] }
 0x742   :  { %v3419_v5 = vrot.slane %v3391_v15, %v8282_v33  ;;  %v3372_v39 = vcombine.high %v3356_v36, %v3356_v36  ;;  %v3422_v44 = vcombine.high %v3412_v17, %v3412_v17  ;;  %v3435_v57 = vrot.slane %v3371_v51, %v8281_v59 }
 0x743   :  { %3490 = vrot.lane.b32.xlu1 %v3431_v26, %s5449_s18  ;;  %v3439_v37 = vrot.slane %v3373_v12, %v8281_v59  ;;  %v3447_v2 = vrot.slane %v3370_v45, %v8281_v59  ;;  %v3374_v0 = vcombine.high %v3370_v45, %v3370_v45  ;;  %v3421_v10 = vcombine.high %v3405_v40, %v3405_v40  ;;  %v8293_v26 = vld [vmem:[#allocation15_spill] sm:$0xff] }
 0x744   :  { %v3451_v43 = vrot.slane %v3372_v39, %v8281_v59  ;;  %v3423_v4 = vcombine.high %v3419_v5, %v3419_v5  ;;  %v3471_v23 = vrot.slane %v3422_v44, %v8281_v59  ;;  %v3479_v7 = vrot.slane %v3419_v5, %v8281_v59  ;;  %v8295_v5 = vld [vmem:[#allocation18_spill] sm:$0xff] }
 0x745   :  { %3506 = vrot.lane.b32.xlu0 %v3463_v38, %s5449_s18  ;;  %v3455_v32 = vrot.slane %v3374_v0, %v8281_v59  ;;  %v3483_v35 = vrot.slane %v3421_v10, %v8281_v59  ;;  %v7373_v33 = vadd.f32 %v8288_v24, %v7343_v9  ;;  %v7379_v56 = vadd.f32 %v7343_v9, %v8289_v27 }
 0x746   :  { %v3487_v3 = vrot.slane %v3423_v4, %v8281_v59  ;;  %v7383_v22 = vadd.f32 %v8290_v29, %v7343_v9  ;;  %v7389_v17 = vadd.f32 %v7343_v9, %v8291_v54  ;;  %v7393_v36 = vadd.f32 %v8292_v48, %v7343_v9  ;;  %v8301_v54 = vld [vmem:[#allocation9_spill] sm:$0xff] }
 0x747   :  { %3496 = vrot.lane.b32.xlu1 %v3443_v16, %s5449_s18  ;;  %v7397_v19 = vadd.f32 %v7343_v9, %v8293_v26  ;;  %v7401_v12 = vadd.f32 %v8294_v47, %v7343_v9  ;;  %v7411_v39 = vadd.f32 %v7343_v9, %v8295_v5  ;;  %v7453_v48 = vadd.f32 %v7343_v9, %v8301_v54 }
 0x749   :  { %3508 = vrot.lane.b32.xlu0 %v3467_v28, %s5449_s18 }
 0x74b   :  { %3494 = vrot.lane.b32.xlu1 %v3439_v37, %s5449_s18 }
 0x74d   :  { %3512 = vrot.lane.b32.xlu0 %v3475_v52, %s5449_s18 }
 0x74f   :  { %3498 = vrot.lane.b32.xlu1 %v3447_v2, %s5449_s18 }
 0x751   :  { %3492 = vrot.lane.b32.xlu0 %v3435_v57, %s5449_s18  ;;  %v8296_v57 = vld [vmem:[#allocation17_spill] sm:$0xff] }
 0x753   :  { %3500 = vrot.lane.b32.xlu1 %v3451_v43, %s5449_s18  ;;  %v7416_v43 = vadd.f32 %v8296_v57, %v7343_v9 }
 0x755   :  { %3510 = vrot.lane.b32.xlu0 %v3471_v23, %s5449_s18 }
 0x757   :  { %3518 = vrot.lane.b32.xlu1 %v3487_v3, %s5449_s18 }
 0x759   :  { %3514 = vrot.lane.b32.xlu0 %v3479_v7, %s5449_s18 }
 0x75b   :  { %3502 = vrot.lane.b32.xlu1 %v3455_v32, %s5449_s18  ;;  %v8297_v32 = vld [vmem:[#allocation23_spill] sm:$0xff] }
 0x75d   :  { %3516 = vrot.lane.b32.xlu0 %v3483_v35, %s5449_s18  ;;  %v7425_v35 = vadd.f32 %v7343_v9, %v8297_v32 }
 0x7b1   :  { %v3505_v46 = vpop.permute.xlu1 %3504 }
 0x7b2   :  { %v3552_v11 = vadd.f32 %v3505_v46, %v7349_v41  ;;  %v3553_v53 = vadd.f32 %v3505_v46, %v7353_v31  ;;  %v8298_v46 = vld [vmem:[#allocation22_spill] sm:$0xff] }
 0x7b3   :  { %v3489_v55 = vpop.permute.xlu0 %3488 }
 0x7b4   :  { %5251 = vtanh.f32 %v3552_v11  ;;  %v3536_v59 = vadd.f32 %v3489_v55, %v7359_v42  ;;  %v3537_v25 = vadd.f32 %v3489_v55, %v7363_v60  ;;  %v7430_v11 = vadd.f32 %v8298_v46, %v7343_v9 }
 0x7b5   :  { %5253 = vtanh.f32 %v3553_v53  ;;  %v3491_v21 = vpop.permute.xlu1 %3490 }
 0x7b6   :  { %5255 = vtanh.f32 %v3536_v59  ;;  %v3538_v15 = vadd.f32 %v3491_v21, %v7397_v19  ;;  %v3539_v37 = vadd.f32 %v3491_v21, %v7401_v12 }
 0x7b7   :  { %5257 = vtanh.f32 %v3537_v25  ;;  %v3507_v50 = vpop.permute.xlu0 %3506  ;;  %v8299_v25 = vld [vmem:[#allocation41_spill] sm:$0xff] }
 0x7b8   :  { %v3554_v61 = vadd.f32 %v3507_v50, %v7369_v34  ;;  %v3555_v18 = vadd.f32 %v3507_v50, %v7373_v33  ;;  %v7439_v8 = vadd.f32 %v7343_v9, %v8299_v25  ;;  %v8300_v50 = vld [vmem:[#allocation40_spill] sm:$0xff] }
 0x7b9   :  { %v3497_v3 = vpop.permute.xlu1 %3496 }
 0x7ba   :  { %5259 = vtanh.f32 %v3554_v61  ;;  %v3544_v53 = vadd.f32 %v3497_v3, %v7425_v35  ;;  %v3545_v58 = vadd.f32 %v3497_v3, %v7430_v11  ;;  %v7444_v61 = vadd.f32 %v8300_v50, %v7343_v9 }
 0x7bb   :  { %5261 = vtanh.f32 %v3555_v18  ;;  %v3509_v14 = vpop.permute.xlu0 %3508 }
 0x7bc   :  { %v3556_v20 = vadd.f32 %v3509_v14, %v7379_v56  ;;  %v3557_v63 = vadd.f32 %v3509_v14, %v7383_v22 }
 0x7bd   :  { %v3495_v14 = vpop.permute.xlu1 %3494 }
 0x7be   :  { %5263 = vtanh.f32 %v3556_v20 }
 0x7bf   :  { %5265 = vtanh.f32 %v3557_v63  ;;  %v3513_v49 = vpop.permute.xlu0 %3512 }
 0x7c0   :  { %v3560_v16 = vadd.f32 %v3513_v49, %v7389_v17  ;;  %v3561_v40 = vadd.f32 %v3513_v49, %v7393_v36  ;;  %v8302_v49 = vld [vmem:[#allocation7_spill] sm:$0xff] }
 0x7c1   :  { %v5252_v38 = vpop.eup %5251  ;;  %v3499_v5 = vpop.permute.xlu1 %3498 }
 0x7c2   :  { %v5254_v28 = vpop.eup %5253  ;;  %v3624_v45 = vmul.f32 %v5252_v38, %v7345_v62  ;;  %5267 = vtanh.f32 %v3560_v16  ;;  %v7458_v38 = vadd.f32 %v8302_v49, %v7343_v9 }
 0x7c3   :  { %v3625_v51 = vmul.f32 %v5254_v28, %v7345_v62  ;;  %v5256_v52 = vpop.eup %5255  ;;  %5269 = vtanh.f32 %v3561_v40  ;;  %v3493_v2 = vpop.permute.xlu0 %3492 }
 0x7c4   :  { %3704 = vrot.lane.b32.xlu1 %v3624_v45, %s5449_s18  ;;  %v5258_v44 = vpop.eup %5257  ;;  %5271 = vtanh.f32 %v3538_v15  ;;  %v3540_v4 = vadd.f32 %v3493_v2, %v7411_v39  ;;  %v3608_v23 = vmul.f32 %v5256_v52, %v7345_v62  ;;  %v3541_v0 = vadd.f32 %v3493_v2, %v7416_v43  ;;  %v8304_v2 = vld [vmem:[#allocation10_spill] sm:$0xff] }
 0x7c5   :  { %3706 = vrot.lane.b32.xlu0 %v3625_v51, %s5449_s18  ;;  %5273 = vtanh.f32 %v3539_v37  ;;  %v3609_v10 = vmul.f32 %v5258_v44, %v7345_v62  ;;  %v8303_v51 = vld [vmem:[#allocation13_spill] sm:$0xff]  ;;  %v7472_v44 = vadd.f32 %v8304_v2, %v7343_v9  ;;  %v8315_v2 = vld [vmem:[#allocation16_spill] sm:$0xff] }
 0x7c6   :  { %5275 = vtanh.f32 %v3540_v4  ;;  %v7467_v52 = vadd.f32 %v7343_v9, %v8303_v51 }
 0x7c7   :  { %v5260_v7 = vpop.eup %5259  ;;  %v3511_v30 = vpop.permute.xlu0 %3510  ;;  %5277 = vtanh.f32 %v3541_v0 }
 0x7c8   :  { %3672 = vrot.lane.b32.xlu1 %v3608_v23, %s5449_s18  ;;  %v5262_v13 = vpop.eup %5261  ;;  %v3626_v1 = vmul.f32 %v5260_v7, %v7345_v62  ;;  %5279 = vtanh.f32 %v3544_v53  ;;  %v3558_v27 = vadd.f32 %v3511_v30, %v7439_v8  ;;  %v3559_v20 = vadd.f32 %v3511_v30, %v7444_v61  ;;  %v8305_v7 = vld [vmem:[#allocation21_spill] sm:$0xff]  ;;  %v8306_v30 = vld [vmem:[#allocation20_spill] sm:$0xff] }
 0x7c9   :  { %3674 = vrot.lane.b32.xlu0 %v3609_v10, %s5449_s18  ;;  %v3627_v55 = vmul.f32 %v5262_v13, %v7345_v62  ;;  %5281 = vtanh.f32 %v3545_v58  ;;  %v7481_v32 = vadd.f32 %v7343_v9, %v8305_v7  ;;  %v7486_v13 = vadd.f32 %v8306_v30, %v7343_v9 }
 0x7ca   :  { %5283 = vtanh.f32 %v3558_v27 }
 0x7cb   :  { %v5264_v59 = vpop.eup %5263  ;;  %v3515_v18 = vpop.permute.xlu0 %3514  ;;  %5285 = vtanh.f32 %v3559_v20  ;;  %v3542_v46 = vadd.f32 %v3495_v14, %v7481_v32  ;;  %v3543_v58 = vadd.f32 %v3495_v14, %v7486_v13 }
 0x7cc   :  { %3708 = vrot.lane.b32.xlu1 %v3626_v1, %s5449_s18  ;;  %v5266_v24 = vpop.eup %5265  ;;  %v3628_v29 = vmul.f32 %v5264_v59, %v7345_v62  ;;  %v3562_v47 = vadd.f32 %v3515_v18, %v7453_v48  ;;  %v3563_v28 = vadd.f32 %v3515_v18, %v7458_v38  ;;  %v8309_v18 = vld [vmem:[#allocation24_spill] sm:$0xff] }
 0x7cd   :  { %3710 = vrot.lane.b32.xlu0 %v3627_v55, %s5449_s18  ;;  %v3629_v63 = vmul.f32 %v5266_v24, %v7345_v62  ;;  %v3501_v55 = vpop.permute.xlu1 %3500  ;;  %v8307_v24 = vld [vmem:[#allocation25_spill] sm:$0xff]  ;;  %v7500_v27 = vadd.f32 %v8309_v18, %v7343_v9 }
 0x7ce   :  { %5287 = vtanh.f32 %v3562_v47  ;;  %v7495_v50 = vadd.f32 %v7343_v9, %v8307_v24  ;;  %v8313_v47 = vld [vmem:[#allocation26_spill] sm:$0xff] }
 0x7cf   :  { %v5268_v21 = vpop.eup %5267  ;;  %v3517_v15 = vpop.permute.xlu0 %3516  ;;  %5289 = vtanh.f32 %v3563_v28  ;;  %8310 = vst [vmem:[#allocation46_spill] sm:$0xff] %v7500_v27 }
 0x7d0   :  { %3712 = vrot.lane.b32.xlu1 %v3628_v29, %s5449_s18  ;;  %v5270_v26 = vpop.eup %5269  ;;  %v3632_v16 = vmul.f32 %v5268_v21, %v7345_v62  ;;  %v3564_v57 = vadd.f32 %v3517_v15, %v7467_v52  ;;  %v3565_v3 = vadd.f32 %v3517_v15, %v7472_v44  ;;  %8308 = vst [vmem:[#allocation43_spill] sm:$0xff] %v7495_v50 }
 0x7d1   :  { %3714 = vrot.lane.b32.xlu0 %v3629_v63, %s5449_s18  ;;  %v5272_v40 = vpop.eup %5271  ;;  %v3633_v45 = vmul.f32 %v5270_v26, %v7345_v62  ;;  %v3546_v29 = vadd.f32 %v3499_v5, %v7495_v50  ;;  %v3547_v63 = vadd.f32 %v3499_v5, %v7500_v27  ;;  %v8311_v26 = vld [vmem:[#allocation27_spill] sm:$0xff] }
 0x7d2   :  { %v5274_v37 = vpop.eup %5273  ;;  %v3610_v4 = vmul.f32 %v5272_v40, %v7345_v62  ;;  %5291 = vtanh.f32 %v3564_v57  ;;  %v7509_v49 = vadd.f32 %v7343_v9, %v8311_v26  ;;  %v3519_v40 = vpop.permute.xlu1 %3518  ;;  %v7523_v57 = vadd.f32 %v7343_v9, %v8315_v2 }
 0x7d3   :  { %v5276_v23 = vpop.eup %5275  ;;  %v3611_v0 = vmul.f32 %v5274_v37, %v7345_v62  ;;  %5293 = vtanh.f32 %v3565_v3 }
 0x7d4   :  { %3720 = vrot.lane.b32.xlu1 %v3632_v16, %s5449_s18  ;;  %v5278_v10 = vpop.eup %5277  ;;  %v3612_v53 = vmul.f32 %v5276_v23, %v7345_v62  ;;  %5295 = vtanh.f32 %v3542_v46  ;;  %8312 = vst [vmem:[#allocation52_spill] sm:$0xff] %v7509_v49  ;;  %v7514_v16 = vadd.f32 %v8313_v47, %v7343_v9  ;;  %v3548_v28 = vadd.f32 %v3501_v55, %v7509_v49 }
 0x7d5   :  { %3722 = vrot.lane.b32.xlu0 %v3633_v45, %s5449_s18  ;;  %v5280_v1 = vpop.eup %5279  ;;  %v3613_v59 = vmul.f32 %v5278_v10, %v7345_v62  ;;  %5297 = vtanh.f32 %v3543_v58  ;;  %8316 = vst [vmem:[#allocation34_spill] sm:$0xff] %v7523_v57  ;;  %v3566_v3 = vadd.f32 %v3519_v40, %v7523_v57 }
 0x7d6   :  { %v5282_v25 = vpop.eup %5281  ;;  %v3616_v14 = vmul.f32 %v5280_v1, %v7345_v62  ;;  %8314 = vst [vmem:[#allocation38_spill] sm:$0xff] %v7514_v16  ;;  %5299 = vtanh.f32 %v3546_v29  ;;  %v3549_v37 = vadd.f32 %v3501_v55, %v7514_v16  ;;  %v3503_v30 = vpop.permute.xlu1 %3502  ;;  %v8319_v1 = vld [vmem:[#allocation29_spill] sm:$0xff]  ;;  %v8321_v55 = vld [vmem:[#allocation28_spill] sm:$0xff] }
 0x7d7   :  { %v5284_v20 = vpop.eup %5283  ;;  %v3617_v21 = vmul.f32 %v5282_v25, %v7345_v62  ;;  %5301 = vtanh.f32 %v3547_v63  ;;  %v7537_v58 = vadd.f32 %v7343_v9, %v8319_v1 }
 0x7d8   :  { %3676 = vrot.lane.b32.xlu1 %v3610_v4, %s5449_s18  ;;  %v5286_v54 = vpop.eup %5285  ;;  %v3630_v15 = vmul.f32 %v5284_v20, %v7345_v62  ;;  %v8317_v4 = vld [vmem:[#allocation14_spill] sm:$0xff]  ;;  %5303 = vtanh.f32 %v3548_v28 }
 0x7d9   :  { %3678 = vrot.lane.b32.xlu0 %v3611_v0, %s5449_s18  ;;  %v3631_v51 = vmul.f32 %v5286_v54, %v7345_v62  ;;  %v7528_v23 = vadd.f32 %v8317_v4, %v7343_v9  ;;  %5305 = vtanh.f32 %v3549_v37  ;;  %8320 = vst [vmem:[#allocation48_spill] sm:$0xff] %v7537_v58  ;;  %v3550_v25 = vadd.f32 %v3503_v30, %v7537_v58 }
 0x7da   :  { %5307 = vtanh.f32 %v3566_v3 }
 0x7db   :  { %v5288_v45 = vpop.eup %5287  ;;  %8318 = vst [vmem:[#allocation44_spill] sm:$0xff] %v7528_v23  ;;  %v3567_v7 = vadd.f32 %v3519_v40, %v7528_v23 }
 0x7dc   :  { %3680 = vrot.lane.b32.xlu1 %v3612_v53, %s5449_s18  ;;  %v5290_v5 = vpop.eup %5289  ;;  %v3634_v0 = vmul.f32 %v5288_v45, %v7345_v62 }
 0x7dd   :  { %3682 = vrot.lane.b32.xlu0 %v3613_v59, %s5449_s18  ;;  %v3635_v46 = vmul.f32 %v5290_v5, %v7345_v62  ;;  %v7542_v59 = vadd.f32 %v8321_v55, %v7343_v9  ;;  %5309 = vtanh.f32 %v3567_v7 }
 0x7de   :  { %5311 = vtanh.f32 %v3550_v25 }
 0x7df   :  { %v5292_v10 = vpop.eup %5291  ;;  %8322 = vst [vmem:[#allocation50_spill] sm:$0xff] %v7542_v59  ;;  %v3551_v29 = vadd.f32 %v3503_v30, %v7542_v59 }
 0x7e0   :  { %3688 = vrot.lane.b32.xlu1 %v3616_v14, %s5449_s18  ;;  %v5294_v53 = vpop.eup %5293  ;;  %v3636_v24 = vmul.f32 %v5292_v10, %v7345_v62 }
 0x7e1   :  { %3690 = vrot.lane.b32.xlu0 %v3617_v21, %s5449_s18  ;;  %v5296_v18 = vpop.eup %5295  ;;  %v3637_v14 = vmul.f32 %v5294_v53, %v7345_v62  ;;  %5313 = vtanh.f32 %v3551_v29 }
 0x7e2   :  { %v5298_v20 = vpop.eup %5297  ;;  %v3614_v9 = vmul.f32 %v5296_v18, %v7345_v62 }
 0x7e3   :  { %v5300_v63 = vpop.eup %5299  ;;  %v3615_v21 = vmul.f32 %v5298_v20, %v7345_v62 }
 0x7e4   :  { %3716 = vrot.lane.b32.xlu1 %v3630_v15, %s5449_s18  ;;  %v5302_v54 = vpop.eup %5301  ;;  %v3618_v26 = vmul.f32 %v5300_v63, %v7345_v62 }
 0x7e5   :  { %3718 = vrot.lane.b32.xlu0 %v3631_v51, %s5449_s18  ;;  %v5304_v47 = vpop.eup %5303  ;;  %v3619_v40 = vmul.f32 %v5302_v54, %v7345_v62 }
 0x7e6   :  { %v5306_v28 = vpop.eup %5305  ;;  %v3620_v15 = vmul.f32 %v5304_v47, %v7345_v62 }
 0x7e7   :  { %v5308_v45 = vpop.eup %5307  ;;  %v3621_v37 = vmul.f32 %v5306_v28, %v7345_v62 }
 0x7e8   :  { %3724 = vrot.lane.b32.xlu1 %v3634_v0, %s5449_s18  ;;  %v3638_v5 = vmul.f32 %v5308_v45, %v7345_v62 }
 0x7e9   :  { %3726 = vrot.lane.b32.xlu0 %v3635_v46, %s5449_s18 }
 0x7ea   :  { %v5310_v51 = vpop.eup %5309 }
 0x7eb   :  { %v5312_v2 = vpop.eup %5311  ;;  %v3639_v4 = vmul.f32 %v5310_v51, %v7345_v62 }
 0x7ec   :  { %3728 = vrot.lane.b32.xlu1 %v3636_v24, %s5449_s18  ;;  %v3622_v0 = vmul.f32 %v5312_v2, %v7345_v62 }
 0x7ed   :  { %3730 = vrot.lane.b32.xlu0 %v3637_v14, %s5449_s18 }
 0x7ee   :  { %v5314_v3 = vpop.eup %5313 }
 0x7ef   :  { %v3623_v10 = vmul.f32 %v5314_v3, %v7345_v62 }
 0x7f0   :  { %3684 = vrot.lane.b32.xlu1 %v3614_v9, %s5449_s18 }
 0x7f1   :  { %3686 = vrot.lane.b32.xlu0 %v3615_v21, %s5449_s18 }
 0x7f4   :  { %3692 = vrot.lane.b32.xlu1 %v3618_v26, %s5449_s18 }
 0x7f5   :  { %3694 = vrot.lane.b32.xlu0 %v3619_v40, %s5449_s18 }
 0x7f8   :  { %3696 = vrot.lane.b32.xlu1 %v3620_v15, %s5449_s18 }
 0x7f9   :  { %3698 = vrot.lane.b32.xlu0 %v3621_v37, %s5449_s18 }
 0x7fc   :  { %3732 = vrot.lane.b32.xlu1 %v3638_v5, %s5449_s18 }
 0x7fd   :  { %3734 = vrot.lane.b32.xlu0 %v3639_v4, %s5449_s18 }
 0x800   :  { %3700 = vrot.lane.b32.xlu1 %v3622_v0, %s5449_s18 }
 0x801   :  { %3702 = vrot.lane.b32.xlu0 %v3623_v10, %s5449_s18 }
 0x836   :  { %v3705_v7 = vpop.permute.xlu1 %3704 }
 0x837   :  { %v3816_v30 = vsel %vm484_vm0, %v3705_v7, 0.0  ;;  %v3707_v46 = vpop.permute.xlu0 %3706 }
 0x838   :  { %v3819_v53 = vsel %vm484_vm0, %v3707_v46, 0.0  ;;  %3817 = vadd.xlane.f32.xlu0 %v3816_v30 }
 0x839   :  { %3820 = vadd.xlane.f32.xlu1 %v3819_v53 }
 0x83a   :  { %v3673_v1 = vpop.permute.xlu1 %3672 }
 0x83b   :  { %v3768_v55 = vsel %vm484_vm0, %v3673_v1, 0.0  ;;  %v3675_v25 = vpop.permute.xlu0 %3674 }
 0x83c   :  { %v3771_v24 = vsel %vm484_vm0, %v3675_v25, 0.0 }
 0x83d   :  { %3769 = vadd.xlane.f32.xlu1 %v3768_v55  ;;  %3772 = vadd.xlane.f32.xlu0 %v3771_v24 }
 0x83e   :  { %v3709_v62 = vpop.permute.xlu1 %3708 }
 0x83f   :  { %v3822_v18 = vsel %vm484_vm0, %v3709_v62, 0.0  ;;  %v3711_v29 = vpop.permute.xlu0 %3710 }
 0x840   :  { %v3825_v14 = vsel %vm484_vm0, %v3711_v29, 0.0 }
 0x841   :  { %3823 = vadd.xlane.f32.xlu0 %v3822_v18  ;;  %3826 = vadd.xlane.f32.xlu1 %v3825_v14 }
 0x842   :  { %v3713_v20 = vpop.permute.xlu1 %3712 }
 0x843   :  { %v3828_v9 = vsel %vm484_vm0, %v3713_v20, 0.0  ;;  %v3715_v63 = vpop.permute.xlu0 %3714 }
 0x844   :  { %v3831_v21 = vsel %vm484_vm0, %v3715_v63, 0.0 }
 0x845   :  { %3829 = vadd.xlane.f32.xlu0 %v3828_v9  ;;  %3832 = vadd.xlane.f32.xlu1 %v3831_v21 }
 0x846   :  { %v3721_v54 = vpop.permute.xlu1 %3720 }
 0x847   :  { %v3840_v26 = vsel %vm484_vm0, %v3721_v54, 0.0  ;;  %v3723_v47 = vpop.permute.xlu0 %3722 }
 0x848   :  { %v3843_v40 = vsel %vm484_vm0, %v3723_v47, 0.0 }
 0x849   :  { %3841 = vadd.xlane.f32.xlu0 %v3840_v26  ;;  %3844 = vadd.xlane.f32.xlu1 %v3843_v40 }
 0x84a   :  { %v3677_v28 = vpop.permute.xlu1 %3676 }
 0x84b   :  { %v3774_v15 = vsel %vm484_vm0, %v3677_v28, 0.0  ;;  %v3679_v45 = vpop.permute.xlu0 %3678 }
 0x84c   :  { %v3777_v37 = vsel %vm484_vm0, %v3679_v45, 0.0 }
 0x84d   :  { %3775 = vadd.xlane.f32.xlu0 %v3774_v15  ;;  %3778 = vadd.xlane.f32.xlu1 %v3777_v37 }
 0x84e   :  { %v3681_v51 = vpop.permute.xlu1 %3680 }
 0x84f   :  { %v3780_v5 = vsel %vm484_vm0, %v3681_v51, 0.0  ;;  %v3683_v2 = vpop.permute.xlu0 %3682 }
 0x850   :  { %v3783_v4 = vsel %vm484_vm0, %v3683_v2, 0.0 }
 0x851   :  { %3781 = vadd.xlane.f32.xlu0 %v3780_v5  ;;  %3784 = vadd.xlane.f32.xlu1 %v3783_v4 }
 0x852   :  { %v3689_v3 = vpop.permute.xlu1 %3688 }
 0x853   :  { %v3792_v0 = vsel %vm484_vm0, %v3689_v3, 0.0  ;;  %v3691_v10 = vpop.permute.xlu0 %3690 }
 0x854   :  { %v3795_v7 = vsel %vm484_vm0, %v3691_v10, 0.0 }
 0x855   :  { %3793 = vadd.xlane.f32.xlu0 %v3792_v0  ;;  %3796 = vadd.xlane.f32.xlu1 %v3795_v7 }
 0x856   :  { %v3717_v30 = vpop.permute.xlu1 %3716 }
 0x857   :  { %v3834_v46 = vsel %vm484_vm0, %v3717_v30, 0.0  ;;  %v3719_v53 = vpop.permute.xlu0 %3718 }
 0x858   :  { %v3837_v1 = vsel %vm484_vm0, %v3719_v53, 0.0  ;;  %v5417_v53 = vld [vmem:[%s8036_s1 + $0x18] sm:$0xff] }
 0x859   :  { %3835 = vadd.xlane.f32.xlu0 %v3834_v46  ;;  %3838 = vadd.xlane.f32.xlu1 %v3837_v1  ;;  %v5416_v46 = vld [vmem:[%s8036_s1 + $0x10] sm:$0xff]  ;;  %v5418_v1 = vld [vmem:[%s8036_s1 + $0x8] sm:$0xff] }
 0x85a   :  { %v3725_v55 = vpop.permute.xlu1 %3724 }
 0x85b   :  { %v3846_v25 = vsel %vm484_vm0, %v3725_v55, 0.0  ;;  %v3727_v24 = vpop.permute.xlu0 %3726  ;;  %v5419_v55 = vld [vmem:[%s8036_s1] sm:$0xff] }
 0x85c   :  { %v3849_v62 = vsel %vm484_vm0, %v3727_v24, 0.0 }
 0x85d   :  { %3847 = vadd.xlane.f32.xlu0 %v3846_v25  ;;  %3850 = vadd.xlane.f32.xlu1 %v3849_v62 }
 0x85e   :  { %v3729_v18 = vpop.permute.xlu1 %3728 }
 0x85f   :  { %v3852_v29 = vsel %vm484_vm0, %v3729_v18, 0.0  ;;  %v3731_v14 = vpop.permute.xlu0 %3730 }
 0x860   :  { %v3855_v20 = vsel %vm484_vm0, %v3731_v14, 0.0 }
 0x861   :  { %3853 = vadd.xlane.f32.xlu0 %v3852_v29  ;;  %3856 = vadd.xlane.f32.xlu1 %v3855_v20 }
 0x862   :  { %v3685_v9 = vpop.permute.xlu1 %3684 }
 0x863   :  { %v3786_v63 = vsel %vm484_vm0, %v3685_v9, 0.0  ;;  %v3687_v21 = vpop.permute.xlu0 %3686 }
 0x864   :  { %v3789_v54 = vsel %vm484_vm0, %v3687_v21, 0.0 }
 0x865   :  { %3787 = vadd.xlane.f32.xlu0 %v3786_v63  ;;  %3790 = vadd.xlane.f32.xlu1 %v3789_v54 }
 0x866   :  { %v3693_v26 = vpop.permute.xlu1 %3692 }
 0x867   :  { %v3798_v47 = vsel %vm484_vm0, %v3693_v26, 0.0  ;;  %v3695_v40 = vpop.permute.xlu0 %3694 }
 0x868   :  { %v3801_v28 = vsel %vm484_vm0, %v3695_v40, 0.0 }
 0x869   :  { %3799 = vadd.xlane.f32.xlu0 %v3798_v47  ;;  %3802 = vadd.xlane.f32.xlu1 %v3801_v28 }
 0x86a   :  { %v3697_v15 = vpop.permute.xlu1 %3696 }
 0x86b   :  { %v3804_v45 = vsel %vm484_vm0, %v3697_v15, 0.0  ;;  %v3699_v37 = vpop.permute.xlu0 %3698 }
 0x86c   :  { %v3807_v51 = vsel %vm484_vm0, %v3699_v37, 0.0 }
 0x86d   :  { %3805 = vadd.xlane.f32.xlu0 %v3804_v45  ;;  %3808 = vadd.xlane.f32.xlu1 %v3807_v51 }
 0x86e   :  { %v3733_v5 = vpop.permute.xlu1 %3732 }
 0x86f   :  { %v3735_v2 = vpop.permute.xlu0 %3734  ;;  %v3858_v7 = vsel %vm484_vm0, %v3733_v5, 0.0 }
 0x870   :  { %v3861_v30 = vsel %vm484_vm0, %v3735_v2, 0.0 }
 0x872   :  { %v3701_v4 = vpop.permute.xlu1 %3700 }
 0x873   :  { %v3810_v3 = vsel %vm484_vm0, %v3701_v4, 0.0  ;;  %v3703_v0 = vpop.permute.xlu0 %3702 }
 0x874   :  { %v3813_v10 = vsel %vm484_vm0, %v3703_v0, 0.0  ;;  %3811 = vadd.xlane.f32.xlu0 %v3810_v3 }
 0x875   :  { %3814 = vadd.xlane.f32.xlu1 %v3813_v10 }
 0x878   :  { %3859 = vadd.xlane.f32.xlu0 %v3858_v7 }
 0x879   :  { %3862 = vadd.xlane.f32.xlu1 %v3861_v30 }
 0x88a   :  { %4487 = vrot.lane.b32.xlu1 %v5416_v46, %s5447_s22 }
 0x88e   :  { %4489 = vrot.lane.b32.xlu0 %v5417_v53, %s5447_s22  ;;  %4485 = vrot.lane.b32.xlu1 %v5418_v1, %s5447_s22 }
 0x892   :  { %4483 = vrot.lane.b32.xlu0 %v5419_v55, %s5447_s22 }
 0x8c1   :  { %v3818_v25 = vpop.xlane.xlu0 %3817 }
 0x8c2   :  { %v3821_v24 = vpop.xlane.xlu1 %3820 }
 0x8c3   :  { %v3920_v62 = vmax.f32 %v3818_v25, %v3821_v24 }
 0x8c5   :  { %v3921_v18 = vrot.slane %v3920_v62, 4 }
 0x8c6   :  { %v3770_v29 = vpop.xlane.xlu1 %3769  ;;  %v3773_v14 = vpop.xlane.xlu0 %3772 }
 0x8c7   :  { %v3922_v20 = vmax.f32 %v3920_v62, %v3921_v18  ;;  %v3864_v9 = vmax.f32 %v3770_v29, %v3773_v14 }
 0x8c9   :  { %v3923_v63 = vrot.slane %v3922_v20, 2  ;;  %v3865_v21 = vrot.slane %v3864_v9, 4 }
 0x8ca   :  { %v3827_v54 = vpop.xlane.xlu1 %3826  ;;  %v3824_v26 = vpop.xlane.xlu0 %3823 }
 0x8cb   :  { %v3924_v47 = vmax.f32 %v3922_v20, %v3923_v63  ;;  %v3866_v40 = vmax.f32 %v3864_v9, %v3865_v21  ;;  %v3927_v28 = vmax.f32 %v3824_v26, %v3827_v54 }
 0x8cd   :  { %v3925_v15 = vrot.slane %v3924_v47, 1  ;;  %v3867_v45 = vrot.slane %v3866_v40, 2  ;;  %v3928_v37 = vrot.slane %v3927_v28, 4 }
 0x8ce   :  { %v3833_v51 = vpop.xlane.xlu1 %3832  ;;  %v3830_v5 = vpop.xlane.xlu0 %3829 }
 0x8cf   :  { %v3926_v2 = vmax.f32 %v3924_v47, %v3925_v15  ;;  %v3868_v4 = vmax.f32 %v3866_v40, %v3867_v45  ;;  %v3929_v3 = vmax.f32 %v3927_v28, %v3928_v37  ;;  %v3934_v0 = vmax.f32 %v3830_v5, %v3833_v51 }
 0x8d1   :  { %v3992_v10 = vsub.f32 %v3818_v25, %v3926_v2  ;;  %v3993_v7 = vsub.f32 %v3821_v24, %v3926_v2  ;;  %v3869_v30 = vrot.slane %v3868_v4, 1  ;;  %v3930_v46 = vrot.slane %v3929_v3, 2 }
 0x8d2   :  { %v3935_v53 = vrot.slane %v3934_v0, 4  ;;  %v7619_v1 = vpop.xlane.xlu1 %3844  ;;  %v7621_v55 = vpop.xlane.xlu0 %3841 }
 0x8d3   :  { %v4040_v62 = vmul.f32 1.442695, %v3992_v10  ;;  %v4042_v18 = vmul.f32 1.442695, %v3993_v7  ;;  %v3870_v20 = vmax.f32 %v3868_v4, %v3869_v30  ;;  %v3931_v9 = vmax.f32 %v3929_v3, %v3930_v46 }
 0x8d4   :  { %v3936_v63 = vmax.f32 %v3934_v0, %v3935_v53  ;;  %v3948_v21 = vmax.f32 %v7621_v55, %v7619_v1 }
 0x8d5   :  { %5315 = vpow2.f32 %v4040_v62  ;;  %v3976_v47 = vsub.f32 %v3770_v29, %v3870_v20  ;;  %v3977_v40 = vsub.f32 %v3773_v14, %v3870_v20  ;;  %v3932_v25 = vrot.slane %v3931_v9, 1 }
 0x8d6   :  { %5317 = vpow2.f32 %v4042_v18  ;;  %v3937_v24 = vrot.slane %v3936_v63, 2  ;;  %v3949_v28 = vrot.slane %v3948_v21, 4  ;;  %v7625_v15 = vpop.xlane.xlu1 %3778  ;;  %v7627_v45 = vpop.xlane.xlu0 %3775 }
 0x8d7   :  { %v4008_v37 = vmul.f32 1.442695, %v3976_v47  ;;  %v4010_v2 = vmul.f32 1.442695, %v3977_v40  ;;  %v3933_v10 = vmax.f32 %v3931_v9, %v3932_v25  ;;  %v3871_v4 = vmax.f32 %v7627_v45, %v7625_v15 }
 0x8d8   :  { %v3938_v3 = vmax.f32 %v3936_v63, %v3937_v24  ;;  %v3950_v0 = vmax.f32 %v3948_v21, %v3949_v28 }
 0x8d9   :  { %5319 = vpow2.f32 %v4008_v37  ;;  %v3994_v7 = vsub.f32 %v3824_v26, %v3933_v10  ;;  %v3995_v29 = vsub.f32 %v3827_v54, %v3933_v10  ;;  %v3872_v14 = vrot.slane %v3871_v4, 4 }
 0x8da   :  { %5321 = vpow2.f32 %v4010_v2  ;;  %v3939_v30 = vrot.slane %v3938_v3, 1  ;;  %v3951_v46 = vrot.slane %v3950_v0, 2  ;;  %v7631_v53 = vpop.xlane.xlu1 %3784  ;;  %v7633_v62 = vpop.xlane.xlu0 %3781 }
 0x8db   :  { %v4044_v18 = vmul.f32 1.442695, %v3994_v7  ;;  %v4046_v20 = vmul.f32 1.442695, %v3995_v29  ;;  %v3873_v47 = vmax.f32 %v3871_v4, %v3872_v14  ;;  %v3878_v9 = vmax.f32 %v7633_v62, %v7631_v53 }
 0x8dc   :  { %v3940_v40 = vmax.f32 %v3938_v3, %v3939_v30  ;;  %v3952_v63 = vmax.f32 %v3950_v0, %v3951_v46 }
 0x8dd   :  { %5323 = vpow2.f32 %v4044_v18  ;;  %v3874_v21 = vrot.slane %v3873_v47, 2  ;;  %v3879_v26 = vrot.slane %v3878_v9, 4 }
 0x8de   :  { %5325 = vpow2.f32 %v4046_v20  ;;  %v3996_v54 = vsub.f32 %v3830_v5, %v3940_v40  ;;  %v3997_v25 = vsub.f32 %v3833_v51, %v3940_v40  ;;  %v3953_v24 = vrot.slane %v3952_v63, 1  ;;  %v7637_v28 = vpop.xlane.xlu1 %3796  ;;  %v7639_v37 = vpop.xlane.xlu0 %3793 }
 0x8df   :  { %v3875_v2 = vmax.f32 %v3873_v47, %v3874_v21  ;;  %v3880_v10 = vmax.f32 %v3878_v9, %v3879_v26 }
 0x8e0   :  { %v4048_v7 = vmul.f32 1.442695, %v3996_v54  ;;  %v4050_v4 = vmul.f32 1.442695, %v3997_v25  ;;  %v3954_v29 = vmax.f32 %v3952_v63, %v3953_v24 }
 0x8e1   :  { %v3876_v14 = vrot.slane %v3875_v2, 1  ;;  %v3881_v6 = vrot.slane %v3880_v10, 2 }
 0x8e2   :  { %v5316_v3 = vpop.eup %5315  ;;  %5327 = vpow2.f32 %v4048_v7  ;;  %v4000_v0 = vsub.f32 %v7621_v55, %v3954_v29  ;;  %v4001_v5 = vsub.f32 %v7619_v1, %v3954_v29  ;;  %v7643_v51 = vpop.xlane.xlu1 %3838 }
 0x8e3   :  { %v7645_v30 = vpop.xlane.xlu0 %3835  ;;  %v5318_v46 = vpop.eup %5317  ;;  %v4200_v18 = vmul.f32 %v5316_v3, %v7349_v41  ;;  %5329 = vpow2.f32 %v4050_v4  ;;  %v3877_v20 = vmax.f32 %v3875_v2, %v3876_v14  ;;  %v3882_v47 = vmax.f32 %v3880_v10, %v3881_v6 }
 0x8e4   :  { %v4128_v9 = vadd.f32 %v5318_v46, %v5316_v3  ;;  %v4201_v40 = vmul.f32 %v5318_v46, %v7353_v31  ;;  %v4056_v63 = vmul.f32 1.442695, %v4000_v0  ;;  %v4058_v21 = vmul.f32 1.442695, %v4001_v5 }
 0x8e5   :  { %v4289_v26 = vsel %vm4216_vm9, %v4200_v18, 0.0  ;;  %v3978_v55 = vsub.f32 %v7627_v45, %v3877_v20  ;;  %v3979_v1 = vsub.f32 %v7625_v15, %v3877_v20  ;;  %v3883_v54 = vrot.slane %v3882_v47, 1 }
 0x8e6   :  { %v5320_v25 = vpop.eup %5319  ;;  %v4129_v24 = vrot.slane %v4128_v9, 4  ;;  %v4290_v7 = vsel %vm4216_vm9, %v4201_v40, 0.0  ;;  %5331 = vpow2.f32 %v4056_v63  ;;  %v7653_v41 = vpop.xlane.xlu1 %3850 }
 0x8e7   :  { %v7655_v6 = vpop.xlane.xlu0 %3847  ;;  %v5322_v2 = vpop.eup %5321  ;;  %v4291_v31 = vadd.f32 %v4290_v7, %v4289_v26  ;;  %v4184_v10 = vmul.f32 %v5320_v25, %v7359_v42  ;;  %5333 = vpow2.f32 %v4058_v21  ;;  %v4012_v4 = vmul.f32 1.442695, %v3978_v55 }
 0x8e8   :  { %v4072_v29 = vadd.f32 %v5322_v2, %v5320_v25  ;;  %v4185_v45 = vmul.f32 %v5322_v2, %v7363_v60  ;;  %v4014_v15 = vmul.f32 1.442695, %v3979_v1  ;;  %v7660_v3 = vmax.f32 %v3882_v47, %v3883_v54 }
 0x8e9   :  { %v4217_v14 = vsel %vm4216_vm9, %v4184_v10, 0.0  ;;  %5335 = vpow2.f32 %v4012_v4  ;;  %v4130_v5 = vadd.f32 %v4129_v24, %v4128_v9  ;;  %v4292_v54 = vrot.slane %v4291_v31, 4 }
 0x8ea   :  { %v5324_v0 = vpop.eup %5323  ;;  %v4073_v46 = vrot.slane %v4072_v29, 4  ;;  %v4218_v18 = vsel %vm4216_vm9, %v4185_v45, 0.0  ;;  %5337 = vpow2.f32 %v4014_v15  ;;  %v7663_v20 = vpop.xlane.xlu1 %3856  ;;  %v3981_v9 = vsub.f32 %v7631_v53, %v7660_v3 }
 0x8eb   :  { %v7665_v42 = vpop.xlane.xlu0 %3853  ;;  %v5326_v40 = vpop.eup %5325  ;;  %v4219_v63 = vadd.f32 %v4218_v18, %v4217_v14  ;;  %v4202_v60 = vmul.f32 %v5324_v0, %v7369_v34  ;;  %v4131_v1 = vrot.slane %v4130_v5, 2  ;;  %v3892_v45 = vmax.f32 %v7639_v37, %v7637_v28 }
 0x8ec   :  { %v4074_v21 = vadd.f32 %v4073_v46, %v4072_v29  ;;  %v4135_v26 = vadd.f32 %v5326_v40, %v5324_v0  ;;  %v4203_v55 = vmul.f32 %v5326_v40, %v7373_v33  ;;  %v4293_v46 = vadd.f32 %v4292_v54, %v4291_v31 }
 0x8ed   :  { %v4298_v47 = vsel %vm4216_vm9, %v4202_v60, 0.0  ;;  %v4132_v0 = vadd.f32 %v4131_v1, %v4130_v5  ;;  %v4220_v31 = vrot.slane %v4219_v63, 4 }
 0x8ee   :  { %v4136_v25 = vrot.slane %v4135_v26, 4  ;;  %v4299_v24 = vsel %vm4216_vm9, %v4203_v55, 0.0  ;;  %v7673_v7 = vpop.xlane.xlu1 %3790  ;;  %v4075_v34 = vrot.slane %v4074_v21, 2 }
 0x8ef   :  { %v7675_v2 = vpop.xlane.xlu0 %3787  ;;  %v5328_v10 = vpop.eup %5327  ;;  %v4300_v4 = vadd.f32 %v4299_v24, %v4298_v47 }
 0x8f0   :  { %v5330_v29 = vpop.eup %5329  ;;  %v4204_v33 = vmul.f32 %v5328_v10, %v7379_v56  ;;  %v4137_v15 = vadd.f32 %v4136_v25, %v4135_v26  ;;  %v4076_v60 = vadd.f32 %v4075_v34, %v4074_v21  ;;  %v3980_v26 = vsub.f32 %v7633_v62, %v7660_v3 }
 0x8f1   :  { %v4142_v53 = vadd.f32 %v5330_v29, %v5328_v10  ;;  %v4205_v14 = vmul.f32 %v5330_v29, %v7383_v22  ;;  %v3893_v25 = vrot.slane %v3892_v45, 4  ;;  %v4133_v10 = vrot.slane %v4132_v0, 1 }
 0x8f2   :  { %v4307_v18 = vsel %vm4216_vm9, %v4204_v33, 0.0  ;;  %v7690_v22 = vpop.xlane.xlu1 %3802  ;;  %v4138_v5 = vrot.slane %v4137_v15, 2  ;;  %v4294_v34 = vrot.slane %v4293_v46, 2  ;;  %v4016_v57 = vmul.f32 1.442695, %v3980_v26 }
 0x8f3   :  { %v5332_v40 = vpop.eup %5331  ;;  %v4308_v55 = vsel %vm4216_vm9, %v4205_v14, 0.0  ;;  %v7683_v23 = vpop.xlane.xlu0 %3799  ;;  %v4143_v29 = vrot.slane %v4142_v53, 4  ;;  %v3894_v59 = vmax.f32 %v3892_v45, %v3893_v25  ;;  %v3941_v25 = vmax.f32 %v7645_v30, %v7643_v51 }
 0x8f4   :  { %v5334_v47 = vpop.eup %5333  ;;  %v7685_v24 = vadd.f32 %v4308_v55, %v4307_v18  ;;  %v4208_v56 = vmul.f32 %v5332_v40, %v7389_v17  ;;  %v4077_v17 = vrot.slane %v4076_v60, 1  ;;  %v4301_v18 = vrot.slane %v4300_v4, 4 }
 0x8f5   :  { %v7692_v1 = vadd.f32 %v5334_v47, %v5332_v40  ;;  %v4209_v21 = vmul.f32 %v5334_v47, %v7393_v36  ;;  %v7699_v40 = vadd.f32 %v4220_v31, %v4219_v63  ;;  %v4139_v58 = vadd.f32 %v4138_v5, %v4137_v15 }
 0x8f6   :  { %v5336_v54 = vpop.eup %5335  ;;  %v4325_v33 = vsel %vm4216_vm9, %v4208_v56, 0.0  ;;  %v7705_v56 = vadd.f32 %v4133_v10, %v4132_v0  ;;  %v7707_v49 = vadd.f32 %v4294_v34, %v4293_v46  ;;  %v4144_v27 = vadd.f32 %v4143_v29, %v4142_v53 }
 0x8f7   :  { %v5338_v14 = vpop.eup %5337  ;;  %v4326_v62 = vsel %vm4216_vm9, %v4209_v21, 0.0  ;;  %v4186_v36 = vmul.f32 %v5336_v54, %v7397_v19  ;;  %v7703_v16 = vpop.xlane.xlu0 %3805  ;;  %v7713_v45 = vadd.f32 %v4301_v18, %v4300_v4  ;;  %5339 = vpow2.f32 %v4016_v57 }
 0x8f8   :  { %v7697_v3 = vadd.f32 %v4326_v62, %v4325_v33  ;;  %v4079_v55 = vadd.f32 %v5338_v14, %v5336_v54  ;;  %v4187_v47 = vmul.f32 %v5338_v14, %v7401_v12  ;;  %8323 = vst [vmem:[#allocation33_spill] sm:$0xff] %v7707_v49  ;;  %v7709_v33 = vpop.xlane.xlu1 %3808  ;;  %v7711_v62 = vadd.f32 %v4077_v17, %v4076_v60 }
 0x8f9   :  { %v4226_v63 = vsel %vm4216_vm9, %v4186_v36, 0.0  ;;  %v4018_v0 = vmul.f32 1.442695, %v3981_v9  ;;  %v4140_v26 = vrot.slane %v4139_v58, 1  ;;  %v3895_v53 = vrot.slane %v3894_v59, 2 }
 0x8fa   :  { %v4080_v21 = vrot.slane %v4079_v55, 4  ;;  %v4227_v19 = vsel %vm4216_vm9, %v4187_v47, 0.0  ;;  %v4145_v4 = vrot.slane %v4144_v27, 2  ;;  %v3955_v5 = vmax.f32 %v7655_v6, %v7653_v41 }
 0x8fb   :  { %v7717_v12 = vadd.f32 %v4227_v19, %v4226_v63  ;;  %5341 = vpow2.f32 %v4018_v0  ;;  %v3896_v9 = vmax.f32 %v3894_v59, %v3895_v53  ;;  %v3942_v10 = vrot.slane %v3941_v25, 4 }
 0x8fc   :  { %v4081_v15 = vadd.f32 %v4080_v21, %v4079_v55  ;;  %5343 = vrcp.f32 %v7705_v56  ;;  %v4157_v34 = vrot.slane %v7692_v1, 4  ;;  %v3956_v14 = vrot.slane %v3955_v5, 4 }
 0x8fd   :  { %v7722_v60 = vpop.xlane.xlu0 %3811  ;;  %5345 = vrcp.f32 %v7711_v62  ;;  %v3897_v17 = vrot.slane %v3896_v9, 1  ;;  %v3943_v18 = vmax.f32 %v3941_v25, %v3942_v10  ;;  %v3962_v55 = vmax.f32 %v7665_v42, %v7663_v20 }
 0x8fe   :  { %v4082_v31 = vrot.slane %v4081_v15, 2  ;;  %v7726_v54 = vpop.xlane.xlu1 %3814  ;;  %v3885_v36 = vmax.f32 %v7675_v2, %v7673_v7  ;;  %v7738_v21 = vadd.f32 %v4140_v26, %v4139_v58  ;;  %v7740_v59 = vadd.f32 %v4145_v4, %v4144_v27 }
 0x8ff   :  { %v3957_v19 = vmax.f32 %v3955_v5, %v3956_v14  ;;  %v3944_v53 = vrot.slane %v3943_v18, 2  ;;  %v7746_v57 = vadd.f32 %v4157_v34, %v7692_v1 }
 0x900   :  { %v4083_v29 = vadd.f32 %v4082_v31, %v4081_v15  ;;  %v3898_v15 = vmax.f32 %v3896_v9, %v3897_v17  ;;  %v3963_v31 = vrot.slane %v3962_v55, 4  ;;  %v3886_v25 = vrot.slane %v3885_v36, 4 }
 0x901   :  { %v7736_v47 = vpop.xlane.xlu0 %3859  ;;  %v3958_v49 = vrot.slane %v3957_v19, 2  ;;  %v3945_v26 = vmax.f32 %v3943_v18, %v3944_v53  ;;  %5347 = vrcp.f32 %v7738_v21 }
 0x902   :  { %v4084_v63 = vrot.slane %v4083_v29, 1  ;;  %v7742_v0 = vpop.xlane.xlu1 %3862  ;;  %v3984_v58 = vsub.f32 %v7639_v37, %v3898_v15  ;;  %v3985_v27 = vsub.f32 %v7637_v28, %v3898_v15  ;;  %v3964_v4 = vmax.f32 %v3962_v55, %v3963_v31 }
 0x903   :  { %v3959_v14 = vmax.f32 %v3957_v19, %v3958_v49  ;;  %v3887_v17 = vmax.f32 %v3885_v36, %v3886_v25  ;;  %v4229_v15 = vrot.slane %v7717_v12, 4  ;;  %v3899_v31 = vmax.f32 %v7683_v23, %v7690_v22 }
 0x904   :  { %v7748_v46 = vadd.f32 %v4084_v63, %v4083_v29  ;;  %v4024_v1 = vmul.f32 1.442695, %v3984_v58  ;;  %v4026_v34 = vmul.f32 1.442695, %v3985_v27  ;;  %v3946_v29 = vrot.slane %v3945_v26, 1  ;;  %v5340_v55 = vpop.eup %5339 }
 0x905   :  { %v4490_v5 = vpop.permute.xlu0 %4489  ;;  %v3965_v63 = vrot.slane %v3964_v4, 2  ;;  %v3960_v28 = vrot.slane %v3959_v14, 1  ;;  %v3888_v18 = vrot.slane %v3887_v17, 2  ;;  %v4188_v19 = vmul.f32 %v5340_v55, %v7411_v39 }
 0x906   :  { %v4488_v10 = vpop.permute.xlu1 %4487  ;;  %4878 = vmatprep.subr.mxu1 %v4490_v5  ;;  %5349 = vrcp.f32 %v7748_v46  ;;  %v3947_v49 = vmax.f32 %v3945_v26, %v3946_v29 }
 0x907   :  { %4879 = vmatpush3.msra.mxu1 %v4490_v5  ;;  %5351 = vpow2.f32 %v4024_v1  ;;  %v3966_v36 = vmax.f32 %v3964_v4, %v3965_v63  ;;  %v3961_v53 = vmax.f32 %v3959_v14, %v3960_v28  ;;  %v3889_v50 = vmax.f32 %v3887_v17, %v3888_v18 }
 0x908   :  { %4880 = vmatprep.subr.mxu1 %v4488_v10  ;;  %5353 = vpow2.f32 %v4026_v34  ;;  %v5342_v27 = vpop.eup %5341  ;;  %v3998_v5 = vsub.f32 %v7645_v30, %v3947_v49  ;;  %v3999_v37 = vsub.f32 %v7643_v51, %v3947_v49  ;;  %v4235_v4 = vsel %vm4216_vm9, %v4188_v19, 0.0 }
 0x909   :  { %4881 = vmatpush3.msra.mxu1 %v4488_v10  ;;  %v4484_v58 = vpop.permute.xlu0 %4483  ;;  %v3967_v9 = vrot.slane %v3966_v36, 1  ;;  %v7762_v26 = vpop.eup %5343  ;;  %v4086_v10 = vadd.f32 %v5342_v27, %v5340_v55  ;;  %v4189_v39 = vmul.f32 %v5342_v27, %v7416_v43  ;;  %v4002_v14 = vsub.f32 %v7655_v6, %v3961_v53 }
 0x90a   :  { %v4486_v25 = vpop.permute.xlu1 %4485  ;;  %v7767_v1 = vpop.eup %5345  ;;  %v4052_v34 = vmul.f32 1.442695, %v3998_v5  ;;  %v4054_v29 = vmul.f32 1.442695, %v3999_v37  ;;  %v4003_v30 = vsub.f32 %v7653_v41, %v3961_v53  ;;  %v3890_v18 = vrot.slane %v3889_v50, 1 }
 0x90b   :  { %4882 = vmatprep.subr.mxu1 %v4486_v25  ;;  %v3968_v51 = vmax.f32 %v3966_v36, %v3967_v9  ;;  %v4087_v17 = vrot.slane %v4086_v10, 4  ;;  %v4236_v63 = vsel %vm4216_vm9, %v4189_v39, 0.0  ;;  %v4060_v28 = vmul.f32 1.442695, %v4002_v14 }
 0x90c   :  { %4883 = vmatpush3.msra.mxu1 %v4486_v25  ;;  %v7771_v43 = vadd.f32 %v4236_v63, %v4235_v4  ;;  %5355 = vpow2.f32 %v4052_v34  ;;  %v4062_v55 = vmul.f32 1.442695, %v4003_v30  ;;  %v8324_v49 = vmov 0.0  }
 0x90d   :  { %4884 = vmatprep.subr.mxu1 %v4484_v58  ;;  %v4004_v6 = vsub.f32 %v7665_v42, %v3968_v51  ;;  %v4088_v19 = vadd.f32 %v4087_v17, %v4086_v10  ;;  %5357 = vpow2.f32 %v4054_v29  ;;  %v4005_v41 = vsub.f32 %v7663_v20, %v3968_v51 }
 0x90e   :  { %4885 = vmatpush3.msra.mxu1 %v4484_v58  ;;  %v3891_v9 = vmax.f32 %v3889_v50, %v3890_v18  ;;  %5359 = vpow2.f32 %v4060_v28  ;;  %v3900_v36 = vrot.slane %v3899_v31, 4  ;;  %v3906_v53 = vmax.f32 %v7703_v16, %v7709_v33  ;;  %v7779_v5 = vpop.eup %5347 }
 0x90f   :  { %4889 = vmatprep.subr.mxu1 %v8324_v49  ;;  %v4064_v37 = vmul.f32 1.442695, %v4004_v6  ;;  %v4089_v25 = vrot.slane %v4088_v19, 2  ;;  %5361 = vpow2.f32 %v4062_v55  ;;  %v4066_v58 = vmul.f32 1.442695, %v4005_v41 }
 0x910   :  { %v3982_v27 = vsub.f32 %v7675_v2, %v3891_v9  ;;  %v8325_v42 = vrot.slane %v7699_v40, 2  ;;  %v3983_v50 = vsub.f32 %v7673_v7, %v3891_v9  ;;  %v3901_v20 = vmax.f32 %v3899_v31, %v3900_v36 }
 0x911   :  { %5363 = vpow2.f32 %v4064_v37  ;;  %v8326_v39 = vrot.slane %v7713_v45, 2  ;;  %v8327_v14 = vrot.slane %v7685_v24, 4  ;;  %v3907_v7 = vrot.slane %v3906_v53, 4 }
 0x912   :  { %v7784_v10 = vadd.f32 %v8325_v42, %v7699_v40  ;;  %5365 = vpow2.f32 %v4066_v58  ;;  %v4020_v34 = vmul.f32 1.442695, %v3982_v27  ;;  %v4230_v40 = vadd.f32 %v4229_v15, %v7717_v12 }
 0x913   :  { %v7790_v4 = vadd.f32 %v8326_v39, %v7713_v45  ;;  %v7795_v2 = vadd.f32 %v8327_v14, %v7685_v24  ;;  %v7797_v29 = vpop.eup %5349  ;;  %v4022_v30 = vmul.f32 1.442695, %v3983_v50  ;;  %v3902_v51 = vrot.slane %v3901_v20, 2 }
 0x914   :  { %v5352_v31 = vpop.eup %5351  ;;  %v8328_v17 = vrot.slane %v7740_v59, 1  ;;  %v8329_v63 = vrot.slane %v7746_v57, 2  ;;  %v4090_v28 = vadd.f32 %v4089_v25, %v4088_v19  ;;  %5367 = vpow2.f32 %v4020_v34 }
 0x915   :  { %v5354_v18 = vpop.eup %5353  ;;  %v7812_v12 = vmul.f32 %v7762_v26, %v7705_v56  ;;  %v4192_v15 = vmul.f32 %v5352_v31, %v7425_v35  ;;  %5369 = vpow2.f32 %v4022_v30  ;;  %v3903_v55 = vmax.f32 %v3901_v20, %v3902_v51 }
 0x916   :  { %v7803_v45 = vadd.f32 %v8328_v17, %v7740_v59  ;;  %v7808_v24 = vadd.f32 %v8329_v63, %v7746_v57  ;;  %v4100_v6 = vadd.f32 %v5354_v18, %v5352_v31  ;;  %v4193_v59 = vmul.f32 %v5354_v18, %v7430_v11 }
 0x917   :  { %v3908_v41 = vmax.f32 %v3906_v53, %v3907_v7  ;;  %v3913_v9 = vmax.f32 %v7722_v60, %v7726_v54  ;;  %v4231_v19 = vrot.slane %v4230_v40, 2  ;;  %v4253_v37 = vsel %vm4216_vm9, %v4192_v15, 0.0 }
 0x918   :  { %v3904_v36 = vrot.slane %v3903_v55, 1  ;;  %v4091_v25 = vrot.slane %v4090_v28, 1  ;;  %v4101_v58 = vrot.slane %v4100_v6, 4  ;;  %v4254_v35 = vsel %vm4216_vm9, %v4193_v59, 0.0 }
 0x919   :  { %5371 = vrcp.f32 %v7803_v45  ;;  %v4161_v11 = vrot.slane %v7808_v24, 1  ;;  %v7824_v53 = vadd.f32 %v4254_v35, %v4253_v37  ;;  %v5356_v42 = vpop.eup %5355  ;;  %v7829_v20 = vmul.f32 %v7767_v1, %v7711_v62 }
 0x91a   :  { %v3905_v27 = vmax.f32 %v3903_v55, %v3904_v36  ;;  %v3909_v39 = vrot.slane %v3908_v41, 2  ;;  %v3914_v14 = vrot.slane %v3913_v9, 4  ;;  %v5358_v34 = vpop.eup %5357  ;;  %v7831_v30 = vadd.f32 %v4231_v19, %v4230_v40 }
 0x91b   :  { %v4238_v51 = vrot.slane %v7771_v43, 4  ;;  %v4102_v7 = vadd.f32 %v4101_v58, %v4100_v6  ;;  %v4206_v31 = vmul.f32 %v5356_v42, %v7439_v8  ;;  %v5360_v17 = vpop.eup %5359  ;;  %v7835_v63 = vadd.f32 %v4091_v25, %v4090_v28 }
 0x91c   :  { %v4149_v18 = vadd.f32 %v5358_v34, %v5356_v42  ;;  %v4207_v15 = vmul.f32 %v5358_v34, %v7444_v61  ;;  %v3986_v55 = vsub.f32 %v7683_v23, %v3905_v27  ;;  %v5362_v62 = vpop.eup %5361  ;;  %v4210_v37 = vmul.f32 %v5360_v17, %v7453_v48 }
 0x91d   :  { %v4316_v59 = vsel %vm4216_vm9, %v4206_v31, 0.0  ;;  %v3987_v40 = vsub.f32 %v7690_v22, %v3905_v27  ;;  %v3969_v6 = vmax.f32 %v7736_v47, %v7742_v0  ;;  %v7845_v28 = vadd.f32 %v5362_v62, %v5360_v17 }
 0x91e   :  { %v5364_v19 = vpop.eup %5363  ;;  %v4317_v8 = vsel %vm4216_vm9, %v4207_v15, 0.0  ;;  %v3910_v36 = vmax.f32 %v3908_v41, %v3909_v39  ;;  %v3915_v25 = vmax.f32 %v3913_v9, %v3914_v14  ;;  %v4103_v23 = vrot.slane %v4102_v7, 2 }
 0x91f   :  { %v7847_v61 = vpop.eup %5365  ;;  %v7849_v58 = vadd.f32 %v4317_v8, %v4316_v59  ;;  %v4211_v35 = vmul.f32 %v5362_v62, %v7458_v38  ;;  %v4334_v48 = vsel %vm4216_vm9, %v4210_v37, 0.0  ;;  %v7855_v22 = vmul.f32 %v7779_v5, %v7738_v21 }
 0x920   :  { %v4239_v27 = vadd.f32 %v4238_v51, %v7771_v43  ;;  %v7859_v42 = vadd.f32 %v7847_v61, %v5364_v19  ;;  %v4028_v41 = vmul.f32 1.442695, %v3986_v55  ;;  %v7863_v39 = vmul.f32 %v7797_v29, %v7748_v46 }
 0x921   :  { %v5368_v9 = vpop.eup %5367  ;;  %5373 = vrcp.f32 %v7835_v63  ;;  %v4335_v38 = vsel %vm4216_vm9, %v4211_v35, 0.0  ;;  %v4030_v14 = vmul.f32 1.442695, %v3987_v40  ;;  %v3911_v21 = vrot.slane %v3910_v36, 1 }
 0x922   :  { %v5370_v34 = vpop.eup %5369  ;;  %v7867_v31 = vadd.f32 %v4335_v38, %v4334_v48  ;;  %v3916_v17 = vrot.slane %v3915_v25, 2  ;;  %v3970_v43 = vrot.slane %v3969_v6, 4  ;;  %v4104_v51 = vadd.f32 %v4103_v23, %v4102_v7 }
 0x923   :  { %v4093_v15 = vadd.f32 %v5370_v34, %v5368_v9  ;;  %v4190_v55 = vmul.f32 %v5368_v9, %v7481_v32  ;;  %v4191_v62 = vmul.f32 %v5370_v34, %v7486_v13  ;;  %v4393_v46 = vsub.f32 2.0, %v7829_v20 }
 0x924   :  { %v4150_v37 = vrot.slane %v4149_v18, 4  ;;  %5375 = vpow2.f32 %v4028_v41  ;;  %v4394_v7 = vsub.f32 2.0, %v7863_v39  ;;  %v4240_v23 = vrot.slane %v4239_v27, 2 }
 0x925   :  { %v4094_v8 = vrot.slane %v4093_v15, 4  ;;  %v4244_v40 = vsel %vm4216_vm9, %v4190_v55, 0.0  ;;  %v4245_v35 = vsel %vm4216_vm9, %v4191_v62, 0.0  ;;  %5377 = vpow2.f32 %v4030_v14 }
 0x926   :  { %v7875_v48 = vpop.eup %5371  ;;  %v3912_v32 = vmax.f32 %v3910_v36, %v3911_v21  ;;  %v4224_v13 = vrot.slane %v7784_v10, 1  ;;  %v4105_v9 = vrot.slane %v4104_v51, 1  ;;  %v3917_v38 = vmax.f32 %v3915_v25, %v3916_v17 }
 0x927   :  { %v4095_v20 = vadd.f32 %v4094_v8, %v4093_v15  ;;  %v3971_v34 = vmax.f32 %v3969_v6, %v3970_v43  ;;  %v4151_v59 = vadd.f32 %v4150_v37, %v4149_v18  ;;  %v4246_v41 = vadd.f32 %v4245_v35, %v4244_v40 }
 0x928   :  { %v3988_v50 = vsub.f32 %v7703_v16, %v3912_v32  ;;  %v3989_v55 = vsub.f32 %v7709_v33, %v3912_v32  ;;  %v3918_v14 = vrot.slane %v3917_v38, 1  ;;  %v4233_v57 = vrot.slane %v7831_v30, 1 }
 0x929   :  { %v4096_v62 = vrot.slane %v4095_v20, 2  ;;  %v3972_v56 = vrot.slane %v3971_v34, 2  ;;  %v4256_v39 = vrot.slane %v7824_v53, 4  ;;  %v7884_v36 = vmul.f32 %v5364_v19, %v7467_v52 }
 0x92a   :  { %v4032_v21 = vmul.f32 1.442695, %v3988_v50  ;;  %v4034_v15 = vmul.f32 1.442695, %v3989_v55  ;;  %v3919_v6 = vmax.f32 %v3917_v38, %v3918_v14  ;;  %v7886_v17 = vadd.f32 %v4105_v9, %v4104_v51 }
 0x92b   :  { %v4097_v25 = vadd.f32 %v4096_v62, %v4095_v20  ;;  %v3973_v18 = vmax.f32 %v3971_v34, %v3972_v56  ;;  %v4152_v16 = vrot.slane %v4151_v59, 2  ;;  %v4164_v33 = vrot.slane %v7845_v28, 4 }
 0x92c   :  { %v4247_v43 = vrot.slane %v4246_v41, 4  ;;  %5379 = vpow2.f32 %v4032_v21  ;;  %v3990_v8 = vsub.f32 %v7722_v60, %v3919_v6  ;;  %v3991_v40 = vsub.f32 %v7726_v54, %v3919_v6 }
 0x92d   :  { %v4098_v37 = vrot.slane %v4097_v25, 1  ;;  %5381 = vpow2.f32 %v4034_v15  ;;  %v4319_v50 = vrot.slane %v7849_v58, 4  ;;  %v7894_v19 = vmul.f32 %v7847_v61, %v7472_v44 }
 0x92e   :  { %v5374_v52 = vpop.eup %5373  ;;  %v3974_v56 = vrot.slane %v3973_v18, 1  ;;  %v4241_v51 = vadd.f32 %v4240_v23, %v4239_v27  ;;  %v4036_v32 = vmul.f32 1.442695, %v3990_v8  ;;  %v4038_v9 = vmul.f32 1.442695, %v3991_v40 }
 0x92f   :  { %v7896_v35 = vadd.f32 %v4098_v37, %v4097_v25  ;;  %5383 = vrcp.f32 %v7886_v17  ;;  %v4153_v20 = vadd.f32 %v4152_v16, %v4151_v59  ;;  %v4225_v60 = vadd.f32 %v4224_v13, %v7784_v10  ;;  %v8330_v13 = vld [vmem:[#allocation43_spill] sm:$0xff] }
 0x930   :  { %v3975_v38 = vmax.f32 %v3973_v18, %v3974_v56  ;;  %v4257_v54 = vadd.f32 %v4256_v39, %v7824_v53  ;;  %v4248_v55 = vadd.f32 %v4247_v43, %v4246_v41  ;;  %v4379_v44 = vmul.f32 %v5374_v52, %v7835_v63 }
 0x931   :  { %v5376_v34 = vpop.eup %5375  ;;  %5385 = vrcp.f32 %v7896_v35  ;;  %v4409_v61 = vmul.f32 %v7767_v1, %v4393_v46  ;;  %v4410_v59 = vmul.f32 %v7797_v29, %v4394_v7  ;;  %v4234_v10 = vadd.f32 %v4233_v57, %v7831_v30  ;;  %v8331_v1 = vld [vmem:[#allocation46_spill] sm:$0xff] }
 0x932   :  { %v5378_v27 = vpop.eup %5377  ;;  %5387 = vpow2.f32 %v4036_v32  ;;  %v4006_v23 = vsub.f32 %v7736_v47, %v3975_v38  ;;  %v4007_v62 = vsub.f32 %v7742_v0, %v3975_v38  ;;  %v4242_v53 = vrot.slane %v4241_v51, 1 }
 0x933   :  { %v4107_v14 = vadd.f32 %v5378_v27, %v5376_v34  ;;  %5389 = vpow2.f32 %v4038_v9  ;;  %v4194_v41 = vmul.f32 %v5376_v34, %v8330_v13  ;;  %v4258_v63 = vrot.slane %v4257_v54, 2 }
 0x934   :  { %v4068_v39 = vmul.f32 1.442695, %v4006_v23  ;;  %v4070_v21 = vmul.f32 1.442695, %v4007_v62  ;;  %v4195_v46 = vmul.f32 %v5378_v27, %v8331_v1  ;;  %v4395_v25 = vsub.f32 2.0, %v4379_v44  ;;  %v8333_v44 = vld [vmem:[#allocation38_spill] sm:$0xff] }
 0x935   :  { %v4108_v15 = vrot.slane %v4107_v14, 4  ;;  %v4425_v6 = vmul.f32 %v4409_v61, %v4225_v60  ;;  %v4154_v47 = vrot.slane %v4153_v20, 1  ;;  %v4165_v0 = vadd.f32 %v4164_v33, %v7845_v28 }
 0x936   :  { %5391 = vpow2.f32 %v4068_v39  ;;  %v4426_v29 = vmul.f32 %v4410_v59, %v4234_v10  ;;  %v4243_v18 = vadd.f32 %v4242_v53, %v4241_v51  ;;  %v4411_v57 = vmul.f32 %v5374_v52, %v4395_v25  ;;  %v8332_v51 = vld [vmem:[#allocation52_spill] sm:$0xff] }
 0x937   :  { %v4109_v7 = vadd.f32 %v4108_v15, %v4107_v14  ;;  %5393 = vpow2.f32 %v4070_v21  ;;  %v4171_v30 = vrot.slane %v7859_v42, 4  ;;  %v4249_v16 = vrot.slane %v4248_v55, 2 }
 0x938   :  { %v4259_v43 = vadd.f32 %v4258_v63, %v4257_v54  ;;  %v4461_v37 = vsel %vm1945_vm1, %v4426_v29, %v4425_v6  ;;  %v4262_v56 = vsel %vm4216_vm9, %v4194_v41, 0.0  ;;  %v4263_v32 = vsel %vm4216_vm9, %v4195_v46, 0.0  ;;  %v8334_v46 = vld [vmem:[#allocation48_spill] sm:$0xff] }
 0x939   :  { %v5380_v8 = vpop.eup %5379  ;;  %v4110_v40 = vrot.slane %v4109_v7, 2  ;;  %v4427_v9 = vmul.f32 %v4411_v57, %v4243_v18  ;;  %v7915_v33 = vadd.f32 %v4154_v47, %v4153_v20  ;;  %v4166_v38 = vrot.slane %v4165_v0, 2 }
 0x93a   :  { %v5382_v28 = vpop.eup %5381  ;;  %v7919_v52 = vsel %vm4216_vm9, %v7884_v36, 0.0  ;;  %v4196_v60 = vmul.f32 %v5380_v8, %v8332_v51  ;;  %v7925_v62 = vadd.f32 %v4319_v50, %v7849_v58  ;;  %v4264_v59 = vadd.f32 %v4263_v32, %v4262_v56 }
 0x93b   :  { %v4111_v54 = vadd.f32 %v4110_v40, %v4109_v7  ;;  %v4114_v34 = vadd.f32 %v5382_v28, %v5380_v8  ;;  %v4197_v61 = vmul.f32 %v5382_v28, %v8333_v44  ;;  %v4462_v27 = vsel %vm1947_vm2, %v4427_v9, %v4461_v37 }
 0x93c   :  { %v5384_v23 = vpop.eup %5383  ;;  %v4250_v20 = vadd.f32 %v4249_v16, %v4248_v55  ;;  %v4260_v14 = vrot.slane %v4259_v43, 1  ;;  %v4172_v10 = vadd.f32 %v4171_v30, %v7859_v42  ;;  %5395 = vrcp.f32 %v7915_v33 }
 0x93d   :  { %v4115_v53 = vrot.slane %v4114_v34, 4  ;;  %v4112_v36 = vrot.slane %v4111_v54, 1  ;;  %v4381_v13 = vmul.f32 %v5384_v23, %v7886_v17  ;;  %v4167_v39 = vadd.f32 %v4166_v38, %v4165_v0  ;;  %v8335_v0 = vld [vmem:[#allocation50_spill] sm:$0xff] }
 0x93e   :  { %v5386_v41 = vpop.eup %5385  ;;  %v4271_v21 = vsel %vm4216_vm9, %v4196_v60, 0.0  ;;  %v4272_v63 = vsel %vm4216_vm9, %v4197_v61, 0.0  ;;  %v4251_v6 = vrot.slane %v4250_v20, 1  ;;  %v4261_v17 = vadd.f32 %v4260_v14, %v4259_v43 }
 0x93f   :  { %v5388_v15 = vpop.eup %5387  ;;  %v4116_v58 = vadd.f32 %v4115_v53, %v4114_v34  ;;  %v7932_v50 = vadd.f32 %v4112_v36, %v4111_v54  ;;  %v4380_v55 = vmul.f32 %v5386_v41, %v7896_v35  ;;  %v4397_v1 = vsub.f32 2.0, %v4381_v13 }
 0x940   :  { %v5390_v42 = vpop.eup %5389  ;;  %v4198_v25 = vmul.f32 %v5388_v15, %v8334_v46  ;;  %v4265_v47 = vrot.slane %v4264_v59, 4  ;;  %v4173_v57 = vrot.slane %v4172_v10, 2  ;;  %v4273_v30 = vadd.f32 %v4272_v63, %v4271_v21  ;;  %v8338_v46 = vld [vmem:[#allocation44_spill] sm:$0xff] }
 0x941   :  { %v4121_v29 = vadd.f32 %v5390_v42, %v5388_v15  ;;  %v4117_v7 = vrot.slane %v4116_v58, 2  ;;  %v4199_v18 = vmul.f32 %v5390_v42, %v8335_v0  ;;  %5397 = vrcp.f32 %v7932_v50 }
 0x942   :  { %v4280_v16 = vsel %vm4216_vm9, %v4198_v25, 0.0  ;;  %v4396_v37 = vsub.f32 2.0, %v4380_v55  ;;  %v4413_v32 = vmul.f32 %v5384_v23, %v4397_v1  ;;  %v4252_v43 = vadd.f32 %v4251_v6, %v4250_v20 }
 0x943   :  { %v5392_v8 = vpop.eup %5391  ;;  %v4122_v35 = vrot.slane %v4121_v29, 4  ;;  %v4118_v40 = vadd.f32 %v4117_v7, %v4116_v58  ;;  %v4281_v56 = vsel %vm4216_vm9, %v4199_v18, 0.0  ;;  %v4266_v28 = vadd.f32 %v4265_v47, %v4264_v59  ;;  %v8336_v59 = vld [vmem:[#allocation34_spill] sm:$0xff] }
 0x944   :  { %v5394_v9 = vpop.eup %5393  ;;  %v4412_v38 = vmul.f32 %v5386_v41, %v4396_v37  ;;  %v7943_v51 = vadd.f32 %v4161_v11, %v7808_v24  ;;  %v4429_v44 = vmul.f32 %v4413_v32, %v4261_v17  ;;  %v4282_v61 = vadd.f32 %v4281_v56, %v4280_v16  ;;  %v8337_v24 = vld [vmem:[#allocation33_spill] sm:$0xff] }
 0x945   :  { %v4177_v60 = vadd.f32 %v5394_v9, %v5392_v8  ;;  %v4119_v54 = vrot.slane %v4118_v40, 1  ;;  %v4123_v34 = vadd.f32 %v4122_v35, %v4121_v29  ;;  %v4168_v53 = vrot.slane %v4167_v39, 1 }
 0x946   :  { %v4428_v14 = vmul.f32 %v4412_v38, %v4252_v43  ;;  %v4174_v36 = vadd.f32 %v4173_v57, %v4172_v10  ;;  %v4274_v20 = vrot.slane %v4273_v30, 4  ;;  %v4214_v41 = vmul.f32 %v5392_v8, %v8336_v59 }
 0x947   :  { %v4178_v13 = vrot.slane %v4177_v60, 4  ;;  %v7945_v21 = vadd.f32 %v4119_v54, %v4118_v40  ;;  %v4124_v23 = vrot.slane %v4123_v34, 2  ;;  %v4267_v63 = vrot.slane %v4266_v28, 2 }
 0x948   :  { %v4463_v15 = vsel %vm1949_vm3, %v4428_v14, %v4462_v27  ;;  %v4296_v11 = vrot.slane %v8337_v24, 1  ;;  %v4283_v10 = vrot.slane %v4282_v61, 4  ;;  %v4175_v42 = vrot.slane %v4174_v36, 1 }
 0x949   :  { %v4125_v58 = vadd.f32 %v4124_v23, %v4123_v34  ;;  %5399 = vrcp.f32 %v7945_v21  ;;  %v7952_v55 = vsel %vm1951_vm4, %v4429_v44, %v4463_v15  ;;  %v4179_v1 = vadd.f32 %v4178_v13, %v4177_v60  ;;  %v5396_v17 = vpop.eup %5395 }
 0x94a   :  { %v4215_v25 = vmul.f32 %v5394_v9, %v8338_v46  ;;  %v4305_v6 = vrot.slane %v7790_v4, 1  ;;  %v4275_v29 = vadd.f32 %v4274_v20, %v4273_v30  ;;  %v7956_v7 = vadd.f32 %v4168_v53, %v4167_v39 }
 0x94b   :  { %v4126_v47 = vrot.slane %v4125_v58, 1  ;;  %v4180_v27 = vrot.slane %v4179_v1, 2  ;;  %v4297_v0 = vadd.f32 %v4296_v11, %v8337_v24  ;;  %v8339_v18 = vrot.slane %v7795_v2, 2 }
 0x94c   :  { %v4321_v16 = vrot.slane %v7925_v62, 2  ;;  %v4344_v37 = vsel %vm4216_vm9, %v7894_v19, 0.0  ;;  %v7967_v35 = vadd.f32 %v4267_v63, %v4266_v28  ;;  %v4352_v39 = vsel %vm4216_vm9, %v4214_v41, 0.0 }
 0x94d   :  { %v4313_v57 = vadd.f32 %v8339_v18, %v7795_v2  ;;  %v7965_v8 = vadd.f32 %v4126_v47, %v4125_v58  ;;  %v4181_v40 = vadd.f32 %v4180_v27, %v4179_v1  ;;  %v4284_v30 = vadd.f32 %v4283_v10, %v4282_v61 }
 0x94e   :  { %v7970_v56 = vadd.f32 %v4175_v42, %v4174_v36  ;;  %v4345_v32 = vadd.f32 %v4344_v37, %v7919_v52  ;;  %v4353_v9 = vsel %vm4216_vm9, %v4215_v25, 0.0  ;;  %v5398_v2 = vpop.eup %5397  ;;  %v4276_v43 = vrot.slane %v4275_v29, 2 }
 0x94f   :  { %5401 = vrcp.f32 %v7965_v8  ;;  %v4182_v38 = vrot.slane %v4181_v40, 1  ;;  %v4306_v19 = vadd.f32 %v4305_v6, %v7790_v4  ;;  %v4314_v60 = vrot.slane %v4313_v57, 1 }
 0x950   :  { %v4322_v28 = vadd.f32 %v4321_v16, %v7925_v62  ;;  %v4337_v54 = vrot.slane %v7867_v31, 4  ;;  %v4354_v34 = vadd.f32 %v4353_v9, %v4352_v39  ;;  %v4269_v44 = vrot.slane %v7967_v35, 1 }
 0x951   :  { %v7979_v61 = vadd.f32 %v4182_v38, %v4181_v40  ;;  %v4346_v52 = vrot.slane %v4345_v32, 4  ;;  %5403 = vrcp.f32 %v7943_v51  ;;  %v4285_v14 = vrot.slane %v4284_v30, 2 }
 0x952   :  { %v8340_v53 = vrot.slane %v7697_v3, 4  ;;  %v4355_v13 = vrot.slane %v4354_v34, 4  ;;  %5405 = vrcp.f32 %v7956_v7  ;;  %v4277_v4 = vadd.f32 %v4276_v43, %v4275_v29 }
 0x953   :  { %v4382_v62 = vmul.f32 %v5398_v2, %v7932_v50  ;;  %5407 = vrcp.f32 %v7970_v56  ;;  %v4387_v23 = vmul.f32 %v7875_v48, %v7803_v45  ;;  %v4315_v20 = vadd.f32 %v4314_v60, %v4313_v57 }
 0x954   :  { %v4329_v36 = vadd.f32 %v8340_v53, %v7697_v3  ;;  %v4323_v59 = vrot.slane %v4322_v28, 1  ;;  %v4338_v41 = vadd.f32 %v4337_v54, %v7867_v31  ;;  %5409 = vrcp.f32 %v7979_v61 }
 0x955   :  { %v4347_v63 = vadd.f32 %v4346_v52, %v4345_v32  ;;  %v4388_v3 = vmul.f32 %v5396_v17, %v7915_v33  ;;  %v4403_v15 = vsub.f32 2.0, %v4387_v23  ;;  %v8341_v24 = vsub.f32 2.0, %v7812_v12 }
 0x956   :  { %v5400_v50 = vpop.eup %5399  ;;  %v4286_v58 = vadd.f32 %v4285_v14, %v4284_v30  ;;  %v4330_v1 = vrot.slane %v4329_v36, 2  ;;  %v4356_v10 = vadd.f32 %v4355_v13, %v4354_v34  ;;  %v8342_v45 = vsub.f32 2.0, %v7855_v22 }
 0x957   :  { %v4417_v11 = vmul.f32 %v7762_v26, %v8341_v24  ;;  %v4383_v31 = vmul.f32 %v5400_v50, %v7945_v21  ;;  %v4398_v46 = vsub.f32 2.0, %v4382_v62  ;;  %v4404_v25 = vsub.f32 2.0, %v4388_v3 }
 0x958   :  { %v4418_v42 = vmul.f32 %v7779_v5, %v8342_v45  ;;  %v4419_v6 = vmul.f32 %v7875_v48, %v4403_v15  ;;  %v4324_v33 = vadd.f32 %v4323_v59, %v4322_v28  ;;  %v4339_v47 = vrot.slane %v4338_v41, 2 }
 0x959   :  { %v4433_v29 = vmul.f32 %v4417_v11, %v4297_v0  ;;  %v4399_v27 = vsub.f32 2.0, %v4383_v31  ;;  %v4348_v26 = vrot.slane %v4347_v63, 2  ;;  %v4420_v18 = vmul.f32 %v5396_v17, %v4404_v25 }
 0x95a   :  { %v4434_v12 = vmul.f32 %v4418_v42, %v4306_v19  ;;  %v4435_v57 = vmul.f32 %v4419_v6, %v4315_v20  ;;  %v4278_v16 = vrot.slane %v4277_v4, 1  ;;  %v4331_v37 = vadd.f32 %v4330_v1, %v4329_v36 }
 0x95b   :  { %v4357_v40 = vrot.slane %v4356_v10, 2  ;;  %v4414_v5 = vmul.f32 %v5398_v2, %v4398_v46  ;;  %v4436_v39 = vmul.f32 %v4420_v18, %v4324_v33  ;;  %v4287_v32 = vrot.slane %v4286_v58, 1  ;;  %v8343_v18 = vld [vmem:[#allocation5_spill] sm:$0xff] }
 0x95c   :  { %v4468_v22 = vsel %vm1945_vm1, %v4434_v12, %v4433_v29  ;;  %v5402_v30 = vpop.eup %5401  ;;  %v4415_v48 = vmul.f32 %v5400_v50, %v4399_v27  ;;  %v4340_v9 = vadd.f32 %v4339_v47, %v4338_v41  ;;  %v4270_v0 = vadd.f32 %v4269_v44, %v7967_v35  ;;  %v5420_v29 = vld [vmem:[%s8038_s3 + $0x8] sm:$0xff]  ;;  %s5451_s3 = smov [#allocation2]  }
 0x95d   :  { %v4469_v21 = vsel %vm1947_vm2, %v4435_v57, %v4468_v22  ;;  %v4384_v43 = vmul.f32 %v5402_v30, %v7965_v8  ;;  %v4349_v38 = vadd.f32 %v4348_v26, %v4347_v63  ;;  %v4279_v60 = vadd.f32 %v4278_v16, %v4277_v4  ;;  %s4669_s30 = sshll.u32 %s5451_s3, 4  ;;  %s4670_s30 = int_to_ptr.vmem [resolvable:$true] %s4669_s30 }
 0x95e   :  { %v4470_v17 = vsel %vm1949_vm3, %v4436_v39, %v4469_v21  ;;  %v5404_v19 = vpop.eup %5403  ;;  %v4332_v28 = vrot.slane %v4331_v37, 1  ;;  %v4358_v54 = vadd.f32 %v4357_v40, %v4356_v10  ;;  %v4430_v52 = vmul.f32 %v4414_v5, %v4270_v0  ;;  %s5421_s5 = scalar_lea.vmem %s4670_s30, 16  ;;  %s5425_s6 = scalar_lea.vmem %s4670_s30, 32 }
 0x95f   :  { %v5406_v34 = vpop.eup %5405  ;;  %v4400_v2 = vsub.f32 2.0, %v4384_v43  ;;  %v4389_v14 = vmul.f32 %v5404_v19, %v7943_v51  ;;  %v4288_v36 = vadd.f32 %v4287_v32, %v4286_v58  ;;  %v4431_v13 = vmul.f32 %v4415_v48, %v4279_v60  ;;  %p5422_p0 = scmp.ne.s32.totalorder %s4670_s30, %s5421_s5  ;;  %p5426_p1 = scmp.lt.s32.totalorder %s4670_s30, %s4670_s30 }
 0x960   :  { %v5408_v53 = vpop.eup %5407  ;;  %v4341_v62 = vrot.slane %v4340_v9, 1  ;;  %v4390_v35 = vmul.f32 %v5406_v34, %v7956_v7  ;;  %v4350_v23 = vrot.slane %v4349_v38, 1  ;;  %v4333_v4 = vadd.f32 %v4332_v28, %v4331_v37  ;;  %p5427_p2 = scmp.lt.s32.totalorder %s5425_s6, %s5421_s5 }
 0x961   :  { %v5410_v44 = vpop.eup %5409  ;;  %v4416_v8 = vmul.f32 %v5402_v30, %v4400_v2  ;;  %v4391_v20 = vmul.f32 %v5408_v53, %v7970_v56  ;;  %v4405_v59 = vsub.f32 2.0, %v4389_v14  ;;  %v4359_v41 = vrot.slane %v4358_v54, 1 }
 0x962   :  { %v4392_v63 = vmul.f32 %v5410_v44, %v7979_v61  ;;  %v4406_v3 = vsub.f32 2.0, %v4390_v35  ;;  %v4465_v51 = vsel %vm1953_vm5, %v4430_v52, %v7952_v55  ;;  %v4342_v7 = vadd.f32 %v4341_v62, %v4340_v9  ;;  %p5428_p3 = por %p5427_p2, %p5426_p1 }
 0x963   :  { %v4432_v15 = vmul.f32 %v4416_v8, %v4288_v36  ;;  %v4407_v24 = vsub.f32 2.0, %v4391_v20  ;;  %v4421_v11 = vmul.f32 %v5404_v19, %v4405_v59  ;;  %v4466_v50 = vsel %vm1955_vm6, %v4431_v13, %v4465_v51 }
 0x964   :  { %v4408_v58 = vsub.f32 2.0, %v4392_v63  ;;  %v4422_v1 = vmul.f32 %v5406_v34, %v4406_v3  ;;  %v4351_v56 = vadd.f32 %v4350_v23, %v4349_v38  ;;  %v4360_v61 = vadd.f32 %v4359_v41, %v4358_v54  ;;  %p5429_p4 = pnand %p5428_p3, %p5422_p0 }
 0x965   :  { %v4467_v10 = vsel %vm1957_vm7, %v4432_v15, %v4466_v50  ;;  %v4423_v45 = vmul.f32 %v5408_v53, %v4407_v24  ;;  %v4437_v42 = vmul.f32 %v4421_v11, %v4333_v4  ;;  %v8344_v57 = vsub.s32 4, %v8343_v18 }
 0x966   :  { %4475 = vrot.lane.b32.xlu1 %v4467_v10, %s5449_s18  ;;  %v4424_v31 = vmul.f32 %v5410_v44, %v4408_v58  ;;  %v4438_v46 = vmul.f32 %v4422_v1, %v4342_v7  ;;  %v4580_v30 = vrot.slane %v5420_v29, 5 }
 0x967   :  { %v4439_v25 = vmul.f32 %v4423_v45, %v4351_v56  ;;  %v4471_v55 = vsel %vm1951_vm4, %v4437_v42, %v4470_v17  ;;  %v4444_v16 = vrot.slane %v5420_v29, %v8344_v57 }
 0x968   :  { %v4440_v6 = vmul.f32 %v4424_v31, %v4360_v61  ;;  %v4472_v33 = vsel %vm1953_vm5, %v4438_v46, %v4471_v55 }
 0x969   :  { %v4473_v47 = vsel %vm1955_vm6, %v4439_v25, %v4472_v33 }
 0x96a   :  { %4578 = vperm.xlu1 %4929, %v5420_v29   ;;  %v4474_v12 = vsel %vm1957_vm7, %v4440_v6, %v4473_v47 }
 0x96b   :  { %4477 = vrot.lane.b32.xlu0 %v4474_v12, %s5449_s18 }
 0x9d8   :  { %v4476_v27 = vpop.permute.xlu1 %4475 }
 0x9d9   :  { %4886 = vmatprep.mubr.msk.f32.mxu1 %vm484_vm0, %v4476_v27 }
 0x9dd   :  { %v4478_v26 = vpop.permute.xlu0 %4477 }
 0x9de   :  { %4887 = vmatmul.mubr.msk.f32.vlgmr.msra.gmra.mxu1 %vm484_vm0, %v4478_v26 }
 0x9df   :  { %4893 = vmatprep.mubr.msk.f32.mxu1 %vm5450_vm10, %v8324_v49 }
 0x9e5   :  { %v4579_v32 = vpop.permute.xlu1 %4578 }
 0x9e6   :  { %v4581_v48 = vrot.slane %v4579_v32, 6 }
 0xa9e   :  { %v4888_v37 = vpop.f32.mrf.mxu1 }
 0xa9f   :  { %v4571_v40 = vadd.f32 %v4888_v37, %v4444_v16 }
 0xaa0   :  { %v4565_v22 = vpop.f32.mrf.mxu1 }
 0xaa1   :  { %v4575_v5 = vmax.f32 %v4571_v40, 0.0  ;;  %v4566_v39 = vadd.f32 %v4565_v22, %v4444_v16 }
 0xaa3   :  { %4890 = vmatpush3.xpose.msk.msra.mxu1 %vm484_vm0, %v4575_v5  ;;  %v4574_v21 = vmax.f32 %v4566_v39, 0.0 }
 0xaa4   :  { %4891 = vmatprep.subr.mxu1 %v8324_v49 }
 0xaa7   :  { %4892 = vmatpush3.xpose.msk.msra.mxu1 %vm484_vm0, %v4574_v21 }
 0xaaa   :  { %4894 = vmatmul.mubr.msk.f32.vlgmr.msra.gmra.mxu1 %vm484_vm0, %v4580_v30 }
 0xb6a   :  { %v4657_v9 = vpop.f32.mrf.mxu1 }
 0xb6b   :  { %v4658_v0 = vadd.f32 %v4657_v9, %v4581_v48 }
 0xb6c   :  { %v4895_v43 = vpop.f32.mrf.mxu1 }
 0xb6d   :  { %4662 = vst.msk [vmem:[#allocation2] sm:$0x1] %vm4661_vm11, %v4658_v0 }
 0xb6e   :  { %5432 = shalt.err (!%p5429_p4)
}
 0xb6f   :  { %4672 = dma.vmem_to_hbm [thread:$0]  %s4670_s30, 16, %s8039_s4, [#allocation3]  }
 0xb70   :  { %5441 = dma.done.wait [#allocation3], 16  }
 0xb71   :  { %5442 = vsyncadd [#allocation3], 4294967280 }
 0xb72   :  { %4676 = vsyncpa [#allocation3], 1 }

</bundles_post_ra>
